<compile_context>
chip_gen: v6e
topology: v6e:2x2x1
jax: 0.10.0
libtpu: 0.0.40
codegen_flags: <defaults>
</compile_context>

<pallas_src>
import functools

import jax
import jax.numpy as jnp
import numpy as np
from jax import lax
from jax.experimental import pallas as pl
from jax.experimental.pallas import tpu as pltpu

EPS = 1e-5                      # PyTorch BatchNorm2d default eps
COMPUTE_DTYPE = jnp.bfloat16    # streamed activations / weights (f32 accumulate + epilogue)


# --------------------------------- fused kernel ---------------------------------

def _fused_block_kernel(*refs, stride, has_proj):
    """Whole ResNeXt block for ONE image, fully fused in VMEM.

    conv1(1x1)+bn1+relu -> padded VMEM scratch -> grouped 3x3 conv(+stride)+bn2+relu
    -> conv3(1x1)+bn3 -> (+ projection/identity shortcut) -> relu -> output tile.
    Only the input image and the final output touch HBM.
    """
    if has_proj:
        (x_ref, w1_ref, s1_ref, b1_ref, w2_ref, s2_ref, b2_ref,
         w3_ref, s3_ref, b3_ref, wsc_ref, ssc_ref, bsc_ref,
         o_ref, ypad_ref) = refs
    else:
        (x_ref, w1_ref, s1_ref, b1_ref, w2_ref, s2_ref, b2_ref,
         w3_ref, s3_ref, b3_ref, o_ref, ypad_ref) = refs
        wsc_ref = ssc_ref = bsc_ref = None

    _, H, W, Cin = x_ref.shape
    Hp, Wp, gw = ypad_ref.shape            # Hp = H + 2, Wp = W + 2
    _, Ho, Wo, Cout = o_ref.shape
    cdt = ypad_ref.dtype                   # bf16 streaming dtype

    # ---- stage 1: conv1 (1x1) + bn1 + relu, written into the padded scratch ----
    x2d = x_ref[...].reshape(H * W, Cin)                      # (H*W, Cin) bf16
    y1 = jnp.dot(x2d, w1_ref[...], preferred_element_type=jnp.float32)
    y1 = jnp.maximum(y1 * s1_ref[...] + b1_ref[...], 0.0)     # f32 epilogue

    # Zero only the halo border rows/cols (not the whole scratch), then write the
    # interior once.  Everything is rewritten each grid step -> no cross-step state,
    # so the batch grid axis can stay "parallel" (v7x megacore-safe).
    ypad_ref[0:1, :, :] = jnp.zeros((1, Wp, gw), cdt)
    ypad_ref[H + 1:H + 2, :, :] = jnp.zeros((1, Wp, gw), cdt)
    ypad_ref[:, 0:1, :] = jnp.zeros((Hp, 1, gw), cdt)
    ypad_ref[:, W + 1:W + 2, :] = jnp.zeros((Hp, 1, gw), cdt)
    ypad_ref[1:H + 1, 1:W + 1, :] = y1.reshape(H, W, gw).astype(cdt)

    # ---- stage 2: grouped 3x3 conv (stride computed directly) + bn2 + relu ----
    # Grouped weights are pre-expanded to block-diagonal dense (9, gw, gw) so each tap
    # is one MXU matmul; partial sums stay in vregs (single accumulator value) instead
    # of 9 VMEM read-modify-write passes.
    # TODO(synk): at production widths (gw >= 512) stream w2 in per-group channel chunks
    # (extra grid axis) and row-tile the image with halos so the dense weight + the
    # accumulator fit v7x's 64 MiB VMEM and batch-1 inference still fills both cores.
    acc = jnp.zeros((Ho * Wo, gw), jnp.float32)
    for kh in range(3):
        for kw in range(3):
            if stride == 1:
                patch = ypad_ref[kh:kh + Ho, kw:kw + Wo, :]
            else:
                # Output (i, j) reads padded row stride*i + kh, col stride*j + kw.
                # Row stride rides the outer dim (cheap address math).
                # TODO(synk): per perf review, the W-axis sublane-strided read could be
                # a contiguous load + (Wo, stride, C) reshape/select instead; kept the
                # pl.ds form here for robust lowering of packed bf16 at small widths.
                patch = ypad_ref[pl.ds(kh, Ho, stride=stride),
                                 pl.ds(kw, Wo, stride=stride), :]
            acc = acc + jnp.dot(patch.reshape(Ho * Wo, gw), w2_ref[kh * 3 + kw],
                                preferred_element_type=jnp.float32)
    y2 = jnp.maximum(acc * s2_ref[...] + b2_ref[...], 0.0).astype(cdt)   # (Ho*Wo, gw)

    # ---- stage 3: conv3 (1x1) + bn3 + shortcut + relu ----
    out = jnp.dot(y2, w3_ref[...], preferred_element_type=jnp.float32)
    out = out * s3_ref[...] + b3_ref[...]

    if stride == 1:
        xs2d = x2d
    else:
        # Shortcut subsample taken straight from the VMEM-resident input tile
        # (no xs = x[:, ::s, ::s, :] materialized in HBM by the wrapper).
        xs2d = x_ref[:, pl.ds(0, Ho, stride=stride),
                     pl.ds(0, Wo, stride=stride), :].reshape(Ho * Wo, Cin)

    if has_proj:
        sc = jnp.dot(xs2d, wsc_ref[...], preferred_element_type=jnp.float32)
        sc = sc * ssc_ref[...] + bsc_ref[...]
    else:
        sc = xs2d.astype(jnp.float32)                          # identity (Cin == Cout)

    res = jnp.maximum(out + sc, 0.0)
    # TODO(synk): at real widths (Cout >= 128) the output is already lane-dense; for
    # sub-128 channel counts, fold spatial positions into the lane dim to avoid masked
    # partial stores.
    o_ref[...] = res.reshape(1, Ho, Wo, Cout).astype(o_ref.dtype)


# ------------------------------ pallas_call wrapper ------------------------------

def _nbytes(shape, dtype):
    return int(np.prod(shape)) * np.dtype(dtype).itemsize


def _fused_block(x_nhwc, p, *, stride, out_dtype):
    N, H, W, Cin = x_nhwc.shape
    gw = p["w1"].shape[1]
    cout = p["w3"].shape[1]
    Ho = (H - 1) // stride + 1
    Wo = (W - 1) // stride + 1
    Hp, Wp = H + 2, W + 2
    has_proj = bool(p["has_shortcut"])
    cdt = x_nhwc.dtype

    vec = lambda c: pl.BlockSpec((1, c), lambda n: (0, 0))
    in_specs = [
        pl.BlockSpec((1, H, W, Cin), lambda n: (n, 0, 0, 0)),
        pl.BlockSpec((Cin, gw), lambda n: (0, 0)), vec(gw), vec(gw),
        pl.BlockSpec((9, gw, gw), lambda n: (0, 0, 0)), vec(gw), vec(gw),
        pl.BlockSpec((gw, cout), lambda n: (0, 0)), vec(cout), vec(cout),
    ]
    args = [x_nhwc,
            p["w1"], p["s1"].reshape(1, -1), p["b1"].reshape(1, -1),
            p["w2"], p["s2"].reshape(1, -1), p["b2"].reshape(1, -1),
            p["w3"], p["s3"].reshape(1, -1), p["b3"].reshape(1, -1)]
    if has_proj:
        in_specs += [pl.BlockSpec((Cin, cout), lambda n: (0, 0)), vec(cout), vec(cout)]
        args += [p["wsc"], p["ssc"].reshape(1, -1), p["bsc"].reshape(1, -1)]

    # Explicit scoped-VMEM budget: double-buffered blocks + scratch, capped at the v7x
    # physical 64 MiB (v5e/v6e scoped defaults are 16/32 MiB).
    block_bytes = (_nbytes((1, H, W, Cin), cdt)
                   + sum(_nbytes(a.shape, a.dtype) for a in args[1:])
                   + _nbytes((1, Ho, Wo, cout), out_dtype))
    scratch_bytes = _nbytes((Hp, Wp, gw), cdt)
    vmem_limit = int(min(64 * 1024 * 1024,
                         max(4 * block_bytes + scratch_bytes, 16 * 1024 * 1024)))

    kernel = functools.partial(_fused_block_kernel, stride=stride, has_proj=has_proj)
    return pl.pallas_call(
        kernel,
        out_shape=jax.ShapeDtypeStruct((N, Ho, Wo, cout), out_dtype),
        grid=(N,),
        in_specs=in_specs,
        out_specs=pl.BlockSpec((1, Ho, Wo, cout), lambda n: (n, 0, 0, 0)),
        scratch_shapes=[pltpu.VMEM((Hp, Wp, gw), cdt)],   # padded conv1 output (bf16)
        compiler_params=pltpu.CompilerParams(
            dimension_semantics=("parallel",),
            vmem_limit_bytes=vmem_limit),
    )(*args)


# ------------------------------ forward pass ------------------------------

def block_forward(x_nchw, p, *, stride=1, compute_dtype=COMPUTE_DTYPE):
    # TODO(synk): in a full network keep activations NHWC + bf16 end-to-end so this
    # transpose + cast (a full HBM pass over x) lives once at the network boundary,
    # not once per block.
    x = jnp.transpose(x_nchw, (0, 2, 3, 1)).astype(compute_dtype)   # NCHW -> NHWC, bf16
    out = _fused_block(x, p, stride=stride, out_dtype=x_nchw.dtype)
    return jnp.transpose(out, (0, 3, 1, 2))                          # NHWC -> NCHW


# ------------------------------ parameters ------------------------------

def _fold_bn(gamma, beta, mean, var):
    scale = gamma / jnp.sqrt(var + EPS)
    return scale, beta - mean * scale


def init_params(key, in_planes, cardinality, bottleneck_width, stride,
                compute_dtype=COMPUTE_DTYPE):
    gw = cardinality * bottleneck_width
    cout = 2 * gw                       # Block.expansion == 2
    cpg = gw // cardinality
    ks = jax.random.split(key, 8)

    def bn_params(k, c):
        k1, k2, k3, k4 = jax.random.split(k, 4)
        gamma = jax.random.uniform(k1, (c,), jnp.float32, 0.5, 1.5)
        beta = jax.random.normal(k2, (c,), jnp.float32) * 0.1
        mean = jax.random.normal(k3, (c,), jnp.float32) * 0.1
        var = jax.random.uniform(k4, (c,), jnp.float32, 0.5, 1.5)
        return gamma, beta, mean, var

    w1 = jax.random.normal(ks[0], (in_planes, gw), jnp.float32) * 0.1        # 1x1 (Cin,Cout)
    w2_hwio = jax.random.normal(ks[1], (3, 3, cpg, gw), jnp.float32) * 0.1   # grouped 3x3 HWIO
    w3 = jax.random.normal(ks[2], (gw, cout), jnp.float32) * 0.1             # 1x1 (Cin,Cout)
    bn1, bn2, bn3 = bn_params(ks[3], gw), bn_params(ks[4], gw), bn_params(ks[5], cout)

    has_shortcut = (stride != 1) or (in_planes != cout)
    wsc = jax.random.normal(ks[6], (in_planes, cout), jnp.float32) * 0.1
    bnsc = bn_params(ks[7], cout)

    # Expand the grouped 3x3 weight into block-diagonal dense (9, gw, gw): each tap is
    # one MXU matmul in the kernel (keeps the wide MXU fed when channels-per-group is
    # small).  TODO(synk): stream in per-group chunks at production widths (v7x VMEM).
    w2_dense = jnp.zeros((3, 3, gw, gw), jnp.float32)
    for g in range(cardinality):
        sl = slice(g * cpg, (g + 1) * cpg)
        w2_dense = w2_dense.at[:, :, sl, sl].set(w2_hwio[:, :, :, sl])
    w2_dense = w2_dense.reshape(9, gw, gw)

    s1, b1 = _fold_bn(*bn1)
    s2, b2 = _fold_bn(*bn2)
    s3, b3 = _fold_bn(*bn3)
    ssc, bsc = _fold_bn(*bnsc)

    cd = compute_dtype
    params = dict(w1=w1.astype(cd), s1=s1, b1=b1,
                  w2=w2_dense.astype(cd), s2=s2, b2=b2,
                  w3=w3.astype(cd), s3=s3, b3=b3,
                  has_shortcut=has_shortcut,
                  wsc=wsc.astype(cd), ssc=ssc, bsc=bsc)
    raw = dict(w1=w1, w2_hwio=w2_hwio, w3=w3, wsc=wsc,
               bn1=bn1, bn2=bn2, bn3=bn3, bnsc=bnsc,
               cardinality=cardinality, has_shortcut=has_shortcut)
    return params, raw


# ------------------------------ pure-JAX reference ------------------------------

def ref_forward(x_nchw, raw, *, stride=1):
    x = jnp.transpose(x_nchw, (0, 2, 3, 1))
    dn = ("NHWC", "HWIO", "NHWC")

    def bn(y, prm):
        gamma, beta, mean, var = prm
        return (y - mean) * (gamma / jnp.sqrt(var + EPS)) + beta

    y = lax.conv_general_dilated(x, raw["w1"][None, None], (1, 1), "VALID",
                                 dimension_numbers=dn, precision=lax.Precision.HIGHEST)
    y = jax.nn.relu(bn(y, raw["bn1"]))
    y = lax.conv_general_dilated(y, raw["w2_hwio"], (stride, stride), ((1, 1), (1, 1)),
                                 dimension_numbers=dn, feature_group_count=raw["cardinality"],
                                 precision=lax.Precision.HIGHEST)
    y = jax.nn.relu(bn(y, raw["bn2"]))
    y = lax.conv_general_dilated(y, raw["w3"][None, None], (1, 1), "VALID",
                                 dimension_numbers=dn, precision=lax.Precision.HIGHEST)
    y = bn(y, raw["bn3"])
    if raw["has_shortcut"]:
        sc = lax.conv_general_dilated(x, raw["wsc"][None, None], (stride, stride), "VALID",
                                      dimension_numbers=dn, precision=lax.Precision.HIGHEST)
        sc = bn(sc, raw["bnsc"])
    else:
        sc = x[:, ::stride, ::stride, :]
    out = jax.nn.relu(y + sc)
    return jnp.transpose(out, (0, 3, 1, 2))


# ------------------------------ main ------------------------------

if __name__ == "__main__":
    # Small shapes consistent with Block(in_planes=8, cardinality=4, bottleneck_width=4)
    N, in_planes, H, W = 2, 8, 16, 16
    cardinality, bottleneck_width = 4, 4
    key = jax.random.PRNGKey(0)

    for stride in (1, 2):
        kx, kp = jax.random.split(jax.random.fold_in(key, stride))
        x = jax.random.normal(kx, (N, in_planes, H, W), jnp.float32)   # NCHW, like PyTorch
        params, raw = init_params(kp, in_planes, cardinality, bottleneck_width, stride)

        out = jax.block_until_ready(block_forward(x, params, stride=stride))
        ref = jax.block_until_ready(ref_forward(x, raw, stride=stride))

        Ho = (H - 1) // stride + 1
        Wo = (W - 1) // stride + 1
        assert out.shape == ref.shape == (N, 2 * cardinality * bottleneck_width, Ho, Wo)
        # Tolerance covers bf16-streamed activations/weights (f32 accumulation + epilogue)
        # vs. the full-f32 HIGHEST-precision reference.
        np.testing.assert_allclose(np.asarray(out), np.asarray(ref), rtol=2e-2, atol=2e-2)

    print("KERNEL_OK")
</pallas_src>

<mosaic_0001>
module attributes {stable_mosaic.version = 11 : i64} {
  func.func @_fused_block_kernel(%arg0: i32, %arg1: memref<1x16x16x8xbf16, #tpu.memory_space<vmem>>, %arg2: memref<8x16xbf16, #tpu.memory_space<vmem>>, %arg3: memref<1x16xf32, #tpu.memory_space<vmem>>, %arg4: memref<1x16xf32, #tpu.memory_space<vmem>>, %arg5: memref<9x16x16xbf16, #tpu.memory_space<vmem>>, %arg6: memref<1x16xf32, #tpu.memory_space<vmem>>, %arg7: memref<1x16xf32, #tpu.memory_space<vmem>>, %arg8: memref<16x32xbf16, #tpu.memory_space<vmem>>, %arg9: memref<1x32xf32, #tpu.memory_space<vmem>>, %arg10: memref<1x32xf32, #tpu.memory_space<vmem>>, %arg11: memref<8x32xbf16, #tpu.memory_space<vmem>>, %arg12: memref<1x32xf32, #tpu.memory_space<vmem>>, %arg13: memref<1x32xf32, #tpu.memory_space<vmem>>, %arg14: memref<1x16x16x32xf32, #tpu.memory_space<vmem>>, %arg15: memref<18x18x16xbf16, #tpu.memory_space<vmem>>) attributes {dimension_semantics = [#tpu.dimension_semantics<parallel>], iteration_bounds = array<i64: 2>, scalar_prefetch = 0 : i64, scratch_operands = 1 : i64, tpu.core_type = #tpu.core_type<tc>, window_params = [{transform_indices = @transform_0, window_bounds = array<i64: 1, 16, 16, 8>}, {pipeline_mode = #tpu.pipeline_mode<synchronous>, transform_indices = @transform_1, window_bounds = array<i64: 8, 16>}, {pipeline_mode = #tpu.pipeline_mode<synchronous>, transform_indices = @transform_2, window_bounds = array<i64: 1, 16>}, {pipeline_mode = #tpu.pipeline_mode<synchronous>, transform_indices = @transform_3, window_bounds = array<i64: 1, 16>}, {pipeline_mode = #tpu.pipeline_mode<synchronous>, transform_indices = @transform_4, window_bounds = array<i64: 9, 16, 16>}, {pipeline_mode = #tpu.pipeline_mode<synchronous>, transform_indices = @transform_5, window_bounds = array<i64: 1, 16>}, {pipeline_mode = #tpu.pipeline_mode<synchronous>, transform_indices = @transform_6, window_bounds = array<i64: 1, 16>}, {pipeline_mode = #tpu.pipeline_mode<synchronous>, transform_indices = @transform_7, window_bounds = array<i64: 16, 32>}, {pipeline_mode = #tpu.pipeline_mode<synchronous>, transform_indices = @transform_8, window_bounds = array<i64: 1, 32>}, {pipeline_mode = #tpu.pipeline_mode<synchronous>, transform_indices = @transform_9, window_bounds = array<i64: 1, 32>}, {pipeline_mode = #tpu.pipeline_mode<synchronous>, transform_indices = @transform_10, window_bounds = array<i64: 8, 32>}, {pipeline_mode = #tpu.pipeline_mode<synchronous>, transform_indices = @transform_11, window_bounds = array<i64: 1, 32>}, {pipeline_mode = #tpu.pipeline_mode<synchronous>, transform_indices = @transform_12, window_bounds = array<i64: 1, 32>}, {transform_indices = @transform_13, window_bounds = array<i64: 1, 16, 16, 32>}]} {
    %c0 = arith.constant 0 : index
    %c0_0 = arith.constant 0 : index
    %c0_1 = arith.constant 0 : index
    %c0_2 = arith.constant 0 : index
    %0 = vector.load %arg1[%c0, %c0_0, %c0_1, %c0_2] : memref<1x16x16x8xbf16, #tpu.memory_space<vmem>>, vector<1x16x16x8xbf16>
    %1 = vector.shape_cast %0 : vector<1x16x16x8xbf16> to vector<256x8xbf16>
    %c0_3 = arith.constant 0 : index
    %c0_4 = arith.constant 0 : index
    %2 = vector.load %arg2[%c0_3, %c0_4] : memref<8x16xbf16, #tpu.memory_space<vmem>>, vector<8x16xbf16>
    %cst = arith.constant dense<0.000000e+00> : vector<256x16xf32>
    %3 = tpu.matmul %1, %2, %cst {dimension_numbers = #tpu.dot_dimension_numbers<[1], [0], [0], [1], [0, 0, 1, 1], [], []>} : vector<256x8xbf16>, vector<8x16xbf16>, vector<256x16xf32> -> vector<256x16xf32>
    %c0_5 = arith.constant 0 : index
    %c0_6 = arith.constant 0 : index
    %4 = vector.load %arg3[%c0_5, %c0_6] : memref<1x16xf32, #tpu.memory_space<vmem>>, vector<1x16xf32>
    %5 = vector.broadcast %4 : vector<1x16xf32> to vector<256x16xf32>
    %6 = arith.mulf %3, %5 : vector<256x16xf32>
    %c0_7 = arith.constant 0 : index
    %c0_8 = arith.constant 0 : index
    %7 = vector.load %arg4[%c0_7, %c0_8] : memref<1x16xf32, #tpu.memory_space<vmem>>, vector<1x16xf32>
    %8 = vector.broadcast %7 : vector<1x16xf32> to vector<256x16xf32>
    %9 = arith.addf %6, %8 : vector<256x16xf32>
    %cst_9 = arith.constant 0.000000e+00 : f32
    %10 = vector.broadcast %cst_9 : f32 to vector<256x16xf32>
    %11 = arith.maximumf %9, %10 : vector<256x16xf32>
    %cst_10 = arith.constant 0.000000e+00 : bf16
    %12 = vector.broadcast %cst_10 : bf16 to vector<1x18x16xbf16>
    %c0_11 = arith.constant 0 : index
    %c0_12 = arith.constant 0 : index
    %c0_13 = arith.constant 0 : index
    %13 = vector.load %arg15[%c0_11, %c0_12, %c0_13] : memref<18x18x16xbf16, #tpu.memory_space<vmem>>, vector<1x18x16xbf16>
    tpu.vector_store %arg15[%c0_11, %c0_12, %c0_13], %12 {strides = array<i32>} : memref<18x18x16xbf16, #tpu.memory_space<vmem>>, vector<1x18x16xbf16>,
    %cst_14 = arith.constant 0.000000e+00 : bf16
    %14 = vector.broadcast %cst_14 : bf16 to vector<1x18x16xbf16>
    %c17 = arith.constant 17 : index
    %c0_15 = arith.constant 0 : index
    %c0_16 = arith.constant 0 : index
    %15 = vector.load %arg15[%c17, %c0_15, %c0_16] : memref<18x18x16xbf16, #tpu.memory_space<vmem>>, vector<1x18x16xbf16>
    tpu.vector_store %arg15[%c17, %c0_15, %c0_16], %14 {strides = array<i32>} : memref<18x18x16xbf16, #tpu.memory_space<vmem>>, vector<1x18x16xbf16>,
    %cst_17 = arith.constant 0.000000e+00 : bf16
    %16 = vector.broadcast %cst_17 : bf16 to vector<18x1x16xbf16>
    %c0_18 = arith.constant 0 : index
    %c0_19 = arith.constant 0 : index
    %c0_20 = arith.constant 0 : index
    %17 = vector.load %arg15[%c0_18, %c0_19, %c0_20] : memref<18x18x16xbf16, #tpu.memory_space<vmem>>, vector<18x1x16xbf16>
    tpu.vector_store %arg15[%c0_18, %c0_19, %c0_20], %16 {strides = array<i32>} : memref<18x18x16xbf16, #tpu.memory_space<vmem>>, vector<18x1x16xbf16>,
    %cst_21 = arith.constant 0.000000e+00 : bf16
    %18 = vector.broadcast %cst_21 : bf16 to vector<18x1x16xbf16>
    %c0_22 = arith.constant 0 : index
    %c17_23 = arith.constant 17 : index
    %c0_24 = arith.constant 0 : index
    %19 = vector.load %arg15[%c0_22, %c17_23, %c0_24] : memref<18x18x16xbf16, #tpu.memory_space<vmem>>, vector<18x1x16xbf16>
    tpu.vector_store %arg15[%c0_22, %c17_23, %c0_24], %18 {strides = array<i32>} : memref<18x18x16xbf16, #tpu.memory_space<vmem>>, vector<18x1x16xbf16>,
    %20 = vector.shape_cast %11 : vector<256x16xf32> to vector<16x16x16xf32>
    %21 = arith.truncf %20 : vector<16x16x16xf32> to vector<16x16x16xbf16>
    %c1 = arith.constant 1 : index
    %c1_25 = arith.constant 1 : index
    %c0_26 = arith.constant 0 : index
    %22 = vector.load %arg15[%c1, %c1_25, %c0_26] : memref<18x18x16xbf16, #tpu.memory_space<vmem>>, vector<16x16x16xbf16>
    tpu.vector_store %arg15[%c1, %c1_25, %c0_26], %21 {strides = array<i32>} : memref<18x18x16xbf16, #tpu.memory_space<vmem>>, vector<16x16x16xbf16>,
    %cst_27 = arith.constant 0.000000e+00 : f32
    %23 = vector.broadcast %cst_27 : f32 to vector<256x16xf32>
    %c0_28 = arith.constant 0 : index
    %c0_29 = arith.constant 0 : index
    %c0_30 = arith.constant 0 : index
    %24 = vector.load %arg15[%c0_28, %c0_29, %c0_30] : memref<18x18x16xbf16, #tpu.memory_space<vmem>>, vector<16x16x16xbf16>
    %25 = vector.shape_cast %24 : vector<16x16x16xbf16> to vector<256x16xbf16>
    %c0_31 = arith.constant 0 : index
    %c0_32 = arith.constant 0 : index
    %c0_33 = arith.constant 0 : index
    %26 = vector.load %arg5[%c0_31, %c0_32, %c0_33] : memref<9x16x16xbf16, #tpu.memory_space<vmem>>, vector<1x16x16xbf16>
    %27 = vector.shape_cast %26 : vector<1x16x16xbf16> to vector<16x16xbf16>
    %cst_34 = arith.constant dense<0.000000e+00> : vector<256x16xf32>
    %28 = tpu.matmul %25, %27, %cst_34 {dimension_numbers = #tpu.dot_dimension_numbers<[1], [0], [0], [1], [0, 0, 1, 1], [], []>} : vector<256x16xbf16>, vector<16x16xbf16>, vector<256x16xf32> -> vector<256x16xf32>
    %29 = arith.addf %23, %28 : vector<256x16xf32>
    %c0_35 = arith.constant 0 : index
    %c1_36 = arith.constant 1 : index
    %c0_37 = arith.constant 0 : index
    %30 = vector.load %arg15[%c0_35, %c1_36, %c0_37] : memref<18x18x16xbf16, #tpu.memory_space<vmem>>, vector<16x16x16xbf16>
    %31 = vector.shape_cast %30 : vector<16x16x16xbf16> to vector<256x16xbf16>
    %c1_38 = arith.constant 1 : index
    %c0_39 = arith.constant 0 : index
    %c0_40 = arith.constant 0 : index
    %32 = vector.load %arg5[%c1_38, %c0_39, %c0_40] : memref<9x16x16xbf16, #tpu.memory_space<vmem>>, vector<1x16x16xbf16>
    %33 = vector.shape_cast %32 : vector<1x16x16xbf16> to vector<16x16xbf16>
    %cst_41 = arith.constant dense<0.000000e+00> : vector<256x16xf32>
    %34 = tpu.matmul %31, %33, %cst_41 {dimension_numbers = #tpu.dot_dimension_numbers<[1], [0], [0], [1], [0, 0, 1, 1], [], []>} : vector<256x16xbf16>, vector<16x16xbf16>, vector<256x16xf32> -> vector<256x16xf32>
    %35 = arith.addf %29, %34 : vector<256x16xf32>
    %c0_42 = arith.constant 0 : index
    %c2 = arith.constant 2 : index
    %c0_43 = arith.constant 0 : index
    %36 = vector.load %arg15[%c0_42, %c2, %c0_43] : memref<18x18x16xbf16, #tpu.memory_space<vmem>>, vector<16x16x16xbf16>
    %37 = vector.shape_cast %36 : vector<16x16x16xbf16> to vector<256x16xbf16>
    %c2_44 = arith.constant 2 : index
    %c0_45 = arith.constant 0 : index
    %c0_46 = arith.constant 0 : index
    %38 = vector.load %arg5[%c2_44, %c0_45, %c0_46] : memref<9x16x16xbf16, #tpu.memory_space<vmem>>, vector<1x16x16xbf16>
    %39 = vector.shape_cast %38 : vector<1x16x16xbf16> to vector<16x16xbf16>
    %cst_47 = arith.constant dense<0.000000e+00> : vector<256x16xf32>
    %40 = tpu.matmul %37, %39, %cst_47 {dimension_numbers = #tpu.dot_dimension_numbers<[1], [0], [0], [1], [0, 0, 1, 1], [], []>} : vector<256x16xbf16>, vector<16x16xbf16>, vector<256x16xf32> -> vector<256x16xf32>
    %41 = arith.addf %35, %40 : vector<256x16xf32>
    %c1_48 = arith.constant 1 : index
    %c0_49 = arith.constant 0 : index
    %c0_50 = arith.constant 0 : index
    %42 = vector.load %arg15[%c1_48, %c0_49, %c0_50] : memref<18x18x16xbf16, #tpu.memory_space<vmem>>, vector<16x16x16xbf16>
    %43 = vector.shape_cast %42 : vector<16x16x16xbf16> to vector<256x16xbf16>
    %c3 = arith.constant 3 : index
    %c0_51 = arith.constant 0 : index
    %c0_52 = arith.constant 0 : index
    %44 = vector.load %arg5[%c3, %c0_51, %c0_52] : memref<9x16x16xbf16, #tpu.memory_space<vmem>>, vector<1x16x16xbf16>
    %45 = vector.shape_cast %44 : vector<1x16x16xbf16> to vector<16x16xbf16>
    %cst_53 = arith.constant dense<0.000000e+00> : vector<256x16xf32>
    %46 = tpu.matmul %43, %45, %cst_53 {dimension_numbers = #tpu.dot_dimension_numbers<[1], [0], [0], [1], [0, 0, 1, 1], [], []>} : vector<256x16xbf16>, vector<16x16xbf16>, vector<256x16xf32> -> vector<256x16xf32>
    %47 = arith.addf %41, %46 : vector<256x16xf32>
    %c1_54 = arith.constant 1 : index
    %c1_55 = arith.constant 1 : index
    %c0_56 = arith.constant 0 : index
    %48 = vector.load %arg15[%c1_54, %c1_55, %c0_56] : memref<18x18x16xbf16, #tpu.memory_space<vmem>>, vector<16x16x16xbf16>
    %49 = vector.shape_cast %48 : vector<16x16x16xbf16> to vector<256x16xbf16>
    %c4 = arith.constant 4 : index
    %c0_57 = arith.constant 0 : index
    %c0_58 = arith.constant 0 : index
    %50 = vector.load %arg5[%c4, %c0_57, %c0_58] : memref<9x16x16xbf16, #tpu.memory_space<vmem>>, vector<1x16x16xbf16>
    %51 = vector.shape_cast %50 : vector<1x16x16xbf16> to vector<16x16xbf16>
    %cst_59 = arith.constant dense<0.000000e+00> : vector<256x16xf32>
    %52 = tpu.matmul %49, %51, %cst_59 {dimension_numbers = #tpu.dot_dimension_numbers<[1], [0], [0], [1], [0, 0, 1, 1], [], []>} : vector<256x16xbf16>, vector<16x16xbf16>, vector<256x16xf32> -> vector<256x16xf32>
    %53 = arith.addf %47, %52 : vector<256x16xf32>
    %c1_60 = arith.constant 1 : index
    %c2_61 = arith.constant 2 : index
    %c0_62 = arith.constant 0 : index
    %54 = vector.load %arg15[%c1_60, %c2_61, %c0_62] : memref<18x18x16xbf16, #tpu.memory_space<vmem>>, vector<16x16x16xbf16>
    %55 = vector.shape_cast %54 : vector<16x16x16xbf16> to vector<256x16xbf16>
    %c5 = arith.constant 5 : index
    %c0_63 = arith.constant 0 : index
    %c0_64 = arith.constant 0 : index
    %56 = vector.load %arg5[%c5, %c0_63, %c0_64] : memref<9x16x16xbf16, #tpu.memory_space<vmem>>, vector<1x16x16xbf16>
    %57 = vector.shape_cast %56 : vector<1x16x16xbf16> to vector<16x16xbf16>
    %cst_65 = arith.constant dense<0.000000e+00> : vector<256x16xf32>
    %58 = tpu.matmul %55, %57, %cst_65 {dimension_numbers = #tpu.dot_dimension_numbers<[1], [0], [0], [1], [0, 0, 1, 1], [], []>} : vector<256x16xbf16>, vector<16x16xbf16>, vector<256x16xf32> -> vector<256x16xf32>
    %59 = arith.addf %53, %58 : vector<256x16xf32>
    %c2_66 = arith.constant 2 : index
    %c0_67 = arith.constant 0 : index
    %c0_68 = arith.constant 0 : index
    %60 = vector.load %arg15[%c2_66, %c0_67, %c0_68] : memref<18x18x16xbf16, #tpu.memory_space<vmem>>, vector<16x16x16xbf16>
    %61 = vector.shape_cast %60 : vector<16x16x16xbf16> to vector<256x16xbf16>
    %c6 = arith.constant 6 : index
    %c0_69 = arith.constant 0 : index
    %c0_70 = arith.constant 0 : index
    %62 = vector.load %arg5[%c6, %c0_69, %c0_70] : memref<9x16x16xbf16, #tpu.memory_space<vmem>>, vector<1x16x16xbf16>
    %63 = vector.shape_cast %62 : vector<1x16x16xbf16> to vector<16x16xbf16>
    %cst_71 = arith.constant dense<0.000000e+00> : vector<256x16xf32>
    %64 = tpu.matmul %61, %63, %cst_71 {dimension_numbers = #tpu.dot_dimension_numbers<[1], [0], [0], [1], [0, 0, 1, 1], [], []>} : vector<256x16xbf16>, vector<16x16xbf16>, vector<256x16xf32> -> vector<256x16xf32>
    %65 = arith.addf %59, %64 : vector<256x16xf32>
    %c2_72 = arith.constant 2 : index
    %c1_73 = arith.constant 1 : index
    %c0_74 = arith.constant 0 : index
    %66 = vector.load %arg15[%c2_72, %c1_73, %c0_74] : memref<18x18x16xbf16, #tpu.memory_space<vmem>>, vector<16x16x16xbf16>
    %67 = vector.shape_cast %66 : vector<16x16x16xbf16> to vector<256x16xbf16>
    %c7 = arith.constant 7 : index
    %c0_75 = arith.constant 0 : index
    %c0_76 = arith.constant 0 : index
    %68 = vector.load %arg5[%c7, %c0_75, %c0_76] : memref<9x16x16xbf16, #tpu.memory_space<vmem>>, vector<1x16x16xbf16>
    %69 = vector.shape_cast %68 : vector<1x16x16xbf16> to vector<16x16xbf16>
    %cst_77 = arith.constant dense<0.000000e+00> : vector<256x16xf32>
    %70 = tpu.matmul %67, %69, %cst_77 {dimension_numbers = #tpu.dot_dimension_numbers<[1], [0], [0], [1], [0, 0, 1, 1], [], []>} : vector<256x16xbf16>, vector<16x16xbf16>, vector<256x16xf32> -> vector<256x16xf32>
    %71 = arith.addf %65, %70 : vector<256x16xf32>
    %c2_78 = arith.constant 2 : index
    %c2_79 = arith.constant 2 : index
    %c0_80 = arith.constant 0 : index
    %72 = vector.load %arg15[%c2_78, %c2_79, %c0_80] : memref<18x18x16xbf16, #tpu.memory_space<vmem>>, vector<16x16x16xbf16>
    %73 = vector.shape_cast %72 : vector<16x16x16xbf16> to vector<256x16xbf16>
    %c8 = arith.constant 8 : index
    %c0_81 = arith.constant 0 : index
    %c0_82 = arith.constant 0 : index
    %74 = vector.load %arg5[%c8, %c0_81, %c0_82] : memref<9x16x16xbf16, #tpu.memory_space<vmem>>, vector<1x16x16xbf16>
    %75 = vector.shape_cast %74 : vector<1x16x16xbf16> to vector<16x16xbf16>
    %cst_83 = arith.constant dense<0.000000e+00> : vector<256x16xf32>
    %76 = tpu.matmul %73, %75, %cst_83 {dimension_numbers = #tpu.dot_dimension_numbers<[1], [0], [0], [1], [0, 0, 1, 1], [], []>} : vector<256x16xbf16>, vector<16x16xbf16>, vector<256x16xf32> -> vector<256x16xf32>
    %77 = arith.addf %71, %76 : vector<256x16xf32>
    %c0_84 = arith.constant 0 : index
    %c0_85 = arith.constant 0 : index
    %78 = vector.load %arg6[%c0_84, %c0_85] : memref<1x16xf32, #tpu.memory_space<vmem>>, vector<1x16xf32>
    %79 = vector.broadcast %78 : vector<1x16xf32> to vector<256x16xf32>
    %80 = arith.mulf %77, %79 : vector<256x16xf32>
    %c0_86 = arith.constant 0 : index
    %c0_87 = arith.constant 0 : index
    %81 = vector.load %arg7[%c0_86, %c0_87] : memref<1x16xf32, #tpu.memory_space<vmem>>, vector<1x16xf32>
    %82 = vector.broadcast %81 : vector<1x16xf32> to vector<256x16xf32>
    %83 = arith.addf %80, %82 : vector<256x16xf32>
    %cst_88 = arith.constant 0.000000e+00 : f32
    %84 = vector.broadcast %cst_88 : f32 to vector<256x16xf32>
    %85 = arith.maximumf %83, %84 : vector<256x16xf32>
    %86 = arith.truncf %85 : vector<256x16xf32> to vector<256x16xbf16>
    %c0_89 = arith.constant 0 : index
    %c0_90 = arith.constant 0 : index
    %87 = vector.load %arg8[%c0_89, %c0_90] : memref<16x32xbf16, #tpu.memory_space<vmem>>, vector<16x32xbf16>
    %cst_91 = arith.constant dense<0.000000e+00> : vector<256x32xf32>
    %88 = tpu.matmul %86, %87, %cst_91 {dimension_numbers = #tpu.dot_dimension_numbers<[1], [0], [0], [1], [0, 0, 1, 1], [], []>} : vector<256x16xbf16>, vector<16x32xbf16>, vector<256x32xf32> -> vector<256x32xf32>
    %c0_92 = arith.constant 0 : index
    %c0_93 = arith.constant 0 : index
    %89 = vector.load %arg9[%c0_92, %c0_93] : memref<1x32xf32, #tpu.memory_space<vmem>>, vector<1x32xf32>
    %90 = vector.broadcast %89 : vector<1x32xf32> to vector<256x32xf32>
    %91 = arith.mulf %88, %90 : vector<256x32xf32>
    %c0_94 = arith.constant 0 : index
    %c0_95 = arith.constant 0 : index
    %92 = vector.load %arg10[%c0_94, %c0_95] : memref<1x32xf32, #tpu.memory_space<vmem>>, vector<1x32xf32>
    %93 = vector.broadcast %92 : vector<1x32xf32> to vector<256x32xf32>
    %94 = arith.addf %91, %93 : vector<256x32xf32>
    %c0_96 = arith.constant 0 : index
    %c0_97 = arith.constant 0 : index
    %95 = vector.load %arg11[%c0_96, %c0_97] : memref<8x32xbf16, #tpu.memory_space<vmem>>, vector<8x32xbf16>
    %cst_98 = arith.constant dense<0.000000e+00> : vector<256x32xf32>
    %96 = tpu.matmul %1, %95, %cst_98 {dimension_numbers = #tpu.dot_dimension_numbers<[1], [0], [0], [1], [0, 0, 1, 1], [], []>} : vector<256x8xbf16>, vector<8x32xbf16>, vector<256x32xf32> -> vector<256x32xf32>
    %c0_99 = arith.constant 0 : index
    %c0_100 = arith.constant 0 : index
    %97 = vector.load %arg12[%c0_99, %c0_100] : memref<1x32xf32, #tpu.memory_space<vmem>>, vector<1x32xf32>
    %98 = vector.broadcast %97 : vector<1x32xf32> to vector<256x32xf32>
    %99 = arith.mulf %96, %98 : vector<256x32xf32>
    %c0_101 = arith.constant 0 : index
    %c0_102 = arith.constant 0 : index
    %100 = vector.load %arg13[%c0_101, %c0_102] : memref<1x32xf32, #tpu.memory_space<vmem>>, vector<1x32xf32>
    %101 = vector.broadcast %100 : vector<1x32xf32> to vector<256x32xf32>
    %102 = arith.addf %99, %101 : vector<256x32xf32>
    %103 = arith.addf %94, %102 : vector<256x32xf32>
    %cst_103 = arith.constant 0.000000e+00 : f32
    %104 = vector.broadcast %cst_103 : f32 to vector<256x32xf32>
    %105 = arith.maximumf %103, %104 : vector<256x32xf32>
    %106 = vector.shape_cast %105 : vector<256x32xf32> to vector<1x16x16x32xf32>
    %c0_104 = arith.constant 0 : index
    %c0_105 = arith.constant 0 : index
    %c0_106 = arith.constant 0 : index
    %c0_107 = arith.constant 0 : index
    %107 = vector.load %arg14[%c0_104, %c0_105, %c0_106, %c0_107] : memref<1x16x16x32xf32, #tpu.memory_space<vmem>>, vector<1x16x16x32xf32>
    tpu.vector_store %arg14[%c0_104, %c0_105, %c0_106, %c0_107], %106 {strides = array<i32>} : memref<1x16x16x32xf32, #tpu.memory_space<vmem>>, vector<1x16x16x32xf32>,
    return
  }
  func.func @transform_0(%arg0: i32) -> (i32, i32, i32, i32) {
    %c0_i32 = arith.constant 0 : i32
    %c0_i32_0 = arith.constant 0 : i32
    %c0_i32_1 = arith.constant 0 : i32
    %c0_i32_2 = arith.constant 0 : i32
    return %arg0, %c0_i32, %c0_i32_0, %c0_i32_1 : i32, i32, i32, i32
  }
  func.func @transform_1(%arg0: i32) -> (i32, i32) {
    %c0_i32 = arith.constant 0 : i32
    %c0_i32_0 = arith.constant 0 : i32
    %c0_i32_1 = arith.constant 0 : i32
    return %c0_i32, %c0_i32_0 : i32, i32
  }
  func.func @transform_2(%arg0: i32) -> (i32, i32) {
    %c0_i32 = arith.constant 0 : i32
    %c0_i32_0 = arith.constant 0 : i32
    %c0_i32_1 = arith.constant 0 : i32
    return %c0_i32, %c0_i32_0 : i32, i32
  }
  func.func @transform_3(%arg0: i32) -> (i32, i32) {
    %c0_i32 = arith.constant 0 : i32
    %c0_i32_0 = arith.constant 0 : i32
    %c0_i32_1 = arith.constant 0 : i32
    return %c0_i32, %c0_i32_0 : i32, i32
  }
  func.func @transform_4(%arg0: i32) -> (i32, i32, i32) {
    %c0_i32 = arith.constant 0 : i32
    %c0_i32_0 = arith.constant 0 : i32
    %c0_i32_1 = arith.constant 0 : i32
    %c0_i32_2 = arith.constant 0 : i32
    return %c0_i32, %c0_i32_0, %c0_i32_1 : i32, i32, i32
  }
  func.func @transform_5(%arg0: i32) -> (i32, i32) {
    %c0_i32 = arith.constant 0 : i32
    %c0_i32_0 = arith.constant 0 : i32
    %c0_i32_1 = arith.constant 0 : i32
    return %c0_i32, %c0_i32_0 : i32, i32
  }
  func.func @transform_6(%arg0: i32) -> (i32, i32) {
    %c0_i32 = arith.constant 0 : i32
    %c0_i32_0 = arith.constant 0 : i32
    %c0_i32_1 = arith.constant 0 : i32
    return %c0_i32, %c0_i32_0 : i32, i32
  }
  func.func @transform_7(%arg0: i32) -> (i32, i32) {
    %c0_i32 = arith.constant 0 : i32
    %c0_i32_0 = arith.constant 0 : i32
    %c0_i32_1 = arith.constant 0 : i32
    return %c0_i32, %c0_i32_0 : i32, i32
  }
  func.func @transform_8(%arg0: i32) -> (i32, i32) {
    %c0_i32 = arith.constant 0 : i32
    %c0_i32_0 = arith.constant 0 : i32
    %c0_i32_1 = arith.constant 0 : i32
    return %c0_i32, %c0_i32_0 : i32, i32
  }
  func.func @transform_9(%arg0: i32) -> (i32, i32) {
    %c0_i32 = arith.constant 0 : i32
    %c0_i32_0 = arith.constant 0 : i32
    %c0_i32_1 = arith.constant 0 : i32
    return %c0_i32, %c0_i32_0 : i32, i32
  }
  func.func @transform_10(%arg0: i32) -> (i32, i32) {
    %c0_i32 = arith.constant 0 : i32
    %c0_i32_0 = arith.constant 0 : i32
    %c0_i32_1 = arith.constant 0 : i32
    return %c0_i32, %c0_i32_0 : i32, i32
  }
  func.func @transform_11(%arg0: i32) -> (i32, i32) {
    %c0_i32 = arith.constant 0 : i32
    %c0_i32_0 = arith.constant 0 : i32
    %c0_i32_1 = arith.constant 0 : i32
    return %c0_i32, %c0_i32_0 : i32, i32
  }
  func.func @transform_12(%arg0: i32) -> (i32, i32) {
    %c0_i32 = arith.constant 0 : i32
    %c0_i32_0 = arith.constant 0 : i32
    %c0_i32_1 = arith.constant 0 : i32
    return %c0_i32, %c0_i32_0 : i32, i32
  }
  func.func @transform_13(%arg0: i32) -> (i32, i32, i32, i32) {
    %c0_i32 = arith.constant 0 : i32
    %c0_i32_0 = arith.constant 0 : i32
    %c0_i32_1 = arith.constant 0 : i32
    %c0_i32_2 = arith.constant 0 : i32
    return %arg0, %c0_i32, %c0_i32_0, %c0_i32_1 : i32, i32, i32, i32
  }
}

</mosaic_0001>

<bundles_post_ra>
// kernel: tpu_custom_call.1
= control target key start
LH: loop header
LB: loop body
LE: loop exit
PB: predicated region body
PF: predicated region fallthrough
CT: control target
= control target key end

     0   :  { %s11404_s0 = inlined_call_operand.vmem [shape: bf16[2,16,16,8], index: 0, kind: input, shape index: {}]   ;;  %s11405_s1 = inlined_call_operand.vmem [shape: bf16[8,16], index: 1, kind: input, shape index: {}]   ;;  %s11406_s2 = inlined_call_operand.vmem [shape: f32[1,16], index: 2, kind: input, shape index: {}]   ;;  %s11407_s3 = inlined_call_operand.vmem [shape: f32[1,16], index: 3, kind: input, shape index: {}]   ;;  %s11408_s4 = inlined_call_operand.vmem [shape: bf16[9,16,16], index: 4, kind: input, shape index: {}]   ;;  %s11409_s5 = inlined_call_operand.vmem [shape: f32[1,16], index: 5, kind: input, shape index: {}]   ;;  %s11410_s6 = inlined_call_operand.vmem [shape: f32[1,16], index: 6, kind: input, shape index: {}]   ;;  %s11411_s7 = inlined_call_operand.vmem [shape: bf16[16,32], index: 7, kind: input, shape index: {}]   ;;  %s11412_s8 = inlined_call_operand.vmem [shape: f32[1,32], index: 8, kind: input, shape index: {}]   ;;  %s11413_s9 = inlined_call_operand.vmem [shape: f32[1,32], index: 9, kind: input, shape index: {}]   ;;  %s11414_s10 = inlined_call_operand.vmem [shape: bf16[8,32], index: 10, kind: input, shape index: {}]   ;;  %s11415_s11 = inlined_call_operand.vmem [shape: f32[1,32], index: 11, kind: input, shape index: {}]   ;;  %s11416_s12 = inlined_call_operand.vmem [shape: f32[1,32], index: 12, kind: input, shape index: {}]   ;;  %s11417_s13 = inlined_call_operand.hbm [shape: f32[2,16,16,32], index: 13, kind: output, shape index: {}]  }
   0x1   :  { %11427 = sst [smem:[#allocation40_spill]] %s11404_s0 }
   0x2   :  { %11428 = sst [smem:[#allocation41_spill]] %s11405_s1 }
   0x3   :  { %11429 = sst [smem:[#allocation42_spill]] %s11406_s2 }
   0x4   :  { %18 = vsyncpa [#allocation4], 0 }
   0x5   :  { %20 = vsyncpa [#allocation4 + $0x1], 0  ;;  %s8365_s25 = smov 0   ;;  %s8367_s26 = smov 0  }
   0x6   :  { %s8369_s27 = smov 0   ;;  %s8371_s28 = smov 0  }
   0x7 LB: > { %s8386_s29 = sadd.s32 4294967295, %s8289_s28   ;;  %s6962_s30 = sadd.s32 4294967294, %s8289_s28   ;;  %s8289_s28 = sphi %s8371_s28, %s11561_s28   ;;  %s8285_s27 = sphi %s8369_s27, %s11560_s27   ;;  %s8281_s26 = sphi %s8367_s26, %s11559_s26   ;;  %s8277_s25 = sphi %s8365_s25, %s11558_s25  }
   0x8   : > { %s8390_s14 = sadd.s32 1, %s8289_s28   ;;  %s311_s15 = sadd.s32 1, %s8285_s27 }
   0x9   : > { %s308_s16 = ssub.s32 %s8289_s28, %s8390_s14  ;;  %p321_p0 = scmp.ne.s32.totalorder %s8285_s27, %s8281_s26 }
   0xa   : > { %p309_p1 = scmp.eq.s32.totalorder %s308_s16, 0  ;;  %p322_p2 = scmp.eq.s32.totalorder %s8386_s29, 1 }
   0xb   : > { %p327_p3 = scmp.ne.s32.totalorder %s8281_s26, %s8277_s25  ;;  %p328_p4 = scmp.eq.s32.totalorder %s6962_s30, 1 }
   0xc   : > { %s8401_s17 = scalar_select %p309_p1, %s8285_s27, %s311_s15  }
   0xd   : > { %p8403_p5 = por %p322_p2, %p321_p0  ;;  %p8407_p6 = por %p328_p4, %p327_p3 }
   0xe   : > { %p6965_p7 = scmp.ge.s32.totalorder %s8289_s28, 1  ;;  %p390_p8 = scmp.lt.s32.totalorder %s8289_s28, 3 }
  0x10   : > { %p391_p9 = pnand %p6965_p7, %p390_p8 }
  0x12   : > { %394 = sbr.rel (%p391_p9) target bundleno = 1083 (0x43b), region = 72 }
  0x17   : > { %s11432_s1 = sld [smem:[#allocation41_spill]]  ;;  %vm602_vm0 = vcmask 1043456   ;;  %p434_p10 = scmp.lt.s32.totalorder %s8386_s29, 1  ;;  %vm553_vm1 = vcmask 64512   ;;  %vm880_vm2 = vcmask 122880   ;;  %vm877_vm7 = vcmask 125952  }
  0x18   : > { %s11433_s0 = sld [smem:[#allocation40_spill]]  ;;  %vm887_vm3 = vsmask.f32 256  ;;  %v895_v19 = vld [vmem:[#allocation2 + $0x18] sm:$0x1]  ;;  %v8291_v34 = vmov 0  }
  0x19   : > { %s435_s22 = scalar_select %p434_p10, %s8386_s29, 1  ;;  %vm8459_vm4 = vmand %vm880_vm2, %vm887_vm3  ;;  %vm943_vm5 = vsmask.f32 7938  ;;  %v892_v22 = vld [vmem:[#allocation2 + $0xc] sm:$0x1]  ;;  %v8146_v47 = vld [vmem:[%s11408_s4] sm:$0xff]  }
  0x1a   : > { %v896_v20 = vsel %vm8459_vm4, 0, %v895_v19  ;;  %vm8467_vm6 = vmand %vm880_vm2, %vm943_vm5  ;;  %v893_v23 = vsel %vm8459_vm4, 0, %v892_v22  ;;  %v951_v24 = vld [vmem:[#allocation2 + $0x20] sm:$0x1]  ;;  %v948_v26 = vld [vmem:[#allocation2 + $0x14] sm:$0x1] }
  0x1b   : > { %s7440_s23 = sshll.u32 %s435_s22, 7  ;;  %897 = vst [vmem:[#allocation2 + $0x18] sm:$0x1] %v896_v20  ;;  %894 = vst [vmem:[#allocation2 + $0xc] sm:$0x1] %v893_v23  ;;  %v952_v25 = vsel %vm8467_vm6, 0, %v951_v24 }
  0x1c   : > { %953 = vst [vmem:[#allocation2 + $0x20] sm:$0x1] %v952_v25  ;;  %v949_v27 = vsel %vm8467_vm6, 0, %v948_v26  ;;  %v901_v28 = vld [vmem:[#allocation2 + $0x30] sm:$0x1]  ;;  %vm2026_vm8 = vcmask 130048   ;;  %vm8590_vm13 = vmand %vm877_vm7, %vm943_vm5 }
  0x1d   : > { %v472_v0 = vld [vmem:[%s11432_s1] sm:$0xf]  ;;  %950 = vst [vmem:[#allocation2 + $0x14] sm:$0x1] %v949_v27  ;;  %v902_v29 = vsel %vm8459_vm4, 0, %v901_v28  ;;  %s11440_s2 = sld [smem:[#allocation42_spill]] }
  0x1e   : > { %8086 = vmatprep.subr.msk.bf16.mxu0 %vm602_vm0, %v472_v0  ;;  %v604_v1 = vsel %vm602_vm0, %v472_v0, 0  ;;  %s8423_s15 = scalar_lea.vmem %s11433_s0, %s7440_s23  ;;  %903 = vst [vmem:[#allocation2 + $0x30] sm:$0x1] %v902_v29  ;;  %v898_v30 = vld [vmem:[#allocation2 + $0x24] sm:$0x1]  ;;  %v8543_v29 = vld [vmem:[%s11408_s4 + $0x10] sm:$0xff]  }
  0x1f   : > { %7679 = vmatpush3.bf16.msra.mxu0 %v604_v1  ;;  %v8130_v2 = vld [vmem:[%s8423_s15] sm:$0xff]   ;;  %v8131_v3 = vld [vmem:[%s8423_s15 + $0x8] sm:$0xff]   ;;  %v8132_v4 = vld [vmem:[%s8423_s15 + $0x10] sm:$0xff]   ;;  %v899_v31 = vsel %vm8459_vm4, 0, %v898_v30  ;;  %878 = vst.msk [vmem:[#allocation2] sm:$0xf] %vm877_vm7, %v8291_v34 }
  0x20   : > { %7680 = vmatprep.mubr.msk.bf16.mxu0 %vm553_vm1, %v8130_v2  ;;  %v8133_v5 = vld [vmem:[%s8423_s15 + $0x18] sm:$0xff]   ;;  %v8134_v6 = vld [vmem:[%s8423_s15 + $0x20] sm:$0xff]   ;;  %v8135_v7 = vld [vmem:[%s8423_s15 + $0x28] sm:$0xff]   ;;  %900 = vst [vmem:[#allocation2 + $0x24] sm:$0x1] %v899_v31  ;;  %7746 = vmatprep.subr.bf16.mxu0 %v8146_v47  ;;  %vm2579_vm15 = vcmask 1042432  }
  0x21   : > { %v8136_v8 = vld [vmem:[%s8423_s15 + $0x30] sm:$0xff]   ;;  %v8137_v9 = vld [vmem:[%s8423_s15 + $0x38] sm:$0xff]   ;;  %v8138_v10 = vld [vmem:[%s8423_s15 + $0x40] sm:$0xff]   ;;  %879 = vst.msk [vmem:[#allocation2 + $0x4] sm:$0xf] %vm877_vm7, %v8291_v34  ;;  %s431_s24 = sand.u32 1, %s8281_s26  }
  0x22   : > { %7681 = vmatmul.mubr.msk.bf16.vlgmr.msra.gmra.mxu0 %vm553_vm1, %v8131_v3  ;;  %v8139_v11 = vld [vmem:[%s8423_s15 + $0x48] sm:$0xff]   ;;  %v8140_v12 = vld [vmem:[%s8423_s15 + $0x50] sm:$0xff]   ;;  %v8141_v13 = vld [vmem:[%s8423_s15 + $0x58] sm:$0xff]   ;;  %881 = vst.msk [vmem:[#allocation2 + $0x8] sm:$0x1] %vm880_vm2, %v8291_v34  ;;  %s6966_s20 = sshll.u32 %s431_s24, 8 }
  0x23   : > { %7684 = vmatprep.mubr.msk.bf16.mxu0 %vm553_vm1, %v8132_v4  ;;  %v8142_v14 = vld [vmem:[%s8423_s15 + $0x60] sm:$0xff]   ;;  %v8143_v15 = vld [vmem:[%s8423_s15 + $0x68] sm:$0xff]   ;;  %v8144_v16 = vld [vmem:[%s8423_s15 + $0x70] sm:$0xff]   ;;  %883 = vst.msk [vmem:[#allocation2 + $0xcc] sm:$0xf] %vm877_vm7, %v8291_v34  ;;  %7747 = vmatpush3.bf16.msra.mxu0 %v8146_v47  ;;  %s11152_s21 = scalar_lea.vmem [#allocation3], %s6966_s20 }
  0x24   : > { %v8145_v17 = vld [vmem:[%s8423_s15 + $0x78] sm:$0xff]   ;;  %884 = vst.msk [vmem:[#allocation2 + $0xd0] sm:$0xf] %vm877_vm7, %v8291_v34  ;;  %v954_v35 = vld [vmem:[#allocation2 + $0x2c] sm:$0x1]  ;;  %s7473_s22 = sshll.u32 %s8386_s29, 12 }
  0x25   : > { %v957_v32 = vld [vmem:[#allocation2 + $0x38] sm:$0x1]  ;;  %885 = vst.msk [vmem:[#allocation2 + $0xd4] sm:$0x1] %vm880_vm2, %v8291_v34  ;;  %v955_v36 = vsel %vm8467_vm6, 0, %v954_v35  ;;  %vm2580_vm2 = vcmask 1046532   ;;  %s11354_s16 = scalar_lea.hbm %s11417_s13, %s7473_s22 }
  0x26   : > { %v958_v33 = vsel %vm8467_vm6, 0, %v957_v32  ;;  %956 = vst [vmem:[#allocation2 + $0x2c] sm:$0x1] %v955_v36  ;;  %v907_v37 = vld [vmem:[#allocation2 + $0x48] sm:$0x1]  ;;  %s11364_s29 = scalar_lea.sflag [#allocation4], %s431_s24 }
  0x27   : > { %959 = vst [vmem:[#allocation2 + $0x38] sm:$0x1] %v958_v33  ;;  %v908_v38 = vsel %vm8459_vm4, 0, %v907_v37  ;;  %v904_v39 = vld [vmem:[#allocation2 + $0x3c] sm:$0x1]  ;;  %s8292_s22 = smov [#allocation3]  }
  0x28   : > { %909 = vst [vmem:[#allocation2 + $0x48] sm:$0x1] %v908_v38  ;;  %v905_v40 = vsel %vm8459_vm4, 0, %v904_v39  ;;  %v889_v41 = vld [vmem:[#allocation2] sm:$0x1]  ;;  %s8233_s23 = sshll.u32 %s8292_s22, 4  ;;  %s8234_s23 = int_to_ptr.vmem [resolvable:$false] %s8233_s23 }
  0x29   : > { %906 = vst [vmem:[#allocation2 + $0x3c] sm:$0x1] %v905_v40  ;;  %v890_v42 = vsel %vm8459_vm4, 0, %v889_v41  ;;  %v963_v43 = vld [vmem:[#allocation2 + $0x50] sm:$0x1]  ;;  %s8235_s30 = scalar_lea.vmem %s8234_s23, 8192 }
  0x2a   : > { %7685 = vmatmul.mubr.msk.bf16.gmra.mxu0 %vm553_vm1, %v8133_v5  ;;  %891 = vst [vmem:[#allocation2] sm:$0x1] %v890_v42  ;;  %v964_v44 = vsel %vm8467_vm6, 0, %v963_v43  ;;  %v960_v45 = vld [vmem:[#allocation2 + $0x44] sm:$0x1] }
  0x2b   : > { %7688 = vmatprep.mubr.msk.bf16.mxu0 %vm553_vm1, %v8134_v6  ;;  %965 = vst [vmem:[#allocation2 + $0x50] sm:$0x1] %v964_v44  ;;  %v961_v46 = vsel %vm8467_vm6, 0, %v960_v45  ;;  %v913_v48 = vld [vmem:[#allocation2 + $0x60] sm:$0x1] }
  0x2c   : > { %962 = vst [vmem:[#allocation2 + $0x44] sm:$0x1] %v961_v46  ;;  %v1533_v50 = vld [vmem:[#allocation2 + $0x4] sm:$0xf]  ;;  %v914_v51 = vsel %vm8459_vm4, 0, %v913_v48 }
  0x2d   : > { %915 = vst [vmem:[#allocation2 + $0x60] sm:$0x1] %v914_v51  ;;  %v910_v53 = vld [vmem:[#allocation2 + $0x54] sm:$0x1]  ;;  %v969_v55 = vld [vmem:[#allocation2 + $0x68] sm:$0x1] }
  0x2e   : > { %v911_v54 = vsel %vm8459_vm4, 0, %v910_v53  ;;  %v970_v56 = vsel %vm8467_vm6, 0, %v969_v55  ;;  %v945_v57 = vld [vmem:[#allocation2 + $0x8] sm:$0x1]  ;;  %v966_v59 = vld [vmem:[#allocation2 + $0x5c] sm:$0x1] }
  0x2f   : > { %912 = vst [vmem:[#allocation2 + $0x54] sm:$0x1] %v911_v54  ;;  %971 = vst [vmem:[#allocation2 + $0x68] sm:$0x1] %v970_v56  ;;  %v946_v58 = vsel %vm8467_vm6, 0, %v945_v57  ;;  %v967_v60 = vsel %vm8467_vm6, 0, %v966_v59 }
  0x30   : > { %947 = vst [vmem:[#allocation2 + $0x8] sm:$0x1] %v946_v58  ;;  %968 = vst [vmem:[#allocation2 + $0x5c] sm:$0x1] %v967_v60  ;;  %v919_v61 = vld [vmem:[#allocation2 + $0x78] sm:$0x1] }
  0x31   : > { %v1532_v49 = vld [vmem:[#allocation2] sm:$0xf]  ;;  %v920_v62 = vsel %vm8459_vm4, 0, %v919_v61  ;;  %v1595_v1 = vshll.u32 %v1533_v50, 16  ;;  %v1599_v2 = vshrl.u32 %v1533_v50, 16 }
  0x32   : > { %7689 = vmatmul.mubr.msk.bf16.gmra.mxu0 %vm553_vm1, %v8135_v7  ;;  %v7070_v52 = vcombine.low %v1532_v49, %v1533_v50  ;;  %921 = vst [vmem:[#allocation2 + $0x78] sm:$0x1] %v920_v62  ;;  %v1586_v63 = vshrl.u32 %v1532_v49, 16  ;;  %v1589_v0 = vshll.u32 %v1532_v49, 16  ;;  %vm1582_vm9 = vsmask.f32 3328 }
  0x33   : > { %7692 = vmatprep.mubr.msk.bf16.mxu0 %vm553_vm1, %v8136_v8  ;;  %v1597_v5 = vrot.slane %v1595_v1, 5  ;;  %v1601_v6 = vrot.slane %v1599_v2, 4  ;;  %vm1583_vm10 = vsmask.f32 7440  ;;  %v975_v23 = vld [vmem:[#allocation2 + $0x80] sm:$0x1] }
  0x34   : > { %v1588_v3 = vrot.slane %v1586_v63, 4  ;;  %v1591_v4 = vrot.slane %v1589_v0, 5  ;;  %vm8523_vm11 = vmor %vm1582_vm9, %vm1583_vm10  ;;  %v976_v24 = vsel %vm8467_vm6, 0, %v975_v23  ;;  %v972_v25 = vld [vmem:[#allocation2 + $0x74] sm:$0x1] }
  0x35   : > { %977 = vst [vmem:[#allocation2 + $0x80] sm:$0x1] %v976_v24  ;;  %v973_v26 = vsel %vm8467_vm6, 0, %v972_v25  ;;  %v925_v27 = vld [vmem:[#allocation2 + $0x90] sm:$0x1] }
  0x36   : > { %v1592_v8 = vor.u32 %v1591_v4, %v1588_v3  ;;  %974 = vst [vmem:[#allocation2 + $0x74] sm:$0x1] %v973_v26  ;;  %v926_v28 = vsel %vm8459_vm4, 0, %v925_v27  ;;  %v922_v30 = vld [vmem:[#allocation2 + $0x84] sm:$0x1] }
  0x37   : > { %v8517_v7 = vld [vmem:[#allocation2 + $0x8] sm:$0x1]  ;;  %927 = vst [vmem:[#allocation2 + $0x90] sm:$0x1] %v926_v28  ;;  %v923_v31 = vsel %vm8459_vm4, 0, %v922_v30 }
  0x38   : > { %924 = vst [vmem:[#allocation2 + $0x84] sm:$0x1] %v923_v31  ;;  %v981_v32 = vld [vmem:[#allocation2 + $0x98] sm:$0x1]  ;;  %v978_v34 = vld [vmem:[#allocation2 + $0x8c] sm:$0x1] }
  0x39   : > { %v982_v33 = vsel %vm8467_vm6, 0, %v981_v32  ;;  %v931_v35 = vld [vmem:[#allocation2 + $0xa8] sm:$0x1]  ;;  %v979_v36 = vsel %vm8467_vm6, 0, %v978_v34  ;;  %v928_v38 = vld [vmem:[#allocation2 + $0x9c] sm:$0x1] }
  0x3a   : > { %7693 = vmatmul.mubr.msk.bf16.gmra.mxu0 %vm553_vm1, %v8137_v9  ;;  %v1602_v9 = vor.u32 %v1601_v6, %v1597_v5  ;;  %983 = vst [vmem:[#allocation2 + $0x98] sm:$0x1] %v982_v33  ;;  %v932_v37 = vsel %vm8459_vm4, 0, %v931_v35  ;;  %980 = vst [vmem:[#allocation2 + $0x8c] sm:$0x1] %v979_v36  ;;  %v929_v39 = vsel %vm8459_vm4, 0, %v928_v38 }
  0x3b   : > { %7696 = vmatprep.mubr.msk.bf16.mxu0 %vm553_vm1, %v8138_v10  ;;  %v1605_v10 = vshll.u32 %v8517_v7, 16  ;;  %933 = vst [vmem:[#allocation2 + $0xa8] sm:$0x1] %v932_v37  ;;  %930 = vst [vmem:[#allocation2 + $0x9c] sm:$0x1] %v929_v39 }
  0x3c   : > { %v987_v40 = vld [vmem:[#allocation2 + $0xb0] sm:$0x1]  ;;  %v984_v42 = vld [vmem:[#allocation2 + $0xa4] sm:$0x1]  ;;  %v937_v43 = vld [vmem:[#allocation2 + $0xc0] sm:$0x1] }
  0x3d   : > { %v988_v41 = vsel %vm8467_vm6, 0, %v987_v40  ;;  %v985_v44 = vsel %vm8467_vm6, 0, %v984_v42  ;;  %v938_v45 = vsel %vm8459_vm4, 0, %v937_v43  ;;  %v934_v46 = vld [vmem:[#allocation2 + $0xb4] sm:$0x1] }
  0x3e   : > { %989 = vst [vmem:[#allocation2 + $0xb0] sm:$0x1] %v988_v41  ;;  %986 = vst [vmem:[#allocation2 + $0xa4] sm:$0x1] %v985_v44  ;;  %v935_v47 = vsel %vm8459_vm4, 0, %v934_v46 }
  0x3f   : > { %939 = vst [vmem:[#allocation2 + $0xc0] sm:$0x1] %v938_v45  ;;  %936 = vst [vmem:[#allocation2 + $0xb4] sm:$0x1] %v935_v47  ;;  %v993_v48 = vld [vmem:[#allocation2 + $0xc8] sm:$0x1] }
  0x40   : > { %v994_v49 = vsel %vm8467_vm6, 0, %v993_v48  ;;  %v8569_v50 = vld [vmem:[%s11440_s2] ss:$0 sm:$0xff]  ;;  %v990_v51 = vld [vmem:[#allocation2 + $0xbc] sm:$0x1] }
  0x41   : > { %995 = vst [vmem:[#allocation2 + $0xc8] sm:$0x1] %v994_v49  ;;  %v8576_v54 = vld [vmem:[%s11407_s3] ss:$0 sm:$0xff]  ;;  %vm1095_vm12 = vsmask.f32 4368 }
  0x42   : > { %7697 = vmatmul.mubr.msk.bf16.gmra.mxu0 %vm553_vm1, %v8139_v11  ;;  %v8150_v11 = vld [vmem:[%s11408_s4 + $0x8] sm:$0xff]   ;;  %vm8601_vm14 = vmor %vm887_vm3, %vm1095_vm12  ;;  %v1431_v43 = vld [vmem:[#allocation2 + $0x20] sm:$0x1] }
  0x43   : > { %7700 = vmatprep.mubr.msk.bf16.mxu0 %vm553_vm1, %v8140_v12  ;;  %v1593_v12 = vrot.slane %v1592_v8, 4  ;;  %7712 = vmatprep.subr.bf16.mxu1 %v8150_v11  ;;  %v1420_v32 = vld [vmem:[#allocation2 + $0xc] sm:$0xf]  ;;  %vm9095_vm3 = vmor %vm2579_vm15, %vm2580_vm2 }
  0x44   : > { %7713 = vmatpush3.bf16.msra.mxu1 %v8150_v11 }
  0x45   : > { %7780 = vmatprep.subr.bf16.mxu1 %v8543_v29 }
  0x4a   : > { %7701 = vmatmul.mubr.msk.bf16.gmra.mxu0 %vm553_vm1, %v8141_v13  ;;  %v1603_v13 = vrot.slane %v1602_v9, 4 }
  0x4b   : > { %7704 = vmatprep.mubr.msk.bf16.mxu0 %vm553_vm1, %v8142_v14  ;;  %v1607_v14 = vrot.slane %v1605_v10, 5 }
  0x4d   : > { %v1608_v19 = vsel %vm8523_vm11, %v1603_v13, %v1607_v14 }
  0x52   : > { %7705 = vmatmul.mubr.msk.bf16.gmra.mxu0 %vm553_vm1, %v8143_v15 }
  0x53   : > { %7708 = vmatprep.mubr.msk.bf16.mxu0 %vm553_vm1, %v8144_v16  ;;  %v916_v16 = vld [vmem:[#allocation2 + $0x6c] sm:$0x1] }
  0x54   : > { %v917_v20 = vsel %vm8459_vm4, 0, %v916_v16 }
  0x55   : > { %918 = vst [vmem:[#allocation2 + $0x6c] sm:$0x1] %v917_v20  ;;  %v1427_v20 = vld [vmem:[#allocation2 + $0x18] sm:$0xf] }
  0x5a   : > { %7709 = vmatmul.mubr.msk.bf16.gmra.mxu0 %vm553_vm1, %v8145_v17  ;;  %v1598_v17 = vsel %vm8523_vm11, %v1593_v12, %v1597_v5  ;;  %v2587_v12 = vrot.slane %v8517_v7, 5 }
  0x5b   : > { %7748 = vmatprep.mubr.msk.bf16.mxu0 %vm2026_vm8, %v7070_v52  ;;  %v7037_v22 = vcombine.low %v1598_v17, %v1608_v19  ;;  %v991_v52 = vsel %vm8467_vm6, 0, %v990_v51 }
  0x5c   : > { %992 = vst [vmem:[#allocation2 + $0xbc] sm:$0x1] %v991_v52 }
  0x5d   : > { %7714 = vmatprep.mubr.msk.bf16.mxu1 %vm2026_vm8, %v7037_v22 }
  0xe2   : > { %v7682_v53 = vpop.f32.mrf.mxu0 }
  0xe3   : > { %v776_v55 = vmul.f32 %v7682_v53, %v8569_v50 }
  0xe4   : > { %v640_v56 = vpop.f32.mrf.mxu0 }
  0xe5   : > { %v815_v57 = vadd.f32 %v8576_v54, %v776_v55  ;;  %v774_v58 = vmul.f32 %v8569_v50, %v640_v56 }
  0xe6   : > { %v7683_v59 = vpop.f32.mrf.mxu0 }
  0xe7   : > { %v847_v60 = vmax.f32 %v815_v57, 0.0  ;;  %v813_v61 = vadd.f32 %v8576_v54, %v774_v58  ;;  %v777_v62 = vmul.f32 %v7683_v59, %v8569_v50 }
  0xe8   : > { %v643_v63 = vpop.f32.mrf.mxu0 }
  0xe9   : > { %v7443_v0 = vpack.c.bf16 %v847_v60, %v847_v60  ;;  %v845_v1 = vmax.f32 %v813_v61, 0.0  ;;  %v816_v2 = vadd.f32 %v8576_v54, %v777_v62  ;;  %v775_v3 = vmul.f32 %v8569_v50, %v643_v63  ;;  %v1424_v62 = vld [vmem:[#allocation2 + $0x14] sm:$0x1] }
  0xea   : > { %v7686_v4 = vpop.f32.mrf.mxu0 }
  0xeb   : > { %v1115_v5 = vshrl.u32 %v7443_v0, 16  ;;  %v7441_v6 = vpack.c.bf16 %v845_v1, %v845_v1  ;;  %v848_v8 = vmax.f32 %v816_v2, 0.0  ;;  %v814_v9 = vadd.f32 %v8576_v54, %v775_v3 }
  0xec   : > { %v780_v10 = vmul.f32 %v7686_v4, %v8569_v50  ;;  %v656_v11 = vpop.f32.mrf.mxu0  ;;  %v1118_v14 = vshll.u32 %v7443_v0, 16 }
  0xed   : > { %v1117_v13 = vrot.slane %v1115_v5, 7  ;;  %v1098_v16 = vshrl.u32 %v7441_v6, 16  ;;  %v7444_v17 = vpack.c.bf16 %v848_v8, %v848_v8  ;;  %v1101_v22 = vshll.u32 %v7441_v6, 16  ;;  %v1441_v6 = vld [vmem:[#allocation2 + $0x30] sm:$0xf] }
  0xee   : > { %v846_v23 = vmax.f32 %v814_v9, 0.0  ;;  %v819_v24 = vadd.f32 %v8576_v54, %v780_v10  ;;  %v778_v25 = vmul.f32 %v8569_v50, %v656_v11  ;;  %v7687_v26 = vpop.f32.mrf.mxu0 }
  0xef   : > { %v1120_v27 = vor.u32 %v1118_v14, %v1117_v13  ;;  %v1121_v28 = vrot.slane %v1117_v13, 4  ;;  %v1100_v30 = vrot.slane %v1098_v16, 7  ;;  %v1123_v31 = vshrl.u32 %v7444_v17, 16 }
  0xf0   : > { %v1126_v33 = vshll.u32 %v7444_v17, 16  ;;  %v7442_v34 = vpack.c.bf16 %v846_v23, %v846_v23  ;;  %v851_v35 = vmax.f32 %v819_v24, 0.0  ;;  %v817_v36 = vadd.f32 %v8576_v54, %v778_v25  ;;  %v659_v37 = vpop.f32.mrf.mxu0 }
  0xf1   : > { %v1428_v38 = vsel %vm8590_vm13, %v1120_v27, %v1427_v20  ;;  %v1103_v39 = vor.u32 %v1101_v22, %v1100_v30  ;;  %v1104_v40 = vrot.slane %v1100_v30, 4  ;;  %v1125_v41 = vrot.slane %v1123_v31, 7  ;;  %v1434_v27 = vld [vmem:[#allocation2 + $0x24] sm:$0xf] }
  0xf2   : > { %1429 = vst [vmem:[#allocation2 + $0x18] sm:$0xf] %v1428_v38  ;;  %v1106_v44 = vshrl.u32 %v7442_v34, 16  ;;  %v1109_v45 = vshll.u32 %v7442_v34, 16  ;;  %v7447_v46 = vpack.c.bf16 %v851_v35, %v851_v35  ;;  %v849_v47 = vmax.f32 %v817_v36, 0.0  ;;  %v7690_v48 = vpop.f32.mrf.mxu0 }
  0xf3   : > { %v1421_v49 = vsel %vm8590_vm13, %v1103_v39, %v1420_v32  ;;  %v1128_v51 = vor.u32 %v1126_v33, %v1125_v41  ;;  %v1130_v52 = vrot.slane %v1125_v41, 4  ;;  %v781_v53 = vmul.f32 %v7687_v26, %v8569_v50 }
  0xf4   : > { %1422 = vst [vmem:[#allocation2 + $0xc] sm:$0xf] %v1421_v49  ;;  %v1108_v55 = vrot.slane %v1106_v44, 7  ;;  %v1149_v56 = vshrl.u32 %v7447_v46, 16  ;;  %v1152_v57 = vshll.u32 %v7447_v46, 16  ;;  %v7445_v58 = vpack.c.bf16 %v849_v47, %v849_v47  ;;  %v672_v59 = vpop.f32.mrf.mxu0 }
  0xf5   : > { %v1129_v60 = vsel %vm8601_vm14, %v1121_v28, %v1128_v51  ;;  %v1432_v61 = vsel %vm8459_vm4, %v1130_v52, %v1431_v43  ;;  %v820_v63 = vadd.f32 %v8576_v54, %v781_v53  ;;  %v779_v0 = vmul.f32 %v8569_v50, %v659_v37 }
  0xf6   : > { %1430 = vst.msk [vmem:[#allocation2 + $0x1c] sm:$0xf] %vm877_vm7, %v1129_v60  ;;  %1433 = vst [vmem:[#allocation2 + $0x20] sm:$0x1] %v1432_v61  ;;  %v1111_v1 = vor.u32 %v1109_v45, %v1108_v55  ;;  %v1113_v2 = vrot.slane %v1108_v55, 4  ;;  %v1151_v3 = vrot.slane %v1149_v56, 7  ;;  %v7691_v5 = vpop.f32.mrf.mxu0  ;;  %v784_v11 = vmul.f32 %v7690_v48, %v8569_v50 }
  0xf7   : > { %v1132_v4 = vshrl.u32 %v7445_v58, 16  ;;  %v1135_v8 = vshll.u32 %v7445_v58, 16  ;;  %v852_v9 = vmax.f32 %v820_v63, 0.0  ;;  %v818_v10 = vadd.f32 %v8576_v54, %v779_v0  ;;  %v1445_v45 = vld [vmem:[#allocation2 + $0x38] sm:$0x1] }
  0xf8   : > { %v1112_v13 = vsel %vm8601_vm14, %v1104_v40, %v1111_v1  ;;  %v1425_v14 = vsel %vm8459_vm4, %v1113_v2, %v1424_v62  ;;  %v1154_v16 = vor.u32 %v1152_v57, %v1151_v3  ;;  %v1155_v17 = vrot.slane %v1151_v3, 4  ;;  %v675_v20 = vpop.f32.mrf.mxu0  ;;  %v1438_v2 = vld [vmem:[#allocation2 + $0x2c] sm:$0x1] }
  0xf9   : > { %1423 = vst.msk [vmem:[#allocation2 + $0x10] sm:$0xf] %vm877_vm7, %v1112_v13  ;;  %1426 = vst [vmem:[#allocation2 + $0x14] sm:$0x1] %v1425_v14  ;;  %v1134_v22 = vrot.slane %v1132_v4, 7  ;;  %v7448_v23 = vpack.c.bf16 %v852_v9, %v852_v9  ;;  %v850_v24 = vmax.f32 %v818_v10, 0.0  ;;  %v823_v25 = vadd.f32 %v8576_v54, %v784_v11 }
  0xfa   : > { %v1442_v26 = vsel %vm8590_vm13, %v1154_v16, %v1441_v6  ;;  %v782_v28 = vmul.f32 %v8569_v50, %v672_v59  ;;  %v785_v30 = vmul.f32 %v7691_v5, %v8569_v50  ;;  %v783_v31 = vmul.f32 %v8569_v50, %v675_v20  ;;  %v7694_v32 = vpop.f32.mrf.mxu0  ;;  %v1455_v9 = vld [vmem:[#allocation2 + $0x48] sm:$0xf] }
  0xfb   : > { %1443 = vst [vmem:[#allocation2 + $0x30] sm:$0xf] %v1442_v26  ;;  %v1137_v33 = vor.u32 %v1135_v8, %v1134_v22  ;;  %v1138_v34 = vrot.slane %v1134_v22, 4  ;;  %v1157_v35 = vshrl.u32 %v7448_v23, 16  ;;  %v1160_v36 = vshll.u32 %v7448_v23, 16 }
  0xfc   : > { %v7446_v37 = vpack.c.bf16 %v850_v24, %v850_v24  ;;  %v855_v38 = vmax.f32 %v823_v25, 0.0  ;;  %v821_v39 = vadd.f32 %v8576_v54, %v782_v28  ;;  %v824_v40 = vadd.f32 %v8576_v54, %v785_v30  ;;  %v688_v41 = vpop.f32.mrf.mxu0  ;;  %v8166_v25 = vld [vmem:[%s11408_s4 + $0x18] sm:$0xff]  }
  0xfd   : > { %v1435_v43 = vsel %vm8590_vm13, %v1137_v33, %v1434_v27  ;;  %v1159_v44 = vrot.slane %v1157_v35, 7  ;;  %v822_v46 = vadd.f32 %v8576_v54, %v783_v31  ;;  %v788_v47 = vmul.f32 %v7694_v32, %v8569_v50  ;;  %v1448_v32 = vld [vmem:[#allocation2 + $0x3c] sm:$0xf]  ;;  %v1459_v33 = vld [vmem:[#allocation2 + $0x50] sm:$0x1]  ;;  %7814 = vmatprep.subr.bf16.mxu0 %v8166_v25 }
  0xfe   : > { %1436 = vst [vmem:[#allocation2 + $0x24] sm:$0xf] %v1435_v43  ;;  %v1140_v48 = vshrl.u32 %v7446_v37, 16  ;;  %v1143_v49 = vshll.u32 %v7446_v37, 16  ;;  %v7451_v51 = vpack.c.bf16 %v855_v38, %v855_v38  ;;  %v853_v52 = vmax.f32 %v821_v39, 0.0  ;;  %v7695_v53 = vpop.f32.mrf.mxu0 }
  0xff   : > { %v1162_v55 = vor.u32 %v1160_v36, %v1159_v44  ;;  %v1164_v56 = vrot.slane %v1159_v44, 4  ;;  %v856_v57 = vmax.f32 %v824_v40, 0.0  ;;  %v854_v58 = vmax.f32 %v822_v46, 0.0  ;;  %v1452_v43 = vld [vmem:[#allocation2 + $0x44] sm:$0x1] }
 0x100   : > { %v1142_v59 = vrot.slane %v1140_v48, 7  ;;  %v1183_v60 = vshrl.u32 %v7451_v51, 16  ;;  %v1186_v61 = vshll.u32 %v7451_v51, 16  ;;  %v7449_v62 = vpack.c.bf16 %v853_v52, %v853_v52  ;;  %v8634_v63 = vpop.f32.mrf.mxu0  ;;  %v8657_v51 = vld [vmem:[#allocation2 + $0x10] sm:$0xf] }
 0x101   : > { %v1163_v0 = vsel %vm8601_vm14, %v1155_v17, %v1162_v55  ;;  %v1446_v1 = vsel %vm8459_vm4, %v1164_v56, %v1445_v45  ;;  %v7452_v3 = vpack.c.bf16 %v856_v57, %v856_v57  ;;  %v7450_v4 = vpack.c.bf16 %v854_v58, %v854_v58  ;;  %v1536_v55 = vld [vmem:[#allocation2 + $0x18] sm:$0xf] }
 0x102   : > { %1444 = vst.msk [vmem:[#allocation2 + $0x34] sm:$0xf] %vm877_vm7, %v1163_v0  ;;  %1447 = vst [vmem:[#allocation2 + $0x38] sm:$0x1] %v1446_v1  ;;  %v1145_v5 = vor.u32 %v1143_v49, %v1142_v59  ;;  %v1147_v6 = vrot.slane %v1142_v59, 4  ;;  %v1185_v8 = vrot.slane %v1183_v60, 7  ;;  %v7698_v20 = vpop.f32.mrf.mxu0  ;;  %v786_v35 = vmul.f32 %v8569_v50, %v688_v41 }
 0x103   : > { %v1166_v10 = vshrl.u32 %v7449_v62, 16  ;;  %v1169_v11 = vshll.u32 %v7449_v62, 16  ;;  %v1191_v13 = vshrl.u32 %v7452_v3, 16  ;;  %v1194_v14 = vshll.u32 %v7452_v3, 16  ;;  %v8671_v60 = vld [vmem:[#allocation2 + $0xc] sm:$0xf] }
 0x104   : > { %v1174_v16 = vshrl.u32 %v7450_v4, 16  ;;  %v1146_v17 = vsel %vm8601_vm14, %v1138_v34, %v1145_v5  ;;  %v1439_v22 = vsel %vm8459_vm4, %v1147_v6, %v1438_v2  ;;  %v1188_v23 = vor.u32 %v1186_v61, %v1185_v8  ;;  %v8654_v44 = vpop.f32.mrf.mxu0 }
 0x105   : > { %v1189_v24 = vrot.slane %v1185_v8, 4  ;;  %1437 = vst.msk [vmem:[#allocation2 + $0x28] sm:$0xf] %vm877_vm7, %v1146_v17  ;;  %1440 = vst [vmem:[#allocation2 + $0x2c] sm:$0x1] %v1439_v22  ;;  %v1168_v26 = vrot.slane %v1166_v10, 7  ;;  %v827_v34 = vadd.f32 %v8576_v54, %v788_v47  ;;  %v789_v36 = vmul.f32 %v7695_v53, %v8569_v50 }
 0x106   : > { %v1193_v27 = vrot.slane %v1191_v13, 7  ;;  %v1176_v28 = vrot.slane %v1174_v16, 7  ;;  %v1177_v30 = vshll.u32 %v7450_v4, 16  ;;  %v1456_v31 = vsel %vm8590_vm13, %v1188_v23, %v1455_v9  ;;  %v7699_v2 = vpop.f32.mrf.mxu0  ;;  %v1469_v8 = vld [vmem:[#allocation2 + $0x60] sm:$0xf] }
 0x107   : > { %1457 = vst [vmem:[#allocation2 + $0x48] sm:$0xf] %v1456_v31  ;;  %v1171_v37 = vor.u32 %v1169_v11, %v1168_v26  ;;  %v1172_v38 = vrot.slane %v1168_v26, 4  ;;  %v859_v48 = vmax.f32 %v827_v34, 0.0  ;;  %v825_v49 = vadd.f32 %v8576_v54, %v786_v35  ;;  %v5652_v21 = vld [vmem:[#allocation2 + $0x24] sm:$0xe] }
 0x108   : > { %v1196_v39 = vor.u32 %v1194_v14, %v1193_v27  ;;  %v1198_v40 = vrot.slane %v1193_v27, 4  ;;  %v1179_v45 = vor.u32 %v1177_v30, %v1176_v28  ;;  %v1181_v46 = vrot.slane %v1176_v28, 4  ;;  %v707_v27 = vpop.f32.mrf.mxu0 }
 0x109   : > { %v1449_v41 = vsel %vm8590_vm13, %v1171_v37, %v1448_v32  ;;  %v828_v53 = vadd.f32 %v8576_v54, %v789_v36  ;;  %v7455_v58 = vpack.c.bf16 %v859_v48, %v859_v48  ;;  %v857_v59 = vmax.f32 %v825_v49, 0.0 }
 0x10a   : > { %v1197_v47 = vsel %vm8601_vm14, %v1189_v24, %v1196_v39  ;;  %v1460_v52 = vsel %vm8459_vm4, %v1198_v40, %v1459_v33  ;;  %1450 = vst [vmem:[#allocation2 + $0x3c] sm:$0xf] %v1449_v41  ;;  %v1180_v56 = vsel %vm8601_vm14, %v1172_v38, %v1179_v45  ;;  %v1453_v57 = vsel %vm8459_vm4, %v1181_v46, %v1452_v43  ;;  %v1462_v33 = vld [vmem:[#allocation2 + $0x54] sm:$0xf]  ;;  %v1473_v40 = vld [vmem:[#allocation2 + $0x68] sm:$0x1]  ;;  %v7702_v41 = vpop.f32.mrf.mxu0 }
 0x10b   : > { %1458 = vst.msk [vmem:[#allocation2 + $0x4c] sm:$0xf] %vm877_vm7, %v1197_v47  ;;  %1461 = vst [vmem:[#allocation2 + $0x50] sm:$0x1] %v1460_v52  ;;  %v860_v61 = vmax.f32 %v828_v53, 0.0  ;;  %v787_v62 = vmul.f32 %v8569_v50, %v8634_v63  ;;  %v792_v0 = vmul.f32 %v7698_v20, %v8569_v50  ;;  %v7071_v1 = vcombine.low %v8671_v60, %v8657_v51 }
 0x10c   : > { %1451 = vst.msk [vmem:[#allocation2 + $0x40] sm:$0xf] %vm877_vm7, %v1180_v56  ;;  %1454 = vst [vmem:[#allocation2 + $0x44] sm:$0x1] %v1453_v57  ;;  %v1217_v3 = vshrl.u32 %v7455_v58, 16  ;;  %v1220_v4 = vshll.u32 %v7455_v58, 16  ;;  %v7453_v5 = vpack.c.bf16 %v857_v59, %v857_v59  ;;  %v790_v57 = vmul.f32 %v8569_v50, %v8654_v44 }
 0x10d   : > { %v1634_v6 = vshrl.u32 %v1536_v55, 16  ;;  %v7456_v9 = vpack.c.bf16 %v860_v61, %v860_v61  ;;  %v826_v10 = vadd.f32 %v8576_v54, %v787_v62  ;;  %v831_v11 = vadd.f32 %v8576_v54, %v792_v0  ;;  %7749 = vmatmul.mubr.msk.bf16.vlgmr.msra.gmra.mxu0 %vm2026_vm8, %v7071_v1  ;;  %v8682_v20 = vld [vmem:[#allocation2 + $0x1c] sm:$0xf]  ;;  %v1538_v47 = vld [vmem:[#allocation2 + $0x24] sm:$0xf] }
 0x10e   : > { %v1637_v13 = vshll.u32 %v1536_v55, 16  ;;  %v1219_v63 = vrot.slane %v1217_v3, 7  ;;  %v1200_v14 = vshrl.u32 %v7453_v5, 16  ;;  %v1203_v16 = vshll.u32 %v7453_v5, 16  ;;  %7815 = vmatpush3.bf16.msra.mxu0 %v8166_v25  ;;  %v1466_v62 = vld [vmem:[#allocation2 + $0x5c] sm:$0x1] }
 0x10f   : > { %v8684_v17 = vrot.slane %v1634_v6, 4  ;;  %v1225_v22 = vshrl.u32 %v7456_v9, 16  ;;  %v1228_v23 = vshll.u32 %v7456_v9, 16  ;;  %v858_v24 = vmax.f32 %v826_v10, 0.0  ;;  %v1483_v6 = vld [vmem:[#allocation2 + $0x78] sm:$0xf] }
 0x110   : > { %v863_v26 = vmax.f32 %v831_v11, 0.0  ;;  %v1222_v28 = vor.u32 %v1220_v4, %v1219_v63  ;;  %v1223_v30 = vrot.slane %v1219_v63, 4  ;;  %v1202_v31 = vrot.slane %v1200_v14, 7  ;;  %v8709_v9 = vld [vmem:[#allocation2 + $0x28] sm:$0xf] }
 0x111   : > { %v8686_v32 = vrot.slane %v1637_v13, 5  ;;  %v1227_v34 = vrot.slane %v1225_v22, 7  ;;  %v7454_v35 = vpack.c.bf16 %v858_v24, %v858_v24  ;;  %v1647_v37 = vshrl.u32 %v8682_v20, 16 }
 0x112   : > { %v7459_v36 = vpack.c.bf16 %v863_v26, %v863_v26  ;;  %v1470_v38 = vsel %vm8590_vm13, %v1222_v28, %v1469_v8  ;;  %v1205_v25 = vor.u32 %v1203_v16, %v1202_v31  ;;  %v1206_v39 = vrot.slane %v1202_v31, 4 }
 0x113   : > { %v7072_v43 = vcombine.low %v1536_v55, %v8682_v20  ;;  %1471 = vst [vmem:[#allocation2 + $0x60] sm:$0xf] %v1470_v38  ;;  %v1230_v45 = vor.u32 %v1228_v23, %v1227_v34  ;;  %v1232_v46 = vrot.slane %v1227_v34, 4  ;;  %v1208_v48 = vshrl.u32 %v7454_v35, 16 }
 0x114   : > { %v1211_v49 = vshll.u32 %v7454_v35, 16  ;;  %v1463_v52 = vsel %vm8590_vm13, %v1205_v25, %v1462_v33  ;;  %v1251_v53 = vshrl.u32 %v7459_v36, 16  ;;  %v1254_v56 = vshll.u32 %v7459_v36, 16 }
 0x115   : > { %7752 = vmatprep.mubr.msk.bf16.mxu0 %vm2026_vm8, %v7072_v43  ;;  %1464 = vst [vmem:[#allocation2 + $0x54] sm:$0xf] %v1463_v52  ;;  %v1231_v55 = vsel %vm8601_vm14, %v1223_v30, %v1230_v45  ;;  %v1474_v58 = vsel %vm8459_vm4, %v1232_v46, %v1473_v40  ;;  %v1210_v59 = vrot.slane %v1208_v48, 7  ;;  %v793_v61 = vmul.f32 %v7699_v2, %v8569_v50  ;;  %v1476_v40 = vld [vmem:[#allocation2 + $0x6c] sm:$0xf] }
 0x116   : > { %1472 = vst.msk [vmem:[#allocation2 + $0x64] sm:$0xf] %vm877_vm7, %v1231_v55  ;;  %1475 = vst [vmem:[#allocation2 + $0x68] sm:$0x1] %v1474_v58  ;;  %v8703_v0 = vrot.slane %v1251_v53, 7  ;;  %v829_v1 = vadd.f32 %v8576_v54, %v790_v57  ;;  %v791_v44 = vmul.f32 %v8569_v50, %v707_v27  ;;  %v796_v3 = vmul.f32 %v7702_v41, %v8569_v50 }
 0x117   : > { %v1213_v4 = vor.u32 %v1211_v49, %v1210_v59  ;;  %v1215_v5 = vrot.slane %v1210_v59, 4  ;;  %v832_v8 = vadd.f32 %v8576_v54, %v793_v61  ;;  %v1658_v2 = vshrl.u32 %v1538_v47, 16  ;;  %v1487_v41 = vld [vmem:[#allocation2 + $0x80] sm:$0x1]  ;;  %v1480_v55 = vld [vmem:[#allocation2 + $0x74] sm:$0x1] }
 0x118   : > { %v1256_v10 = vor.u32 %v1254_v56, %v8703_v0  ;;  %v1257_v11 = vrot.slane %v8703_v0, 4  ;;  %v861_v13 = vmax.f32 %v829_v1, 0.0  ;;  %v830_v63 = vadd.f32 %v8576_v54, %v791_v44  ;;  %v1497_v1 = vld [vmem:[#allocation2 + $0x90] sm:$0xf] }
 0x119   : > { %v1214_v14 = vsel %vm8601_vm14, %v1206_v39, %v1213_v4  ;;  %v1467_v16 = vsel %vm8459_vm4, %v1215_v5, %v1466_v62  ;;  %v864_v22 = vmax.f32 %v832_v8, 0.0  ;;  %v835_v23 = vadd.f32 %v8576_v54, %v796_v3  ;;  %v720_v39 = vpop.f32.mrf.mxu0  ;;  %v8733_v8 = vld [vmem:[#allocation2 + $0x14] sm:$0x1] }
 0x11a   : > { %1465 = vst.msk [vmem:[#allocation2 + $0x58] sm:$0xf] %vm877_vm7, %v1214_v14  ;;  %1468 = vst [vmem:[#allocation2 + $0x5c] sm:$0x1] %v1467_v16  ;;  %v1484_v24 = vsel %vm8590_vm13, %v1256_v10, %v1483_v6  ;;  %v7457_v26 = vpack.c.bf16 %v861_v13, %v861_v13  ;;  %v862_v27 = vmax.f32 %v830_v63, 0.0  ;;  %v8722_v28 = vrot.slane %v1658_v2, 4 }
 0x11b   : > { %1485 = vst [vmem:[#allocation2 + $0x78] sm:$0xf] %v1484_v24  ;;  %v7460_v30 = vpack.c.bf16 %v864_v22, %v864_v22  ;;  %v867_v31 = vmax.f32 %v835_v23, 0.0  ;;  %v1661_v33 = vshll.u32 %v1538_v47, 16  ;;  %v1671_v34 = vshrl.u32 %v8709_v9, 16  ;;  %v7703_v3 = vpop.f32.mrf.mxu0 }
 0x11c   : > { %v1234_v35 = vshrl.u32 %v7457_v26, 16  ;;  %v1237_v36 = vshll.u32 %v7457_v26, 16  ;;  %v7458_v38 = vpack.c.bf16 %v862_v27, %v862_v27  ;;  %v7073_v25 = vcombine.low %v1538_v47, %v8709_v9  ;;  %v1540_v14 = vld [vmem:[#allocation2 + $0x30] sm:$0xf]  ;;  %v8738_v16 = vld [vmem:[#allocation2 + $0x34] sm:$0xf] }
 0x11d   : > { %v1259_v43 = vshrl.u32 %v7460_v30, 16  ;;  %v1262_v45 = vshll.u32 %v7460_v30, 16  ;;  %v7463_v46 = vpack.c.bf16 %v867_v31, %v867_v31  ;;  %v8726_v48 = vrot.slane %v1661_v33, 5 }
 0x11e   : > { %v1236_v49 = vrot.slane %v1234_v35, 7  ;;  %v1242_v52 = vshrl.u32 %v7458_v38, 16  ;;  %v1245_v53 = vshll.u32 %v7458_v38, 16  ;;  %7753 = vmatmul.mubr.msk.bf16.gmra.mxu0 %vm2026_vm8, %v7073_v25  ;;  %v1610_v56 = vshrl.u32 %v8671_v60, 16  ;;  %v723_v35 = vpop.f32.mrf.mxu0 }
 0x11f   : > { %v1261_v57 = vrot.slane %v1259_v43, 7  ;;  %v1285_v58 = vshrl.u32 %v7463_v46, 16  ;;  %v1288_v59 = vshll.u32 %v7463_v46, 16  ;;  %v1613_v47 = vshll.u32 %v8671_v60, 16 }
 0x120   : > { %v1239_v61 = vor.u32 %v1237_v36, %v1236_v49  ;;  %v1240_v62 = vrot.slane %v1236_v49, 4  ;;  %v1244_v0 = vrot.slane %v1242_v52, 7  ;;  %v1612_v44 = vrot.slane %v1610_v56, 4  ;;  %v1568_v56 = vld [vmem:[#allocation2 + $0x20] sm:$0x1] }
 0x121   : > { %v1264_v4 = vor.u32 %v1262_v45, %v1261_v57  ;;  %v1266_v5 = vrot.slane %v1261_v57, 4  ;;  %v8731_v6 = vrot.slane %v1285_v58, 7  ;;  %v1615_v2 = vrot.slane %v1613_v47, 5 }
 0x122   : > { %v1477_v10 = vsel %vm8590_vm13, %v1239_v61, %v1476_v40  ;;  %v1247_v13 = vor.u32 %v1245_v53, %v1244_v0  ;;  %v1249_v63 = vrot.slane %v1244_v0, 4  ;;  %v1619_v60 = vshll.u32 %v8657_v51, 16  ;;  %v1542_v0 = vld [vmem:[#allocation2 + $0x3c] sm:$0xf] }
 0x123   : > { %1478 = vst [vmem:[#allocation2 + $0x6c] sm:$0xf] %v1477_v10  ;;  %v1265_v22 = vsel %vm8601_vm14, %v1257_v11, %v1264_v4  ;;  %v1488_v23 = vsel %vm8459_vm4, %v1266_v5, %v1487_v41  ;;  %v1290_v24 = vor.u32 %v1288_v59, %v8731_v6  ;;  %v1291_v26 = vrot.slane %v8731_v6, 4  ;;  %v7706_v59 = vpop.f32.mrf.mxu0 }
 0x124   : > { %1486 = vst.msk [vmem:[#allocation2 + $0x7c] sm:$0xf] %vm877_vm7, %v1265_v22  ;;  %1489 = vst [vmem:[#allocation2 + $0x80] sm:$0x1] %v1488_v23  ;;  %v1248_v27 = vsel %vm8601_vm14, %v1240_v62, %v1247_v13  ;;  %v1481_v30 = vsel %vm8459_vm4, %v1249_v63, %v1480_v55  ;;  %v1616_v31 = vor.u32 %v1615_v2, %v1612_v44  ;;  %v1621_v33 = vrot.slane %v1619_v60, 5  ;;  %v8170_v23 = vld [vmem:[%s11408_s4 + $0x20] sm:$0xff]  }
 0x125   : > { %1479 = vst.msk [vmem:[#allocation2 + $0x70] sm:$0xf] %vm877_vm7, %v1248_v27  ;;  %1482 = vst [vmem:[#allocation2 + $0x74] sm:$0x1] %v1481_v30  ;;  %v1498_v11 = vsel %vm8590_vm13, %v1290_v24, %v1497_v1  ;;  %v1623_v36 = vshrl.u32 %v8657_v51, 16  ;;  %v1629_v38 = vshll.u32 %v8733_v8, 16  ;;  %v7074_v52 = vcombine.low %v1540_v14, %v8738_v16 }
 0x126   : > { %v2594_v25 = vrot.slane %v8733_v8, 5  ;;  %1499 = vst [vmem:[#allocation2 + $0x90] sm:$0xf] %v1498_v11  ;;  %v1617_v40 = vrot.slane %v1616_v31, 4  ;;  %v1682_v43 = vshrl.u32 %v1540_v14, 16  ;;  %v1685_v45 = vshll.u32 %v1540_v14, 16 }
 0x127   : > { %v1695_v46 = vshrl.u32 %v8738_v16, 16  ;;  %v1625_v49 = vrot.slane %v1623_v36, 4  ;;  %v1631_v41 = vrot.slane %v1629_v38, 5  ;;  %v794_v53 = vmul.f32 %v8569_v50, %v720_v39  ;;  %7756 = vmatprep.mubr.msk.bf16.mxu0 %vm2026_vm8, %v7074_v52  ;;  %v1490_v52 = vld [vmem:[#allocation2 + $0x84] sm:$0xf] }
 0x128   : > { %v1622_v51 = vsel %vm8523_vm11, %v1617_v40, %v1621_v33  ;;  %v8762_v57 = vrot.slane %v1682_v43, 4  ;;  %v8764_v55 = vrot.slane %v1685_v45, 5  ;;  %v1640_v58 = vor.u32 %v8686_v32, %v8684_v17 }
 0x129   : > { %v1626_v47 = vor.u32 %v1625_v49, %v1621_v33  ;;  %v833_v61 = vadd.f32 %v8576_v54, %v794_v53  ;;  %v1643_v62 = vshll.u32 %v8682_v20, 16  ;;  %v1649_v39 = vrot.slane %v1647_v37, 4  ;;  %v8786_v33 = vld [vmem:[#allocation2 + $0x40] sm:$0xf] }
 0x12a   : > { %v1641_v1 = vrot.slane %v1640_v58, 4  ;;  %v1653_v44 = vshll.u32 %v1568_v56, 16  ;;  %v797_v4 = vmul.f32 %v7703_v3, %v8569_v50  ;;  %v795_v5 = vmul.f32 %v8569_v50, %v723_v35  ;;  %v736_v58 = vpop.f32.mrf.mxu0 }
 0x12b   : > { %v1627_v2 = vrot.slane %v1626_v47, 4  ;;  %v865_v17 = vmax.f32 %v833_v61, 0.0  ;;  %v1645_v32 = vrot.slane %v1643_v62, 5  ;;  %v800_v10 = vmul.f32 %v7706_v59, %v8569_v50 }
 0x12c   : > { %v1655_v13 = vrot.slane %v1653_v44, 5  ;;  %v836_v63 = vadd.f32 %v8576_v54, %v797_v4  ;;  %v834_v60 = vadd.f32 %v8576_v54, %v795_v5  ;;  %v1706_v14 = vshrl.u32 %v1542_v0, 16  ;;  %v1501_v44 = vld [vmem:[#allocation2 + $0x98] sm:$0x1] }
 0x12d   : > { %v1632_v20 = vsel %vm8523_vm11, %v1627_v2, %v1631_v41  ;;  %v7461_v37 = vpack.c.bf16 %v865_v17, %v865_v17  ;;  %v1646_v3 = vsel %vm8523_vm11, %v1641_v1, %v1645_v32  ;;  %v1650_v22 = vor.u32 %v1649_v39, %v1645_v32  ;;  %v1494_v17 = vld [vmem:[#allocation2 + $0x8c] sm:$0x1] }
 0x12e   : > { %v7038_v24 = vcombine.low %v1622_v51, %v1632_v20  ;;  %v868_v27 = vmax.f32 %v836_v63, 0.0  ;;  %v866_v30 = vmax.f32 %v834_v60, 0.0  ;;  %v839_v31 = vadd.f32 %v8576_v54, %v800_v10  ;;  %v8804_v60 = vld [vmem:[#allocation2 + $0x2c] sm:$0x1]  ;;  %v1544_v20 = vld [vmem:[#allocation2 + $0x48] sm:$0xf] }
 0x12f   : > { %v1268_v35 = vshrl.u32 %v7461_v37, 16  ;;  %v1271_v11 = vshll.u32 %v7461_v37, 16  ;;  %v1651_v36 = vrot.slane %v1650_v22, 4  ;;  %v8788_v38 = vrot.slane %v1706_v14, 4  ;;  %v7707_v37 = vpop.f32.mrf.mxu0 }
 0x130   : > { %7715 = vmatmul.mubr.msk.bf16.vlgmr.msra.gmra.mxu1 %vm2026_vm8, %v7038_v24  ;;  %v7464_v40 = vpack.c.bf16 %v868_v27, %v868_v27  ;;  %v7462_v43 = vpack.c.bf16 %v866_v30, %v866_v30  ;;  %v871_v45 = vmax.f32 %v839_v31, 0.0  ;;  %v1709_v49 = vshll.u32 %v1542_v0, 16  ;;  %v8807_v27 = vld [vmem:[#allocation2 + $0x4c] sm:$0xf] }
 0x131   : > { %7781 = vmatpush3.bf16.msra.mxu1 %v8543_v29  ;;  %v1270_v41 = vrot.slane %v1268_v35, 7  ;;  %v1656_v53 = vsel %vm8523_vm11, %v1651_v36, %v1655_v13  ;;  %v1719_v56 = vshrl.u32 %v8786_v33, 16  ;;  %v7075_v51 = vcombine.low %v1542_v0, %v8786_v33 }
 0x132   : > { %v7039_v59 = vcombine.low %v1646_v3, %v1656_v53  ;;  %v1293_v47 = vshrl.u32 %v7464_v40, 16  ;;  %v1296_v61 = vshll.u32 %v7464_v40, 16  ;;  %v1276_v62 = vshrl.u32 %v7462_v43, 16  ;;  %7848 = vmatprep.subr.bf16.mxu1 %v8170_v23 }
 0x133   : > { %v1273_v39 = vor.u32 %v1271_v11, %v1270_v41  ;;  %v1274_v1 = vrot.slane %v1270_v41, 4  ;;  %v1279_v4 = vshll.u32 %v7462_v43, 16  ;;  %v7467_v29 = vpack.c.bf16 %v871_v45, %v871_v45  ;;  %7757 = vmatmul.mubr.msk.bf16.gmra.mxu0 %vm2026_vm8, %v7075_v51  ;;  %v1511_v43 = vld [vmem:[#allocation2 + $0xa8] sm:$0xf]  ;;  %v739_v45 = vpop.f32.mrf.mxu0  ;;  %v8831_v51 = vld [vmem:[#allocation2 + $0x38] sm:$0x1] }
 0x134   : > { %7718 = vmatprep.mubr.msk.bf16.mxu1 %vm2026_vm8, %v7039_v59  ;;  %v1295_v5 = vrot.slane %v1293_v47, 7  ;;  %v1278_v2 = vrot.slane %v1276_v62, 7  ;;  %v8798_v32 = vrot.slane %v1709_v49, 5  ;;  %v1664_v0 = vor.u32 %v8726_v48, %v8722_v28 }
 0x135   : > { %v1491_v10 = vsel %vm8590_vm13, %v1273_v39, %v1490_v52  ;;  %v1319_v13 = vshrl.u32 %v7467_v29, 16  ;;  %v1322_v63 = vshll.u32 %v7467_v29, 16  ;;  %v1667_v14 = vshll.u32 %v8709_v9, 16 }
 0x136   : > { %1492 = vst [vmem:[#allocation2 + $0x84] sm:$0xf] %v1491_v10  ;;  %v1298_v3 = vor.u32 %v1296_v61, %v1295_v5  ;;  %v1300_v22 = vrot.slane %v1295_v5, 4  ;;  %v1281_v23 = vor.u32 %v1279_v4, %v1278_v2  ;;  %v1283_v24 = vrot.slane %v1278_v2, 4 }
 0x137   : > { %v8809_v30 = vrot.slane %v1319_v13, 7  ;;  %v1665_v28 = vrot.slane %v1664_v0, 4  ;;  %v1669_v48 = vrot.slane %v1667_v14, 5  ;;  %v1673_v31 = vrot.slane %v1671_v34, 4  ;;  %v8861_v14 = vld [vmem:[%s11407_s3] ss:$0 sm:$0xff] }
 0x138   : > { %v1299_v35 = vsel %vm8601_vm14, %v1291_v26, %v1298_v3  ;;  %v1502_v11 = vsel %vm8459_vm4, %v1300_v22, %v1501_v44  ;;  %v1282_v36 = vsel %vm8601_vm14, %v1274_v1, %v1281_v23  ;;  %v1495_v40 = vsel %vm8459_vm4, %v1283_v24, %v1494_v17  ;;  %v1546_v17 = vld [vmem:[#allocation2 + $0x54] sm:$0xf] }
 0x139   : > { %1500 = vst.msk [vmem:[#allocation2 + $0x94] sm:$0xf] %vm877_vm7, %v1299_v35  ;;  %1503 = vst [vmem:[#allocation2 + $0x98] sm:$0x1] %v1502_v11  ;;  %v1324_v9 = vor.u32 %v1322_v63, %v8809_v30  ;;  %v1325_v34 = vrot.slane %v8809_v30, 4  ;;  %v1670_v6 = vsel %vm8523_vm11, %v1665_v28, %v1669_v48  ;;  %v1674_v26 = vor.u32 %v1673_v31, %v1669_v48 }
 0x13a   : > { %1493 = vst.msk [vmem:[#allocation2 + $0x88] sm:$0xf] %vm877_vm7, %v1282_v36  ;;  %1496 = vst [vmem:[#allocation2 + $0x8c] sm:$0x1] %v1495_v40  ;;  %v1677_v49 = vshll.u32 %v8804_v60, 16  ;;  %v1730_v41 = vshrl.u32 %v1544_v20, 16  ;;  %v7076_v61 = vcombine.low %v1544_v20, %v8807_v27  ;;  %v798_v62 = vmul.f32 %v8569_v50, %v736_v58  ;;  %v7710_v58 = vpop.f32.mrf.mxu0 }
 0x13b   : > { %v1733_v52 = vshll.u32 %v1544_v20, 16  ;;  %v1743_v53 = vshrl.u32 %v8807_v27, 16  ;;  %v1512_v59 = vsel %vm8590_vm13, %v1324_v9, %v1511_v43  ;;  %v1675_v47 = vrot.slane %v1674_v26, 4  ;;  %v8869_v48 = vld [vmem:[#allocation2 + $0x58] sm:$0xf]  ;;  %v8877_v43 = vld [vmem:[%s11408_s4 + $0x28] sm:$0xff]  }
 0x13c   : > { %1513 = vst [vmem:[#allocation2 + $0xa8] sm:$0xf] %v1512_v59  ;;  %v1679_v39 = vrot.slane %v1677_v49, 5  ;;  %v8837_v1 = vrot.slane %v1730_v41, 4  ;;  %v1688_v4 = vor.u32 %v8764_v55, %v8762_v57  ;;  %7760 = vmatprep.mubr.msk.bf16.mxu0 %vm2026_vm8, %v7076_v61  ;;  %v837_v29 = vadd.f32 %v8576_v54, %v798_v62  ;;  %v8854_v57 = vld [vmem:[%s11440_s2] ss:$0 sm:$0xff]  ;;  %7882 = vmatprep.subr.bf16.mxu0 %v8877_v43 }
 0x13d   : > { %v8839_v44 = vrot.slane %v1733_v52, 5  ;;  %v1691_v5 = vshll.u32 %v8738_v16, 16  ;;  %v1697_v2 = vrot.slane %v1695_v46, 4  ;;  %v1701_v50 = vshll.u32 %v8831_v51, 16 }
 0x13e   : > { %v1680_v0 = vsel %vm8523_vm11, %v1675_v47, %v1679_v39  ;;  %v1689_v10 = vrot.slane %v1688_v4, 4  ;;  %v801_v54 = vmul.f32 %v8854_v57, %v7707_v37  ;;  %v799_v55 = vmul.f32 %v8854_v57, %v739_v45  ;;  %v1504_v4 = vld [vmem:[#allocation2 + $0x9c] sm:$0xf] }
 0x13f   : > { %v7040_v13 = vcombine.low %v1670_v6, %v1680_v0  ;;  %v869_v16 = vmax.f32 %v837_v29, 0.0  ;;  %v1693_v46 = vrot.slane %v1691_v5, 5  ;;  %v1703_v63 = vrot.slane %v1701_v50, 5 }
 0x140   : > { %v840_v20 = vadd.f32 %v8861_v14, %v801_v54  ;;  %v838_v3 = vadd.f32 %v8861_v14, %v799_v55  ;;  %v804_v22 = vmul.f32 %v8854_v57, %v7710_v58  ;;  %v1754_v23 = vshrl.u32 %v1546_v17, 16 }
 0x141   : > { %7719 = vmatmul.mubr.msk.bf16.gmra.mxu1 %vm2026_vm8, %v7040_v13  ;;  %v7465_v37 = vpack.c.bf16 %v869_v16, %v869_v16  ;;  %v1694_v24 = vsel %vm8523_vm11, %v1689_v10, %v1693_v46  ;;  %v1698_v28 = vor.u32 %v1697_v2, %v1693_v46  ;;  %v1757_v31 = vshll.u32 %v1546_v17, 16  ;;  %v1515_v10 = vld [vmem:[#allocation2 + $0xb0] sm:$0x1]  ;;  %v8889_v13 = vld [vmem:[#allocation2 + $0x44] sm:$0x1]  ;;  %v752_v16 = vpop.f32.mrf.mxu0 }
 0x142   : > { %v872_v35 = vmax.f32 %v840_v20, 0.0  ;;  %v870_v11 = vmax.f32 %v838_v3, 0.0  ;;  %v843_v36 = vadd.f32 %v8861_v14, %v804_v22  ;;  %v8872_v40 = vrot.slane %v1754_v23, 4  ;;  %v1508_v3 = vld [vmem:[#allocation2 + $0xa4] sm:$0x1] }
 0x143   : > { %v1302_v9 = vshrl.u32 %v7465_v37, 16  ;;  %v1305_v6 = vshll.u32 %v7465_v37, 16  ;;  %v1699_v26 = vrot.slane %v1698_v28, 4  ;;  %v8879_v45 = vrot.slane %v1757_v31, 5 }
 0x144   : > { %v7468_v49 = vpack.c.bf16 %v872_v35, %v872_v35  ;;  %v7466_v41 = vpack.c.bf16 %v870_v11, %v870_v11  ;;  %v875_v52 = vmax.f32 %v843_v36, 0.0  ;;  %v1767_v59 = vshrl.u32 %v8869_v48, 16 }
 0x145   : > { %v1304_v47 = vrot.slane %v1302_v9, 7  ;;  %v1704_v61 = vsel %vm8523_vm11, %v1699_v26, %v1703_v63  ;;  %v7077_v62 = vcombine.low %v1546_v17, %v8869_v48  ;;  %v1712_v39 = vor.u32 %v8798_v32, %v8788_v38  ;;  %v1548_v63 = vld [vmem:[#allocation2 + $0x60] sm:$0xf] }
 0x146   : > { %v7041_v29 = vcombine.low %v1694_v24, %v1704_v61  ;;  %v1327_v5 = vshrl.u32 %v7468_v49, 16  ;;  %v1330_v2 = vshll.u32 %v7468_v49, 16  ;;  %v1310_v50 = vshrl.u32 %v7466_v41, 16  ;;  %v7711_v49 = vpop.f32.mrf.mxu0  ;;  %v1525_v61 = vld [vmem:[#allocation2 + $0xc0] sm:$0xf] }
 0x147   : > { %v1307_v58 = vor.u32 %v1305_v6, %v1304_v47  ;;  %v1308_v0 = vrot.slane %v1304_v47, 4  ;;  %v1313_v54 = vshll.u32 %v7466_v41, 16  ;;  %v7471_v55 = vpack.c.bf16 %v875_v52, %v875_v52  ;;  %7761 = vmatmul.mubr.msk.bf16.gmra.mxu0 %vm2026_vm8, %v7077_v62  ;;  %v8900_v6 = vld [vmem:[#allocation2 + $0x64] sm:$0xf] }
 0x148   : > { %7722 = vmatprep.mubr.msk.bf16.mxu1 %vm2026_vm8, %v7041_v29  ;;  %v1329_v17 = vrot.slane %v1327_v5, 7  ;;  %v1312_v46 = vrot.slane %v1310_v50, 7  ;;  %v1713_v38 = vrot.slane %v1712_v39, 4  ;;  %v1715_v32 = vshll.u32 %v8786_v33, 16  ;;  %v8921_v50 = vld [vmem:[#allocation2 + $0x50] sm:$0x1] }
 0x149   : > { %v1505_v20 = vsel %vm8590_vm13, %v1307_v58, %v1504_v4  ;;  %v1353_v22 = vshrl.u32 %v7471_v55, 16  ;;  %v1356_v23 = vshll.u32 %v7471_v55, 16  ;;  %v1721_v37 = vrot.slane %v1719_v56, 4  ;;  %v755_v55 = vpop.f32.mrf.mxu0 }
 0x14a   : > { %1506 = vst [vmem:[#allocation2 + $0x9c] sm:$0xf] %v1505_v20  ;;  %v1332_v24 = vor.u32 %v1330_v2, %v1329_v17  ;;  %v1334_v28 = vrot.slane %v1329_v17, 4  ;;  %v1315_v31 = vor.u32 %v1313_v54, %v1312_v46  ;;  %v1317_v35 = vrot.slane %v1312_v46, 4  ;;  %v1550_v20 = vld [vmem:[#allocation2 + $0x6c] sm:$0xf] }
 0x14b   : > { %v8897_v11 = vrot.slane %v1353_v22, 7  ;;  %v1717_v36 = vrot.slane %v1715_v32, 5  ;;  %v1725_v9 = vshll.u32 %v8889_v13, 16  ;;  %v1778_v26 = vshrl.u32 %v1548_v63, 16 }
 0x14c   : > { %v1333_v41 = vsel %vm8601_vm14, %v1325_v34, %v1332_v24  ;;  %v1516_v56 = vsel %vm8459_vm4, %v1334_v28, %v1515_v10  ;;  %v1316_v52 = vsel %vm8601_vm14, %v1308_v0, %v1315_v31  ;;  %v1509_v47 = vsel %vm8459_vm4, %v1317_v35, %v1508_v3  ;;  %v8941_v24 = vld [vmem:[#allocation2 + $0x70] sm:$0xf] }
 0x14d   : > { %1514 = vst.msk [vmem:[#allocation2 + $0xac] sm:$0xf] %vm877_vm7, %v1333_v41  ;;  %1517 = vst [vmem:[#allocation2 + $0xb0] sm:$0x1] %v1516_v56  ;;  %v1358_v30 = vor.u32 %v1356_v23, %v8897_v11  ;;  %v1359_v34 = vrot.slane %v8897_v11, 4  ;;  %v1718_v62 = vsel %vm8523_vm11, %v1713_v38, %v1717_v36  ;;  %v1722_v39 = vor.u32 %v1721_v37, %v1717_v36 }
 0x14e   : > { %1507 = vst.msk [vmem:[#allocation2 + $0xa0] sm:$0xf] %vm877_vm7, %v1316_v52  ;;  %1510 = vst [vmem:[#allocation2 + $0xa4] sm:$0x1] %v1509_v47  ;;  %v1727_v4 = vrot.slane %v1725_v9, 5  ;;  %v8918_v29 = vrot.slane %v1778_v26, 4  ;;  %v7078_v10 = vcombine.low %v1548_v63, %v8900_v6  ;;  %v802_v54 = vmul.f32 %v8854_v57, %v752_v16 }
 0x14f   : > { %v1781_v5 = vshll.u32 %v1548_v63, 16  ;;  %v1791_v2 = vshrl.u32 %v8900_v6, 16  ;;  %v1526_v58 = vsel %vm8590_vm13, %v1358_v30, %v1525_v61  ;;  %v1723_v0 = vrot.slane %v1722_v39, 4 }
 0x150   : > { %1527 = vst [vmem:[#allocation2 + $0xc0] sm:$0xf] %v1526_v58  ;;  %v1736_v46 = vor.u32 %v8839_v44, %v8837_v1  ;;  %v1739_v38 = vshll.u32 %v8807_v27, 16  ;;  %v1745_v32 = vrot.slane %v1743_v53, 4  ;;  %7764 = vmatprep.mubr.msk.bf16.mxu0 %vm2026_vm8, %v7078_v10  ;;  %v841_v16 = vadd.f32 %v8861_v14, %v802_v54  ;;  %v8959_v10 = vld [vmem:[#allocation2 + $0x5c] sm:$0x1] }
 0x151   : > { %v8927_v17 = vrot.slane %v1781_v5, 5  ;;  %v1728_v3 = vsel %vm8523_vm11, %v1723_v0, %v1727_v4  ;;  %v1749_v63 = vshll.u32 %v8921_v50, 16  ;;  %v805_v22 = vmul.f32 %v8854_v57, %v7711_v49 }
 0x152   : > { %v7042_v23 = vcombine.low %v1718_v62, %v1728_v3  ;;  %v1737_v37 = vrot.slane %v1736_v46, 4  ;;  %v1741_v1 = vrot.slane %v1739_v38, 5  ;;  %v803_v44 = vmul.f32 %v8854_v57, %v755_v55  ;;  %v1552_v3 = vld [vmem:[#allocation2 + $0x78] sm:$0xf] }
 0x153   : > { %v873_v53 = vmax.f32 %v841_v16, 0.0  ;;  %v1751_v28 = vrot.slane %v1749_v63, 5  ;;  %v844_v31 = vadd.f32 %v8861_v14, %v805_v22  ;;  %v1802_v35 = vshrl.u32 %v1550_v20, 16  ;;  %v1518_v16 = vld [vmem:[#allocation2 + $0xb4] sm:$0xf] }
 0x154   : > { %7723 = vmatmul.mubr.msk.bf16.gmra.mxu1 %vm2026_vm8, %v7042_v23  ;;  %v1742_v36 = vsel %vm8523_vm11, %v1737_v37, %v1741_v1  ;;  %v1746_v9 = vor.u32 %v1745_v32, %v1741_v1  ;;  %v842_v26 = vadd.f32 %v8861_v14, %v803_v44  ;;  %v1805_v49 = vshll.u32 %v1550_v20, 16 }
 0x155   : > { %v7469_v41 = vpack.c.bf16 %v873_v53, %v873_v53  ;;  %v876_v56 = vmax.f32 %v844_v31, 0.0  ;;  %v8948_v52 = vrot.slane %v1802_v35, 4  ;;  %v1815_v57 = vshrl.u32 %v8941_v24, 16  ;;  %v1529_v53 = vld [vmem:[#allocation2 + $0xc8] sm:$0x1] }
 0x156   : > { %v1747_v47 = vrot.slane %v1746_v9, 4  ;;  %v874_v61 = vmax.f32 %v842_v26, 0.0  ;;  %v8951_v30 = vrot.slane %v1805_v49, 5  ;;  %v7079_v62 = vcombine.low %v1550_v20, %v8941_v24  ;;  %v8968_v35 = vld [vmem:[#allocation2 + $0x7c] sm:$0xf] }
 0x157   : > { %v1336_v39 = vshrl.u32 %v7469_v41, 16  ;;  %v1339_v4 = vshll.u32 %v7469_v41, 16  ;;  %v7472_v5 = vpack.c.bf16 %v876_v56, %v876_v56  ;;  %v1760_v58 = vor.u32 %v8879_v45, %v8872_v40  ;;  %v1522_v41 = vld [vmem:[#allocation2 + $0xbc] sm:$0x1] }
 0x158   : > { %v1752_v14 = vsel %vm8523_vm11, %v1747_v47, %v1751_v28  ;;  %v7470_v0 = vpack.c.bf16 %v874_v61, %v874_v61  ;;  %7765 = vmatmul.mubr.msk.bf16.gmra.mxu0 %vm2026_vm8, %v7079_v62  ;;  %v1763_v54 = vshll.u32 %v8869_v48, 16  ;;  %v1769_v55 = vrot.slane %v1767_v59, 4 }
 0x159   : > { %v1338_v46 = vrot.slane %v1336_v39, 7  ;;  %v7043_v38 = vcombine.low %v1742_v36, %v1752_v14  ;;  %v1361_v32 = vshrl.u32 %v7472_v5, 16  ;;  %v1364_v20 = vshll.u32 %v7472_v5, 16 }
 0x15a   : > { %v1344_v40 = vshrl.u32 %v7470_v0, 16  ;;  %v1347_v45 = vshll.u32 %v7470_v0, 16  ;;  %v1761_v63 = vrot.slane %v1760_v58, 4  ;;  %v1765_v22 = vrot.slane %v1763_v54, 5  ;;  %v1554_v0 = vld [vmem:[#allocation2 + $0x84] sm:$0xf] }
 0x15b   : > { %v1341_v23 = vor.u32 %v1339_v4, %v1338_v46  ;;  %v1342_v37 = vrot.slane %v1338_v46, 4  ;;  %7726 = vmatprep.mubr.msk.bf16.mxu1 %vm2026_vm8, %v7043_v38  ;;  %v1363_v1 = vrot.slane %v1361_v32, 7  ;;  %v1773_v44 = vshll.u32 %v8959_v10, 16  ;;  %v8974_v4 = vld [vmem:[#allocation2 + $0x68] sm:$0x1] }
 0x15c   : > { %v1346_v28 = vrot.slane %v1344_v40, 7  ;;  %v1766_v59 = vsel %vm8523_vm11, %v1761_v63, %v1765_v22  ;;  %v1770_v31 = vor.u32 %v1769_v55, %v1765_v22  ;;  %v1826_v36 = vshrl.u32 %v1552_v3, 16  ;;  %v8983_v54 = vld [vmem:[#allocation2 + $0x88] sm:$0xf] }
 0x15d   : > { %v1519_v9 = vsel %vm8590_vm13, %v1341_v23, %v1518_v16  ;;  %v1366_v26 = vor.u32 %v1364_v20, %v1363_v1  ;;  %v1368_v49 = vrot.slane %v1363_v1, 4  ;;  %v1775_v56 = vrot.slane %v1773_v44, 5 }
 0x15e   : > { %1520 = vst [vmem:[#allocation2 + $0xb4] sm:$0xf] %v1519_v9  ;;  %v1349_v47 = vor.u32 %v1347_v45, %v1346_v28  ;;  %v1351_v61 = vrot.slane %v1346_v28, 4  ;;  %v1771_v62 = vrot.slane %v1770_v31, 4  ;;  %v8972_v39 = vrot.slane %v1826_v36, 4 }
 0x15f   : > { %v1367_v5 = vsel %vm8601_vm14, %v1359_v34, %v1366_v26  ;;  %v1530_v19 = vsel %vm8459_vm4, %v1368_v49, %v1529_v53  ;;  %v1829_v58 = vshll.u32 %v1552_v3, 16  ;;  %v1839_v14 = vshrl.u32 %v8968_v35, 16  ;;  %v9008_v28 = vld [vmem:[#allocation2 + $0x94] sm:$0xf] }
 0x160   : > { %1528 = vst.msk [vmem:[#allocation2 + $0xc4] sm:$0xf] %vm877_vm7, %v1367_v5  ;;  %1531 = vst [vmem:[#allocation2 + $0xc8] sm:$0x1] %v1530_v19  ;;  %v1350_v55 = vsel %vm8601_vm14, %v1342_v37, %v1349_v47  ;;  %v1523_v11 = vsel %vm8459_vm4, %v1351_v61, %v1522_v41  ;;  %v1776_v34 = vsel %vm8523_vm11, %v1771_v62, %v1775_v56  ;;  %v1787_v16 = vshll.u32 %v8900_v6, 16 }
 0x161   : > { %v7080_v46 = vcombine.low %v1552_v3, %v8968_v35  ;;  %1521 = vst.msk [vmem:[#allocation2 + $0xb8] sm:$0xf] %vm877_vm7, %v1350_v55  ;;  %1524 = vst [vmem:[#allocation2 + $0xbc] sm:$0x1] %v1523_v11  ;;  %v7044_v38 = vcombine.low %v1766_v59, %v1776_v34  ;;  %v1831_v32 = vrot.slane %v1829_v58, 5  ;;  %v1784_v20 = vor.u32 %v8927_v17, %v8918_v29 }
 0x162   : > { %v1793_v42 = vrot.slane %v1791_v2, 4  ;;  %v1797_v40 = vshll.u32 %v8974_v4, 16  ;;  %v1850_v45 = vshrl.u32 %v1554_v0, 16  ;;  %v1853_v63 = vshll.u32 %v1554_v0, 16  ;;  %v9001_v3 = vld [vmem:[#allocation2 + $0x74] sm:$0x1] }
 0x163   : > { %7768 = vmatprep.mubr.msk.bf16.mxu0 %vm2026_vm8, %v7080_v46  ;;  %7727 = vmatmul.mubr.msk.bf16.gmra.mxu1 %vm2026_vm8, %v7044_v38  ;;  %v1785_v22 = vrot.slane %v1784_v20, 4  ;;  %v1789_v23 = vrot.slane %v1787_v16, 5  ;;  %v1863_v37 = vshrl.u32 %v8983_v54, 16  ;;  %v7081_v29 = vcombine.low %v1554_v0, %v8983_v54  ;;  %v1556_v17 = vld [vmem:[#allocation2 + $0x90] sm:$0xf] }
 0x164   : > { %v1799_v1 = vrot.slane %v1797_v40, 5  ;;  %v1852_v44 = vrot.slane %v1850_v45, 4  ;;  %v1855_v53 = vrot.slane %v1853_v63, 5  ;;  %v1808_v2 = vor.u32 %v8951_v30, %v8948_v52  ;;  %v9017_v47 = vld [vmem:[#allocation2 + $0x80] sm:$0x1] }
 0x165   : > { %v1790_v59 = vsel %vm8523_vm11, %v1785_v22, %v1789_v23  ;;  %v1794_v31 = vor.u32 %v1793_v42, %v1789_v23  ;;  %7769 = vmatmul.mubr.msk.bf16.gmra.mxu0 %vm2026_vm8, %v7081_v29  ;;  %v1811_v36 = vshll.u32 %v8941_v24, 16  ;;  %v1817_v9 = vrot.slane %v1815_v57, 4  ;;  %v1558_v55 = vld [vmem:[#allocation2 + $0x9c] sm:$0xf]  ;;  %v9028_v38 = vld [vmem:[#allocation2 + $0xa0] sm:$0xf] }
 0x166   : > { %v1809_v26 = vrot.slane %v1808_v2, 4  ;;  %v1821_v49 = vshll.u32 %v9001_v3, 16  ;;  %v1874_v41 = vshrl.u32 %v1556_v17, 16  ;;  %v1877_v56 = vshll.u32 %v1556_v17, 16  ;;  %v1560_v2 = vld [vmem:[#allocation2 + $0xa8] sm:$0xf] }
 0x167   : > { %v1795_v52 = vrot.slane %v1794_v31, 4  ;;  %v1813_v30 = vrot.slane %v1811_v36, 5  ;;  %v1887_v61 = vshrl.u32 %v9008_v28, 16  ;;  %v7082_v62 = vcombine.low %v1556_v17, %v9008_v28  ;;  %v9034_v17 = vld [vmem:[#allocation2 + $0x8c] sm:$0x1] }
 0x168   : > { %v1823_v5 = vrot.slane %v1821_v49, 5  ;;  %v1876_v19 = vrot.slane %v1874_v41, 4  ;;  %v1879_v58 = vrot.slane %v1877_v56, 5  ;;  %v1832_v0 = vor.u32 %v1831_v32, %v8972_v39 }
 0x169   : > { %v1800_v57 = vsel %vm8523_vm11, %v1795_v52, %v1799_v1  ;;  %v1814_v11 = vsel %vm8523_vm11, %v1809_v26, %v1813_v30  ;;  %v1818_v34 = vor.u32 %v1817_v9, %v1813_v30  ;;  %7772 = vmatprep.mubr.msk.bf16.mxu0 %vm2026_vm8, %v7082_v62  ;;  %v1835_v46 = vshll.u32 %v8968_v35, 16  ;;  %v9040_v9 = vld [vmem:[#allocation2 + $0xac] sm:$0xf]  ;;  %v9044_v52 = vld [vmem:[#allocation2 + $0x98] sm:$0x1] }
 0x16a   : > { %v7045_v20 = vcombine.low %v1790_v59, %v1800_v57  ;;  %v1833_v16 = vrot.slane %v1832_v0, 4  ;;  %v1841_v42 = vrot.slane %v1839_v14, 4  ;;  %v1845_v40 = vshll.u32 %v9017_v47, 16 }
 0x16b   : > { %v1819_v39 = vrot.slane %v1818_v34, 4  ;;  %v1837_v32 = vrot.slane %v1835_v46, 5  ;;  %v1898_v45 = vshrl.u32 %v1558_v55, 16  ;;  %v1901_v63 = vshll.u32 %v1558_v55, 16  ;;  %v9050_v34 = vld [vmem:[#allocation2 + $0xb8] sm:$0xf] }
 0x16c   : > { %7730 = vmatprep.mubr.msk.bf16.mxu1 %vm2026_vm8, %v7045_v20  ;;  %v1847_v22 = vrot.slane %v1845_v40, 5  ;;  %v1911_v23 = vshrl.u32 %v9028_v38, 16  ;;  %v7083_v29 = vcombine.low %v1558_v55, %v9028_v38  ;;  %v1856_v1 = vor.u32 %v1855_v53, %v1852_v44 }
 0x16d   : > { %v1824_v14 = vsel %vm8523_vm11, %v1819_v39, %v1823_v5  ;;  %v1838_v59 = vsel %vm8523_vm11, %v1833_v16, %v1837_v32  ;;  %v1842_v31 = vor.u32 %v1841_v42, %v1837_v32  ;;  %v1900_v36 = vrot.slane %v1898_v45, 4  ;;  %v1562_v5 = vld [vmem:[#allocation2 + $0xb4] sm:$0xf] }
 0x16e   : > { %v7046_v26 = vcombine.low %v1814_v11, %v1824_v14  ;;  %v1903_v49 = vrot.slane %v1901_v63, 5  ;;  %7773 = vmatmul.mubr.msk.bf16.gmra.mxu0 %vm2026_vm8, %v7083_v29  ;;  %v1857_v41 = vrot.slane %v1856_v1, 4  ;;  %v1859_v56 = vshll.u32 %v8983_v54, 16 }
 0x16f   : > { %v1843_v44 = vrot.slane %v1842_v31, 4  ;;  %v1865_v53 = vrot.slane %v1863_v37, 4  ;;  %v1869_v30 = vshll.u32 %v9034_v17, 16  ;;  %v1922_v62 = vshrl.u32 %v1560_v2, 16 }
 0x170   : > { %7731 = vmatmul.mubr.msk.bf16.gmra.mxu1 %vm2026_vm8, %v7046_v26  ;;  %v1861_v0 = vrot.slane %v1859_v56, 5  ;;  %v1925_v55 = vshll.u32 %v1560_v2, 16  ;;  %v1935_v57 = vshrl.u32 %v9040_v9, 16  ;;  %v7084_v11 = vcombine.low %v1560_v2, %v9040_v9  ;;  %v9062_v26 = vld [vmem:[#allocation2 + $0xa4] sm:$0x1] }
 0x171   : > { %v1848_v46 = vsel %vm8523_vm11, %v1843_v44, %v1847_v22  ;;  %v1871_v20 = vrot.slane %v1869_v30, 5  ;;  %v1924_v16 = vrot.slane %v1922_v62, 4  ;;  %v1880_v37 = vor.u32 %v1879_v58, %v1876_v19  ;;  %v8165_v30 = vld [vmem:[#allocation2 + $0xc] sm:$0xff]  }
 0x172   : > { %v7047_v42 = vcombine.low %v1838_v59, %v1848_v46  ;;  %v1862_v40 = vsel %vm8523_vm11, %v1857_v41, %v1861_v0  ;;  %v1866_v39 = vor.u32 %v1865_v53, %v1861_v0  ;;  %v1927_v32 = vrot.slane %v1925_v55, 5  ;;  %7776 = vmatprep.mubr.msk.bf16.mxu0 %vm2026_vm8, %v7084_v11  ;;  %v9067_v62 = vld [vmem:[#allocation2 + $0xb0] sm:$0x1] }
 0x173   : > { %v1881_v45 = vrot.slane %v1880_v37, 4  ;;  %v1883_v63 = vshll.u32 %v9008_v28, 16  ;;  %v1889_v29 = vrot.slane %v1887_v61, 4  ;;  %v1893_v1 = vshll.u32 %v9044_v52, 16 }
 0x174   : > { %7734 = vmatprep.mubr.msk.bf16.mxu1 %vm2026_vm8, %v7047_v42  ;;  %v1867_v22 = vrot.slane %v1866_v39, 4  ;;  %v1946_v2 = vshrl.u32 %v1562_v5, 16  ;;  %v1949_v14 = vshll.u32 %v1562_v5, 16  ;;  %v1959_v19 = vshrl.u32 %v9050_v34, 16 }
 0x175   : > { %v1885_v58 = vrot.slane %v1883_v63, 5  ;;  %v1895_v59 = vrot.slane %v1893_v1, 5  ;;  %v7085_v31 = vcombine.low %v1562_v5, %v9050_v34  ;;  %v1904_v41 = vor.u32 %v1903_v49, %v1900_v36 }
 0x176   : > { %v1872_v61 = vsel %vm8523_vm11, %v1867_v22, %v1871_v20  ;;  %v1948_v56 = vrot.slane %v1946_v2, 4  ;;  %v1951_v44 = vrot.slane %v1949_v14, 5  ;;  %v1907_v53 = vshll.u32 %v9028_v38, 16  ;;  %v2531_v14 = vld [vmem:[#allocation2] sm:$0xe] }
 0x177   : > { %v7048_v0 = vcombine.low %v1862_v40, %v1872_v61  ;;  %v1886_v55 = vsel %vm8523_vm11, %v1881_v45, %v1885_v58  ;;  %v1890_v11 = vor.u32 %v1889_v29, %v1885_v58  ;;  %7777 = vmatmul.mubr.msk.bf16.gmra.mxu0 %vm2026_vm8, %v7085_v31  ;;  %v1905_v5 = vrot.slane %v1904_v41, 4  ;;  %v2532_v61 = vld [vmem:[#allocation2 + $0xc] sm:$0xe] }
 0x178   : > { %v1909_v46 = vrot.slane %v1907_v53, 5  ;;  %v1913_v36 = vrot.slane %v1911_v23, 4  ;;  %v1917_v49 = vshll.u32 %v9062_v26, 16  ;;  %7816 = vmatprep.mubr.msk.bf16.mxu0 %vm2026_vm8, %v8165_v30  ;;  %v1928_v20 = vor.u32 %v1927_v32, %v1924_v16  ;;  %v9081_v23 = vld [vmem:[#allocation2 + $0xbc] sm:$0x1] }
 0x179   : > { %7735 = vmatmul.mubr.msk.bf16.gmra.mxu1 %vm2026_vm8, %v7048_v0  ;;  %v1891_v37 = vrot.slane %v1890_v11, 4  ;;  %v1931_v42 = vshll.u32 %v9040_v9, 16  ;;  %v1937_v40 = vrot.slane %v1935_v57, 4  ;;  %v1941_v39 = vshll.u32 %v9067_v62, 16  ;;  %v8167_v0 = vld [vmem:[#allocation2 + $0x18] sm:$0xff]  }
 0x17a   : > { %v1910_v45 = vsel %vm8523_vm11, %v1905_v5, %v1909_v46  ;;  %v1914_v63 = vor.u32 %v1913_v36, %v1909_v46  ;;  %v1919_v29 = vrot.slane %v1917_v49, 5  ;;  %v1929_v1 = vrot.slane %v1928_v20, 4  ;;  %v8206_v46 = vld [vmem:[#allocation2 + $0x4] sm:$0xf] }
 0x17b   : > { %v1896_v22 = vsel %vm8523_vm11, %v1891_v37, %v1895_v59  ;;  %v1933_v16 = vrot.slane %v1931_v42, 5  ;;  %v1943_v32 = vrot.slane %v1941_v39, 5  ;;  %v1952_v2 = vor.u32 %v1951_v44, %v1948_v56  ;;  %v8168_v44 = vld [vmem:[#allocation2 + $0x24] sm:$0xff]  }
 0x17c   : > { %v7049_v58 = vcombine.low %v1886_v55, %v1896_v22  ;;  %v1915_v31 = vrot.slane %v1914_v63, 4  ;;  %v1955_v57 = vshll.u32 %v9050_v34, 16  ;;  %v1961_v41 = vrot.slane %v1959_v19, 4  ;;  %v2533_v19 = vld [vmem:[#allocation2 + $0x18] sm:$0xe] }
 0x17d   : > { %v1934_v53 = vsel %vm8523_vm11, %v1929_v1, %v1933_v16  ;;  %v1938_v30 = vor.u32 %v1937_v40, %v1933_v16  ;;  %v1953_v11 = vrot.slane %v1952_v2, 4  ;;  %v1965_v5 = vshll.u32 %v9081_v23, 16  ;;  %v8207_v22 = vld [vmem:[#allocation2 + $0x10] sm:$0xf] }
 0x17e   : > { %7738 = vmatprep.mubr.msk.bf16.mxu1 %vm2026_vm8, %v7049_v58  ;;  %v1920_v59 = vsel %vm8523_vm11, %v1915_v31, %v1919_v29  ;;  %v1957_v56 = vrot.slane %v1955_v57, 5  ;;  %v7103_v55 = vrot.slane %v2531_v14, 9  ;;  %v2584_v36 = vrot.slane %v8206_v46, 5  ;;  %v8208_v14 = vld [vmem:[#allocation2 + $0x1c] sm:$0xf] }
 0x17f   : > { %v7050_v49 = vcombine.low %v1910_v45, %v1920_v59  ;;  %v1939_v20 = vrot.slane %v1938_v30, 4  ;;  %7817 = vmatmul.mubr.msk.bf16.vlgmr.msra.gmra.mxu0 %vm2026_vm8, %v8167_v0  ;;  %v1967_v37 = vrot.slane %v1965_v5, 5  ;;  %v7104_v40 = vrot.slane %v2532_v61, 9  ;;  %v2534_v31 = vld [vmem:[#allocation2 + $0x24] sm:$0xe] }
 0x180   : > { %v1958_v39 = vsel %vm8523_vm11, %v1953_v11, %v1957_v56  ;;  %v1962_v63 = vor.u32 %v1961_v41, %v1957_v56  ;;  %7820 = vmatprep.mubr.msk.bf16.mxu0 %vm2026_vm8, %v8168_v44  ;;  %v2585_v45 = vsel %vm9095_vm3, %v7103_v55, %v2584_v36  ;;  %v2586_v29 = vrot.slane %v2584_v36, 4  ;;  %7883 = vmatpush3.bf16.msra.mxu0 %v8877_v43  ;;  %v8209_v30 = vld [vmem:[#allocation2 + $0x20] sm:$0x1]  ;;  %v2535_v0 = vld [vmem:[#allocation2 + $0x30] sm:$0xe] }
 0x181   : > { %7739 = vmatmul.mubr.msk.bf16.gmra.mxu1 %vm2026_vm8, %v7050_v49  ;;  %v1944_v1 = vsel %vm8523_vm11, %v1939_v20, %v1943_v32  ;;  %v2591_v16 = vrot.slane %v8207_v22, 5  ;;  %v7105_v2 = vrot.slane %v2533_v19, 9  ;;  %v2598_v58 = vrot.slane %v8208_v14, 5  ;;  %v9115_v32 = vld [vmem:[%s11408_s4 + $0x38] sm:$0xff]   ;;  %v8210_v44 = vld [vmem:[#allocation2 + $0x28] sm:$0xf] }
 0x182   : > { %v7051_v57 = vcombine.low %v1934_v53, %v1944_v1  ;;  %v1963_v41 = vrot.slane %v1962_v63, 4  ;;  %v2588_v61 = vsel %vm9095_vm3, %v2586_v29, %v2587_v12  ;;  %v2601_v43 = vrot.slane %v8209_v30, 5  ;;  %v2536_v46 = vld [vmem:[#allocation2 + $0x3c] sm:$0xe]  ;;  %7950 = vmatprep.subr.bf16.mxu0 %v9115_v32  ;;  %v8169_v19 = vld [vmem:[#allocation2 + $0x30] sm:$0xff]  }
 0x183   : > { %v7121_v11 = vcombine.low %v2585_v45, %v2588_v61  ;;  %v9119_v5 = vsel %vm9095_vm3, %v7104_v40, %v2591_v16  ;;  %v2593_v53 = vrot.slane %v2591_v16, 4  ;;  %v9123_v7 = vsel %vm9095_vm3, %v7105_v2, %v2598_v58  ;;  %v2537_v63 = vld [vmem:[#allocation2 + $0x48] sm:$0xe]  ;;  %v8171_v45 = vld [vmem:[#allocation2 + $0x3c] sm:$0xff]   ;;  %v2538_v2 = vld [vmem:[#allocation2 + $0x54] sm:$0xe] }
 0x184   : > { %7742 = vmatprep.mubr.msk.bf16.mxu1 %vm2026_vm8, %v7051_v57  ;;  %v1968_v12 = vsel %vm8523_vm11, %v1963_v41, %v1967_v37  ;;  %v2600_v59 = vrot.slane %v2598_v58, 4  ;;  %v7106_v56 = vrot.slane %v2534_v31, 9  ;;  %v2605_v55 = vrot.slane %v8210_v44, 5 }
 0x185   : > { %v7052_v36 = vcombine.low %v1958_v39, %v1968_v12  ;;  %v9133_v49 = vsel %vm9095_vm3, %v2593_v53, %v2594_v25  ;;  %v2608_v20 = vrot.slane %v8804_v60, 5  ;;  %v7107_v40 = vrot.slane %v2535_v0, 9  ;;  %v8211_v60 = vld [vmem:[#allocation2 + $0x34] sm:$0xf] }
 0x186   : > { %v7122_v37 = vcombine.low %v9119_v5, %v9133_v49  ;;  %v9140_v29 = vsel %vm9095_vm3, %v2600_v59, %v2601_v43  ;;  %v9144_v39 = vsel %vm9095_vm3, %v7106_v56, %v2605_v55  ;;  %v2607_v8 = vrot.slane %v2605_v55, 4  ;;  %v2539_v43 = vld [vmem:[#allocation2 + $0x60] sm:$0xe]  ;;  %v2541_v55 = vld [vmem:[#allocation2 + $0x78] sm:$0xe] }
 0x187   : > { %7821 = vmatmul.mubr.msk.bf16.gmra.mxu0 %vm2026_vm8, %v8169_v19  ;;  %v7123_v25 = vcombine.low %v9123_v7, %v9140_v29  ;;  %v2612_v1 = vrot.slane %v8211_v60, 5  ;;  %v2615_v22 = vrot.slane %v8831_v51, 5  ;;  %v7108_v16 = vrot.slane %v2536_v46, 9  ;;  %v8172_v46 = vld [vmem:[#allocation2 + $0x48] sm:$0xff]   ;;  %v2542_v29 = vld [vmem:[#allocation2 + $0x84] sm:$0xe] }
 0x188   : > { %7824 = vmatprep.mubr.msk.bf16.mxu0 %vm2026_vm8, %v8171_v45  ;;  %v9153_v14 = vsel %vm9095_vm3, %v2607_v8, %v2608_v20  ;;  %v2619_v58 = vrot.slane %v8786_v33, 5  ;;  %v2622_v31 = vrot.slane %v8889_v13, 5  ;;  %v7109_v57 = vrot.slane %v2537_v63, 9  ;;  %v8173_v20 = vld [vmem:[#allocation2 + $0x54] sm:$0xff]  }
 0x189   : > { %7743 = vmatmul.mubr.msk.bf16.gmra.mxu1 %vm2026_vm8, %v7052_v36  ;;  %v7124_v41 = vcombine.low %v9144_v39, %v9153_v14  ;;  %v9162_v51 = vsel %vm9095_vm3, %v7107_v40, %v2612_v1  ;;  %v2614_v61 = vrot.slane %v2612_v1, 4  ;;  %v2626_v30 = vrot.slane %v8807_v27, 5  ;;  %v8179_v39 = vld [vmem:[#allocation2 + $0x9c] sm:$0xff]  }
 0x18a   : > { %7782 = vmatprep.mubr.msk.bf16.mxu1 %vm2026_vm8, %v7121_v11  ;;  %v9168_v33 = vsel %vm9095_vm3, %v7108_v16, %v2619_v58  ;;  %v2621_v13 = vrot.slane %v2619_v58, 4  ;;  %v2629_v0 = vrot.slane %v8921_v50, 5  ;;  %v7110_v5 = vrot.slane %v2538_v2, 9  ;;  %v2540_v11 = vld [vmem:[#allocation2 + $0x6c] sm:$0xe]  ;;  %v9211_v16 = vld [vmem:[%s11408_s4 + $0x30] sm:$0xff]  }
 0x18b   : > { %v9173_v53 = vsel %vm9095_vm3, %v2614_v61, %v2615_v22  ;;  %v9177_v7 = vsel %vm9095_vm3, %v7109_v57, %v2626_v30  ;;  %v2628_v27 = vrot.slane %v2626_v30, 4  ;;  %v2633_v12 = vrot.slane %v8869_v48, 5  ;;  %v2543_v58 = vld [vmem:[#allocation2 + $0x90] sm:$0xe]  ;;  %v8212_v30 = vld [vmem:[%s11408_s4 + $0x20] sm:$0xff]  }
 0x18c   : > { %v7125_v59 = vcombine.low %v9162_v51, %v9173_v53  ;;  %v9184_v56 = vsel %vm9095_vm3, %v2621_v13, %v2622_v31  ;;  %v2636_v50 = vrot.slane %v8959_v10, 5  ;;  %v7111_v44 = vrot.slane %v2539_v43, 9 }
 0x18d   : > { %v7126_v36 = vcombine.low %v9168_v33, %v9184_v56  ;;  %v9191_v19 = vsel %vm9095_vm3, %v2628_v27, %v2629_v0  ;;  %v9195_v48 = vsel %vm9095_vm3, %v7110_v5, %v2633_v12  ;;  %v2635_v49 = vrot.slane %v2633_v12, 4  ;;  %v4084_v12 = vld [vmem:[#allocation2 + $0xc] sm:$0xe] }
 0x18e   : > { %v7127_v40 = vcombine.low %v9177_v7, %v9191_v19  ;;  %v2640_v10 = vrot.slane %v8900_v6, 5  ;;  %v2643_v63 = vrot.slane %v8974_v4, 5  ;;  %v7112_v45 = vrot.slane %v2540_v11, 9 }
 0x18f   : > { %7825 = vmatmul.mubr.msk.bf16.gmra.mxu0 %vm2026_vm8, %v8172_v46  ;;  %v9204_v8 = vsel %vm9095_vm3, %v2635_v49, %v2636_v50  ;;  %v2647_v60 = vrot.slane %v8941_v24, 5  ;;  %v2650_v1 = vrot.slane %v9001_v3, 5  ;;  %v7113_v22 = vrot.slane %v2541_v55, 9  ;;  %v9258_v55 = vld [vmem:[#allocation2 + $0x10] sm:$0xf] }
 0x190   : > { %7828 = vmatprep.mubr.msk.bf16.mxu0 %vm2026_vm8, %v8173_v20  ;;  %v7128_v6 = vcombine.low %v9195_v48, %v9204_v8  ;;  %v9218_v4 = vsel %vm9095_vm3, %v7111_v44, %v2640_v10  ;;  %v2642_v2 = vrot.slane %v2640_v10, 4  ;;  %v2654_v24 = vrot.slane %v8968_v35, 5  ;;  %v9260_v46 = vld [vmem:[#allocation2 + $0x14] sm:$0x1] }
 0x191   : > { %7783 = vmatmul.mubr.msk.bf16.vlgmr.msra.gmra.mxu1 %vm2026_vm8, %v7122_v37  ;;  %v9224_v3 = vsel %vm9095_vm3, %v7112_v45, %v2647_v60  ;;  %v2649_v31 = vrot.slane %v2647_v60, 4  ;;  %v2657_v57 = vrot.slane %v9017_v47, 5  ;;  %v7114_v61 = vrot.slane %v2542_v29, 9  ;;  %v2544_v47 = vld [vmem:[#allocation2 + $0x9c] sm:$0xe]  ;;  %v8175_v29 = vld [vmem:[#allocation2 + $0x6c] sm:$0xff]  }
 0x192   : > { %7849 = vmatpush3.bf16.msra.mxu1 %v8212_v30  ;;  %7786 = vmatprep.mubr.msk.bf16.mxu1 %vm2026_vm8, %v7123_v25  ;;  %v9233_v35 = vsel %vm9095_vm3, %v2642_v2, %v2643_v63  ;;  %v9237_v37 = vsel %vm9095_vm3, %v7113_v22, %v2654_v24  ;;  %v2656_v43 = vrot.slane %v2654_v24, 4  ;;  %v2661_v13 = vrot.slane %v8983_v54, 5  ;;  %v2545_v45 = vld [vmem:[#allocation2 + $0xa8] sm:$0xe]  ;;  %v9286_v30 = vld [vmem:[#allocation2 + $0x1c] sm:$0xf] }
 0x193   : > { %v7129_v0 = vcombine.low %v9218_v4, %v9233_v35  ;;  %v9244_v5 = vsel %vm9095_vm3, %v2649_v31, %v2650_v1  ;;  %v2664_v25 = vrot.slane %v9034_v17, 5  ;;  %v7115_v27 = vrot.slane %v2543_v58, 9  ;;  %7916 = vmatprep.subr.bf16.mxu1 %v9211_v16  ;;  %v8174_v17 = vld [vmem:[#allocation2 + $0x60] sm:$0xff]   ;;  %v4085_v31 = vld [vmem:[#allocation2 + $0x18] sm:$0xe] }
 0x194   : > { %v7130_v11 = vcombine.low %v9224_v3, %v9244_v5  ;;  %v9252_v54 = vsel %vm9095_vm3, %v2656_v43, %v2657_v57  ;;  %v9256_v50 = vsel %vm9095_vm3, %v7114_v61, %v2661_v13  ;;  %v2663_v44 = vrot.slane %v2661_v13, 4  ;;  %v4090_v5 = vld [vmem:[#allocation2 + $0x54] sm:$0xe] }
 0x195   : > { %v7131_v49 = vcombine.low %v9237_v37, %v9252_v54  ;;  %v2668_v20 = vrot.slane %v9008_v28, 5  ;;  %v2671_v10 = vrot.slane %v9044_v52, 5  ;;  %v7116_v63 = vrot.slane %v2544_v47, 9 }
 0x196   : > { %v9268_v60 = vsel %vm9095_vm3, %v2663_v44, %v2664_v25  ;;  %v2675_v1 = vrot.slane %v9028_v38, 5  ;;  %v2678_v22 = vrot.slane %v9062_v26, 5  ;;  %v7224_v2 = vrot.slane %v4084_v12, 9  ;;  %v2546_v12 = vld [vmem:[#allocation2 + $0xb4] sm:$0xe] }
 0x197   : > { %7829 = vmatmul.mubr.msk.bf16.gmra.mxu0 %vm2026_vm8, %v8174_v17  ;;  %v9277_v28 = vsel %vm9095_vm3, %v7115_v27, %v2668_v20  ;;  %v2670_v52 = vrot.slane %v2668_v20, 4  ;;  %v4150_v58 = vrot.slane %v9258_v55, 5  ;;  %v4153_v57 = vrot.slane %v9260_v46, 5  ;;  %v9301_v27 = vld [vmem:[#allocation2 + $0x20] sm:$0x1] }
 0x198   : > { %7832 = vmatprep.mubr.msk.bf16.mxu0 %vm2026_vm8, %v8175_v29  ;;  %v9283_v38 = vsel %vm9095_vm3, %v7116_v63, %v2675_v1  ;;  %v2677_v26 = vrot.slane %v2675_v1, 4  ;;  %v7117_v61 = vrot.slane %v2545_v45, 9  ;;  %v2682_v25 = vrot.slane %v9040_v9, 5  ;;  %v4086_v17 = vld [vmem:[#allocation2 + $0x24] sm:$0xe] }
 0x199   : > { %7787 = vmatmul.mubr.msk.bf16.gmra.mxu1 %vm2026_vm8, %v7124_v41  ;;  %v9294_v43 = vsel %vm9095_vm3, %v2670_v52, %v2671_v10  ;;  %v9298_v13 = vsel %vm9095_vm3, %v7224_v2, %v4150_v58  ;;  %v4152_v47 = vrot.slane %v4150_v58, 4  ;;  %v2685_v41 = vrot.slane %v9067_v62, 5  ;;  %v3354_v10 = vld [vmem:[#allocation2 + $0xc] sm:$0xf]  ;;  %v4088_v9 = vld [vmem:[#allocation2 + $0x3c] sm:$0xe] }
 0x19a   : > { %7790 = vmatprep.mubr.msk.bf16.mxu1 %vm2026_vm8, %v7125_v59  ;;  %v9311_v14 = vsel %vm9095_vm3, %v2677_v26, %v2678_v22  ;;  %v7225_v44 = vrot.slane %v4085_v31, 9  ;;  %v9322_v51 = vsel %vm9095_vm3, %v7117_v61, %v2682_v25  ;;  %v2684_v53 = vrot.slane %v2682_v25, 4  ;;  %v9324_v59 = vld [vmem:[#allocation2 + $0x28] sm:$0xf]  ;;  %v9330_v1 = vld [vmem:[#allocation2 + $0x2c] sm:$0x1] }
 0x19b   : > { %v9318_v20 = vsel %vm9095_vm3, %v4152_v47, %v4153_v57  ;;  %v4157_v63 = vrot.slane %v9286_v30, 5  ;;  %v4160_v45 = vrot.slane %v9301_v27, 5  ;;  %v7118_v29 = vrot.slane %v2546_v12, 9  ;;  %v8176_v22 = vld [vmem:[#allocation2 + $0x78] sm:$0xff]   ;;  %v8177_v26 = vld [vmem:[#allocation2 + $0x84] sm:$0xff]  }
 0x19c   : > { %v7242_v62 = vcombine.low %v9298_v13, %v9318_v20  ;;  %v9334_v2 = vsel %vm9095_vm3, %v2684_v53, %v2685_v41  ;;  %v2689_v52 = vrot.slane %v9050_v34, 5  ;;  %v2692_v58 = vrot.slane %v9081_v23, 5 }
 0x19d   : > { %v7226_v31 = vrot.slane %v4086_v17, 9  ;;  %v9342_v61 = vsel %vm9095_vm3, %v7225_v44, %v4157_v63  ;;  %v4159_v47 = vrot.slane %v4157_v63, 4  ;;  %v4164_v25 = vrot.slane %v9324_v59, 5 }
 0x19e   : > { %v9348_v12 = vsel %vm9095_vm3, %v7118_v29, %v2689_v52  ;;  %v2691_v34 = vrot.slane %v2689_v52, 4  ;;  %v4167_v23 = vrot.slane %v9330_v1, 5  ;;  %v3403_v41 = vshrl.u32 %v3354_v10, 16 }
 0x19f   : > { %7833 = vmatmul.mubr.msk.bf16.gmra.mxu0 %vm2026_vm8, %v8176_v22  ;;  %v9354_v17 = vsel %vm9095_vm3, %v4159_v47, %v4160_v45  ;;  %v9358_v44 = vsel %vm9095_vm3, %v7226_v31, %v4164_v25  ;;  %v4166_v53 = vrot.slane %v4164_v25, 4  ;;  %v3406_v63 = vshll.u32 %v3354_v10, 16  ;;  %v4087_v22 = vld [vmem:[#allocation2 + $0x30] sm:$0xe]  ;;  %v9371_v31 = vld [vmem:[#allocation2 + $0x34] sm:$0xf] }
 0x1a0   : > { %7836 = vmatprep.mubr.msk.bf16.mxu0 %vm2026_vm8, %v8177_v26  ;;  %v9368_v52 = vsel %vm9095_vm3, %v2691_v34, %v2692_v58  ;;  %v3405_v45 = vrot.slane %v3403_v41, 4  ;;  %v3412_v26 = vshll.u32 %v9258_v55, 16  ;;  %v9373_v47 = vld [vmem:[#allocation2 + $0x38] sm:$0x1]  ;;  %v3416_v10 = vshrl.u32 %v9258_v55, 16 }
 0x1a1   : > { %7791 = vmatmul.mubr.msk.bf16.gmra.mxu1 %vm2026_vm8, %v7126_v36  ;;  %v9383_v56 = vsel %vm9095_vm3, %v4166_v53, %v4167_v23  ;;  %v3408_v36 = vrot.slane %v3406_v63, 5  ;;  %v3357_v58 = vld [vmem:[#allocation2 + $0x18] sm:$0xf]  ;;  %v3422_v41 = vshll.u32 %v9260_v46, 16  ;;  %v7227_v7 = vrot.slane %v4087_v22, 9  ;;  %v8178_v23 = vld [vmem:[#allocation2 + $0x90] sm:$0xff]  }
 0x1a2   : > { %7794 = vmatprep.mubr.msk.bf16.mxu1 %vm2026_vm8, %v7127_v40  ;;  %v3414_v34 = vrot.slane %v3412_v26, 5  ;;  %v3418_v40 = vrot.slane %v3416_v10, 4  ;;  %v4171_v57 = vrot.slane %v9371_v31, 5  ;;  %v4174_v33 = vrot.slane %v9373_v47, 5 }
 0x1a3   : > { %v3409_v19 = vor.u32 %v3408_v36, %v3405_v45  ;;  %v3424_v53 = vrot.slane %v3422_v41, 5  ;;  %v3427_v63 = vshrl.u32 %v3357_v58, 16  ;;  %v3430_v29 = vshll.u32 %v3357_v58, 16  ;;  %v9396_v45 = vld [vmem:[#allocation2 + $0x40] sm:$0xf] }
 0x1a4   : > { %v3436_v55 = vshll.u32 %v9286_v30, 16  ;;  %v3419_v25 = vor.u32 %v3418_v40, %v3414_v34  ;;  %v9394_v46 = vsel %vm9095_vm3, %v7227_v7, %v4171_v57  ;;  %v4173_v22 = vrot.slane %v4171_v57, 4  ;;  %v9400_v58 = vld [vmem:[#allocation2 + $0x44] sm:$0x1] }
 0x1a5   : > { %v3410_v24 = vrot.slane %v3409_v19, 4  ;;  %v3429_v26 = vrot.slane %v3427_v63, 4  ;;  %v3432_v36 = vrot.slane %v3430_v29, 5  ;;  %v3440_v41 = vshrl.u32 %v9286_v30, 16 }
 0x1a6   : > { %v3438_v10 = vrot.slane %v3436_v55, 5  ;;  %v3420_v40 = vrot.slane %v3419_v25, 4  ;;  %v9407_v57 = vsel %vm9095_vm3, %v4173_v22, %v4174_v33  ;;  %v3446_v7 = vshll.u32 %v9301_v27, 16  ;;  %v4089_v55 = vld [vmem:[#allocation2 + $0x48] sm:$0xe] }
 0x1a7   : > { %7837 = vmatmul.mubr.msk.bf16.gmra.mxu0 %vm2026_vm8, %v8178_v23  ;;  %v3415_v19 = vsel %vm8523_vm11, %v3410_v24, %v3414_v34  ;;  %v3360_v23 = vld [vmem:[#allocation2 + $0x24] sm:$0xf]  ;;  %v7245_v30 = vcombine.low %v9394_v46, %v9407_v57  ;;  %v3442_v29 = vrot.slane %v3440_v41, 4  ;;  %v7228_v63 = vrot.slane %v4088_v9, 9  ;;  %v8180_v22 = vld [vmem:[#allocation2 + $0xa8] sm:$0xff]  }
 0x1a8   : > { %7840 = vmatprep.mubr.msk.bf16.mxu0 %vm2026_vm8, %v8179_v39  ;;  %v3433_v39 = vor.u32 %v3432_v36, %v3429_v26  ;;  %v3425_v24 = vsel %vm8523_vm11, %v3420_v40, %v3424_v53  ;;  %v3448_v27 = vrot.slane %v3446_v7, 5  ;;  %v4178_v33 = vrot.slane %v9396_v45, 5  ;;  %v3363_v53 = vld [vmem:[#allocation2 + $0x30] sm:$0xf]  ;;  %v9434_v40 = vld [vmem:[#allocation2 + $0x4c] sm:$0xf] }
 0x1a9   : > { %7795 = vmatmul.mubr.msk.bf16.gmra.mxu1 %vm2026_vm8, %v7128_v6  ;;  %v4181_v48 = vrot.slane %v9400_v58, 5  ;;  %v9424_v8 = vcombine.low %v3415_v19, %v3425_v24  ;;  %v3443_v25 = vor.u32 %v3442_v29, %v3438_v10  ;;  %v3451_v34 = vshrl.u32 %v3360_v23, 16  ;;  %v8181_v7 = vld [vmem:[#allocation2 + $0xb4] sm:$0xff]   ;;  %v9441_v24 = vld [vmem:[#allocation2 + $0x50] sm:$0x1] }
 0x1aa   : > { %7798 = vmatprep.mubr.msk.bf16.mxu1 %vm2026_vm8, %v7129_v0  ;;  %v3434_v6 = vrot.slane %v3433_v39, 4  ;;  %v9428_v9 = vsel %vm9095_vm3, %v7228_v63, %v4178_v33  ;;  %v4180_v4 = vrot.slane %v4178_v33, 4  ;;  %v3454_v35 = vshll.u32 %v3360_v23, 16 }
 0x1ab   : > { %v3460_v0 = vshll.u32 %v9324_v59, 16  ;;  %v3444_v36 = vrot.slane %v3443_v25, 4  ;;  %v3453_v41 = vrot.slane %v3451_v34, 4  ;;  %v3464_v19 = vshrl.u32 %v9324_v59, 16 }
 0x1ac   : > { %v3439_v26 = vsel %vm8523_vm11, %v3434_v6, %v3438_v10  ;;  %v9438_v39 = vsel %vm9095_vm3, %v4180_v4, %v4181_v48  ;;  %v3456_v23 = vrot.slane %v3454_v35, 5  ;;  %v3470_v63 = vshll.u32 %v9330_v1, 16 }
 0x1ad   : > { %v3462_v29 = vrot.slane %v3460_v0, 5  ;;  %v3449_v10 = vsel %vm8523_vm11, %v3444_v36, %v3448_v27  ;;  %v7246_v59 = vcombine.low %v9428_v9, %v9438_v39  ;;  %v3466_v33 = vrot.slane %v3464_v19, 4 }
 0x1ae   : > { %v7229_v6 = vrot.slane %v4089_v55, 9  ;;  %v9449_v48 = vcombine.low %v3439_v26, %v3449_v10  ;;  %v3457_v25 = vor.u32 %v3456_v23, %v3453_v41  ;;  %v3472_v34 = vrot.slane %v3470_v63, 5  ;;  %v9476_v23 = vld [vmem:[#allocation2 + $0x5c] sm:$0x1]  ;;  %v8182_v10 = vld [vmem:[#allocation2 + $0xc0] sm:$0xff]  }
 0x1af   : > { %7841 = vmatmul.mubr.msk.bf16.gmra.mxu0 %vm2026_vm8, %v8180_v22  ;;  %v4185_v1 = vrot.slane %v9434_v40, 5  ;;  %v3467_v4 = vor.u32 %v3466_v33, %v3462_v29  ;;  %v4188_v27 = vrot.slane %v9441_v24, 5  ;;  %v3475_v35 = vshrl.u32 %v3363_v53, 16  ;;  %v3366_v63 = vld [vmem:[#allocation2 + $0x3c] sm:$0xf] }
 0x1b0   : > { %7844 = vmatprep.mubr.msk.bf16.mxu0 %vm2026_vm8, %v8181_v7  ;;  %v3478_v0 = vshll.u32 %v3363_v53, 16  ;;  %v3458_v55 = vrot.slane %v3457_v25, 4  ;;  %v3484_v3 = vshll.u32 %v9371_v31, 16  ;;  %v3488_v19 = vshrl.u32 %v9371_v31, 16  ;;  %v9467_v53 = vld [vmem:[#allocation2 + $0x58] sm:$0xf] }
 0x1b1   : > { %7799 = vmatmul.mubr.msk.bf16.gmra.mxu1 %vm2026_vm8, %v7130_v11  ;;  %v9463_v22 = vsel %vm9095_vm3, %v7229_v6, %v4185_v1  ;;  %v4187_v26 = vrot.slane %v4185_v1, 4  ;;  %v3468_v11 = vrot.slane %v3467_v4, 4  ;;  %v3477_v36 = vrot.slane %v3475_v35, 4 }
 0x1b2   : > { %7802 = vmatprep.mubr.msk.bf16.mxu1 %vm2026_vm8, %v7131_v49  ;;  %v3480_v41 = vrot.slane %v3478_v0, 5  ;;  %v3463_v37 = vsel %vm8523_vm11, %v3458_v55, %v3462_v29  ;;  %v3486_v49 = vrot.slane %v3484_v3, 5  ;;  %v3494_v7 = vshll.u32 %v9373_v47, 16 }
 0x1b3   : > { %v9473_v54 = vsel %vm9095_vm3, %v4187_v26, %v4188_v27  ;;  %v3473_v33 = vsel %vm8523_vm11, %v3468_v11, %v3472_v34  ;;  %v3490_v25 = vrot.slane %v3488_v19, 4  ;;  %v7230_v4 = vrot.slane %v4090_v5, 9  ;;  %v4091_v11 = vld [vmem:[#allocation2 + $0x60] sm:$0xe] }
 0x1b4   : > { %v7247_v31 = vcombine.low %v9463_v22, %v9473_v54  ;;  %v3481_v6 = vor.u32 %v3480_v41, %v3477_v36  ;;  %v9482_v29 = vcombine.low %v3463_v37, %v3473_v33  ;;  %v3496_v1 = vrot.slane %v3494_v7, 5  ;;  %v3369_v36 = vld [vmem:[#allocation2 + $0x48] sm:$0xf]  ;;  %v9503_v37 = vld [vmem:[#allocation2 + $0x64] sm:$0xf] }
 0x1b5   : > { %v4192_v27 = vrot.slane %v9467_v53, 5  ;;  %v3491_v35 = vor.u32 %v3490_v25, %v3486_v49  ;;  %v4195_v0 = vrot.slane %v9476_v23, 5  ;;  %v3499_v55 = vshrl.u32 %v3366_v63, 16 }
 0x1b6   : > { %v3482_v47 = vrot.slane %v3481_v6, 4  ;;  %v3502_v3 = vshll.u32 %v3366_v63, 16  ;;  %v3508_v5 = vshll.u32 %v9396_v45, 16  ;;  %v11447_v41 = vcombine.low %v9256_v50, %v9268_v60 }
 0x1b7   : > { %7845 = vmatmul.mubr.msk.bf16.gmra.mxu0 %vm2026_vm8, %v8182_v10  ;;  %v9493_v34 = vsel %vm9095_vm3, %v7230_v4, %v4192_v27  ;;  %v4194_v26 = vrot.slane %v4192_v27, 4  ;;  %v3492_v20 = vrot.slane %v3491_v35, 4  ;;  %v3512_v19 = vshrl.u32 %v9396_v45, 16 }
 0x1b8   : > { %7884 = vmatprep.mubr.msk.bf16.mxu0 %vm2026_vm8, %v7242_v62  ;;  %v3487_v13 = vsel %vm8523_vm11, %v3482_v47, %v3486_v49  ;;  %v3501_v62 = vrot.slane %v3499_v55, 4  ;;  %v11448_v7 = vcombine.low %v9277_v28, %v9294_v43  ;;  %v3504_v50 = vrot.slane %v3502_v3, 5  ;;  %v9514_v49 = vld [vmem:[#allocation2 + $0x68] sm:$0x1] }
 0x1b9   : > { %7803 = vmatmul.mubr.msk.bf16.gmra.mxu1 %vm2026_vm8, %v11447_v41  ;;  %v9511_v63 = vsel %vm9095_vm3, %v4194_v26, %v4195_v0  ;;  %v3510_v60 = vrot.slane %v3508_v5, 5  ;;  %v3518_v10 = vshll.u32 %v9400_v58, 16  ;;  %v3497_v45 = vsel %vm8523_vm11, %v3492_v20, %v3496_v1  ;;  %v4092_v5 = vld [vmem:[#allocation2 + $0x6c] sm:$0xe] }
 0x1ba   : > { %7806 = vmatprep.mubr.msk.bf16.mxu1 %vm2026_vm8, %v11448_v7  ;;  %v7248_v33 = vcombine.low %v9493_v34, %v9511_v63  ;;  %v3514_v6 = vrot.slane %v3512_v19, 4  ;;  %v7231_v28 = vrot.slane %v4091_v11, 9  ;;  %v9520_v43 = vcombine.low %v3487_v13, %v3497_v45 }
 0x1bb   : > { %v3505_v25 = vor.u32 %v3504_v50, %v3501_v62  ;;  %v3520_v4 = vrot.slane %v3518_v10, 5  ;;  %v4199_v27 = vrot.slane %v9503_v37, 5  ;;  %v4202_v35 = vrot.slane %v9514_v49, 5  ;;  %v9547_v10 = vld [vmem:[#allocation2 + $0x74] sm:$0x1] }
 0x1bc   : > { %v3515_v47 = vor.u32 %v3514_v6, %v3510_v60  ;;  %v3523_v58 = vshrl.u32 %v3369_v36, 16  ;;  %v3526_v0 = vshll.u32 %v3369_v36, 16  ;;  %v3532_v3 = vshll.u32 %v9434_v40, 16  ;;  %v9534_v36 = vld [vmem:[#allocation2 + $0x70] sm:$0xf] }
 0x1bd   : > { %v3506_v55 = vrot.slane %v3505_v25, 4  ;;  %v9526_v1 = vsel %vm9095_vm3, %v7231_v28, %v4199_v27  ;;  %v4201_v26 = vrot.slane %v4199_v27, 4  ;;  %v11449_v11 = vcombine.low %v9342_v61, %v9354_v17 }
 0x1be   : > { %v3516_v41 = vrot.slane %v3515_v47, 4  ;;  %v3525_v13 = vrot.slane %v3523_v58, 4  ;;  %v3528_v20 = vrot.slane %v3526_v0, 5  ;;  %v3536_v62 = vshrl.u32 %v9434_v40, 16  ;;  %v3372_v40 = vld [vmem:[#allocation2 + $0x54] sm:$0xf] }
 0x1bf   : > { %7885 = vmatmul.mubr.msk.bf16.vlgmr.msra.gmra.mxu0 %vm2026_vm8, %v11449_v11  ;;  %v11450_v19 = vcombine.low %v9358_v44, %v9383_v56  ;;  %v3511_v7 = vsel %vm8523_vm11, %v3506_v55, %v3510_v60  ;;  %v9544_v61 = vsel %vm9095_vm3, %v4201_v26, %v4202_v35  ;;  %v3534_v17 = vrot.slane %v3532_v3, 5  ;;  %v3375_v55 = vld [vmem:[#allocation2 + $0x60] sm:$0xf] }
 0x1c0   : > { %v3542_v50 = vshll.u32 %v9441_v24, 16  ;;  %7951 = vmatpush3.bf16.msra.mxu0 %v9115_v32  ;;  %v11451_v44 = vcombine.low %v9283_v38, %v9311_v14  ;;  %v3521_v56 = vsel %vm8523_vm11, %v3516_v41, %v3520_v4  ;;  %v7249_v60 = vcombine.low %v9526_v1, %v9544_v61  ;;  %v9574_v41 = vld [vmem:[#allocation2 + $0x7c] sm:$0xf] }
 0x1c1   : > { %7888 = vmatprep.mubr.msk.bf16.mxu0 %vm2026_vm8, %v11450_v19  ;;  %v3529_v45 = vor.u32 %v3528_v20, %v3525_v13  ;;  %v3538_v6 = vrot.slane %v3536_v62, 4  ;;  %v11452_v24 = vcombine.low %v9322_v51, %v9334_v2  ;;  %v9562_v28 = vcombine.low %v3511_v7, %v3521_v56  ;;  %v4093_v2 = vld [vmem:[#allocation2 + $0x78] sm:$0xe]  ;;  %v9581_v7 = vld [vmem:[#allocation2 + $0x80] sm:$0x1] }
 0x1c2   : > { %7807 = vmatmul.mubr.msk.bf16.gmra.mxu1 %vm2026_vm8, %v11451_v44  ;;  %v3544_v32 = vrot.slane %v3542_v50, 5  ;;  %v7232_v25 = vrot.slane %v4092_v5, 9  ;;  %v4206_v38 = vrot.slane %v9534_v36, 5  ;;  %v4209_v4 = vrot.slane %v9547_v10, 5 }
 0x1c3   : > { %7810 = vmatprep.mubr.msk.bf16.mxu1 %vm2026_vm8, %v11452_v24  ;;  %v3530_v14 = vrot.slane %v3529_v45, 4  ;;  %v3539_v27 = vor.u32 %v3538_v6, %v3534_v17  ;;  %v3547_v47 = vshrl.u32 %v3372_v40, 16  ;;  %v3550_v0 = vshll.u32 %v3372_v40, 16 }
 0x1c4   : > { %v9568_v35 = vsel %vm9095_vm3, %v7232_v25, %v4206_v38  ;;  %v4208_v58 = vrot.slane %v4206_v38, 4  ;;  %v3556_v51 = vshll.u32 %v9467_v53, 16  ;;  %v3560_v11 = vshrl.u32 %v9467_v53, 16  ;;  %v4094_v25 = vld [vmem:[#allocation2 + $0x84] sm:$0xe] }
 0x1c5   : > { %v3535_v26 = vsel %vm8523_vm11, %v3530_v14, %v3534_v17  ;;  %v3540_v3 = vrot.slane %v3539_v27, 4  ;;  %v3549_v5 = vrot.slane %v3547_v47, 4  ;;  %v3552_v20 = vrot.slane %v3550_v0, 5  ;;  %v9611_v27 = vld [vmem:[#allocation2 + $0x88] sm:$0xf] }
 0x1c6   : > { %v9578_v13 = vsel %vm9095_vm3, %v4208_v58, %v4209_v4  ;;  %v3558_v62 = vrot.slane %v3556_v51, 5  ;;  %v3566_v19 = vshll.u32 %v9476_v23, 16  ;;  %v3562_v50 = vrot.slane %v3560_v11, 4  ;;  %v9620_v0 = vld [vmem:[#allocation2 + $0x8c] sm:$0x1] }
 0x1c7   : > { %7889 = vmatmul.mubr.msk.bf16.gmra.mxu0 %vm2026_vm8, %v7245_v30  ;;  %v3545_v53 = vsel %vm8523_vm11, %v3540_v3, %v3544_v32  ;;  %v7250_v17 = vcombine.low %v9568_v35, %v9578_v13  ;;  %v7233_v40 = vrot.slane %v4093_v2, 9  ;;  %v3553_v44 = vor.u32 %v3552_v20, %v3549_v5  ;;  %v3378_v51 = vld [vmem:[#allocation2 + $0x6c] sm:$0xf] }
 0x1c8   : > { %7892 = vmatprep.mubr.msk.bf16.mxu0 %vm2026_vm8, %v7246_v59  ;;  %v9595_v23 = vcombine.low %v3535_v26, %v3545_v53  ;;  %v3568_v56 = vrot.slane %v3566_v19, 5  ;;  %v4213_v46 = vrot.slane %v9574_v41, 5  ;;  %v11453_v57 = vcombine.low %v9348_v12, %v9368_v52 }
 0x1c9   : > { %v3563_v30 = vor.u32 %v3562_v50, %v3558_v62  ;;  %v4216_v45 = vrot.slane %v9581_v7, 5  ;;  %v3571_v6 = vshrl.u32 %v3375_v55, 16  ;;  %v3574_v24 = vshll.u32 %v3375_v55, 16  ;;  %v4095_v50 = vld [vmem:[#allocation2 + $0x90] sm:$0xe] }
 0x1ca   : > { %7811 = vmatmul.mubr.msk.bf16.gmra.mxu1 %vm2026_vm8, %v11453_v57  ;;  %v3554_v9 = vrot.slane %v3553_v44, 4  ;;  %v9607_v39 = vsel %vm9095_vm3, %v7233_v40, %v4213_v46  ;;  %v4215_v59 = vrot.slane %v4213_v46, 4  ;;  %v3580_v32 = vshll.u32 %v9503_v37, 16  ;;  %v9637_v40 = vld [vmem:[%s11408_s4 + $0x40] sm:$0xff]  }
 0x1cb   : > { %7850 = vmatprep.mubr.msk.bf16.mxu1 %vm2026_vm8, %v9424_v8  ;;  %v3564_v12 = vrot.slane %v3563_v30, 4  ;;  %v3573_v52 = vrot.slane %v3571_v6, 4  ;;  %v3576_v38 = vrot.slane %v3574_v24, 5  ;;  %v3584_v14 = vshrl.u32 %v9503_v37, 16  ;;  %v3381_v24 = vld [vmem:[#allocation2 + $0x78] sm:$0xf] }
 0x1cc   : > { %v3559_v4 = vsel %vm8523_vm11, %v3554_v9, %v3558_v62  ;;  %v9617_v8 = vsel %vm9095_vm3, %v4215_v59, %v4216_v45  ;;  %v3582_v47 = vrot.slane %v3580_v32, 5  ;;  %v3590_v58 = vshll.u32 %v9514_v49, 16 }
 0x1cd   : > { %v3569_v2 = vsel %vm8523_vm11, %v3564_v12, %v3568_v56  ;;  %v7251_v37 = vcombine.low %v9607_v39, %v9617_v8  ;;  %v3577_v55 = vor.u32 %v3576_v38, %v3573_v52  ;;  %v3586_v26 = vrot.slane %v3584_v14, 4  ;;  %v9648_v56 = vld [vmem:[#allocation2 + $0x94] sm:$0xf] }
 0x1ce   : > { %v9626_v3 = vcombine.low %v3559_v4, %v3569_v2  ;;  %v3592_v5 = vrot.slane %v3590_v58, 5  ;;  %v7234_v11 = vrot.slane %v4094_v25, 9  ;;  %v4220_v20 = vrot.slane %v9611_v27, 5  ;;  %v9679_v2 = vld [vmem:[#allocation2 + $0xa0] sm:$0xf] }
 0x1cf   : > { %7893 = vmatmul.mubr.msk.bf16.gmra.mxu0 %vm2026_vm8, %v7247_v31  ;;  %v3578_v49 = vrot.slane %v3577_v55, 4  ;;  %v3587_v62 = vor.u32 %v3586_v26, %v3582_v47  ;;  %v4223_v19 = vrot.slane %v9620_v0, 5  ;;  %v3595_v53 = vshrl.u32 %v3378_v51, 16 }
 0x1d0   : > { %7896 = vmatprep.mubr.msk.bf16.mxu0 %vm2026_vm8, %v7248_v33  ;;  %v9645_v22 = vsel %vm9095_vm3, %v7234_v11, %v4220_v20  ;;  %v4222_v54 = vrot.slane %v4220_v20, 4  ;;  %v3598_v31 = vshll.u32 %v3378_v51, 16  ;;  %v3604_v44 = vshll.u32 %v9534_v36, 16  ;;  %v9655_v33 = vld [vmem:[#allocation2 + $0x98] sm:$0x1] }
 0x1d1   : > { %v3583_v46 = vsel %vm8523_vm11, %v3578_v49, %v3582_v47  ;;  %v3588_v57 = vrot.slane %v3587_v62, 4  ;;  %v3597_v34 = vrot.slane %v3595_v53, 4  ;;  %v3608_v63 = vshrl.u32 %v9534_v36, 16  ;;  %v4096_v20 = vld [vmem:[#allocation2 + $0x9c] sm:$0xe] }
 0x1d2   : > { %7851 = vmatmul.mubr.msk.bf16.vlgmr.msra.gmra.mxu1 %vm2026_vm8, %v9449_v48  ;;  %v9662_v30 = vsel %vm9095_vm3, %v4222_v54, %v4223_v19  ;;  %v3600_v45 = vrot.slane %v3598_v31, 5  ;;  %v3606_v48 = vrot.slane %v3604_v44, 5  ;;  %v3614_v6 = vshll.u32 %v9547_v10, 16  ;;  %v3384_v19 = vld [vmem:[#allocation2 + $0x84] sm:$0xf] }
 0x1d3   : > { %7917 = vmatpush3.bf16.msra.mxu1 %v9211_v16  ;;  %7854 = vmatprep.mubr.msk.bf16.mxu1 %vm2026_vm8, %v9482_v29  ;;  %v3593_v9 = vsel %vm8523_vm11, %v3588_v57, %v3592_v5  ;;  %v7252_v36 = vcombine.low %v9645_v22, %v9662_v30  ;;  %v3610_v59 = vrot.slane %v3608_v63, 4  ;;  %v7235_v16 = vrot.slane %v4095_v50, 9 }
 0x1d4   : > { %7984 = vmatprep.subr.bf16.mxu1 %v9637_v40  ;;  %v9670_v29 = vcombine.low %v3583_v46, %v3593_v9  ;;  %v3601_v32 = vor.u32 %v3600_v45, %v3597_v34  ;;  %v3616_v25 = vrot.slane %v3614_v6, 5  ;;  %v4227_v12 = vrot.slane %v9648_v56, 5  ;;  %v3387_v6 = vld [vmem:[#allocation2 + $0x90] sm:$0xf] }
 0x1d5   : > { %v3611_v52 = vor.u32 %v3610_v59, %v3606_v48  ;;  %v4230_v10 = vrot.slane %v9655_v33, 5  ;;  %v3619_v38 = vshrl.u32 %v3381_v24, 16  ;;  %v3622_v14 = vshll.u32 %v3381_v24, 16 }
 0x1d6   : > { %v3602_v4 = vrot.slane %v3601_v32, 4  ;;  %v9676_v47 = vsel %vm9095_vm3, %v7235_v16, %v4227_v12  ;;  %v4229_v58 = vrot.slane %v4227_v12, 4  ;;  %v3628_v51 = vshll.u32 %v9574_v41, 16 }
 0x1d7   : > { %7897 = vmatmul.mubr.msk.bf16.gmra.mxu0 %vm2026_vm8, %v7249_v60  ;;  %v3612_v55 = vrot.slane %v3611_v52, 4  ;;  %v3621_v26 = vrot.slane %v3619_v38, 4  ;;  %v3624_v5 = vrot.slane %v3622_v14, 5  ;;  %v3632_v11 = vshrl.u32 %v9574_v41, 16  ;;  %v9697_v60 = vld [vmem:[#allocation2 + $0xa4] sm:$0x1]  ;;  %v9699_v41 = vpop.f32.mrf.mxu0 }
 0x1d8   : > { %7900 = vmatprep.mubr.msk.bf16.mxu0 %vm2026_vm8, %v7250_v17  ;;  %v3607_v49 = vsel %vm8523_vm11, %v3602_v4, %v3606_v48  ;;  %v9694_v62 = vsel %vm9095_vm3, %v4229_v58, %v4230_v10  ;;  %v3630_v1 = vrot.slane %v3628_v51, 5  ;;  %v3638_v61 = vshll.u32 %v9581_v7, 16  ;;  %v9728_v14 = vld [vmem:[#allocation2 + $0xb0] sm:$0x1] }
 0x1d9   : > { %v3617_v35 = vsel %vm8523_vm11, %v3612_v55, %v3616_v25  ;;  %v7253_v13 = vcombine.low %v9676_v47, %v9694_v62  ;;  %v3625_v17 = vor.u32 %v3624_v5, %v3621_v26  ;;  %v3634_v53 = vrot.slane %v3632_v11, 4  ;;  %v9718_v24 = vpop.f32.mrf.mxu0  ;;  %v9723_v25 = vld [vmem:[#allocation2 + $0xac] sm:$0xf] }
 0x1da   : > { %7855 = vmatmul.mubr.msk.bf16.gmra.mxu1 %vm2026_vm8, %v9520_v43  ;;  %v9709_v7 = vcombine.low %v3607_v49, %v3617_v35  ;;  %v3640_v50 = vrot.slane %v3638_v61, 5  ;;  %v7236_v54 = vrot.slane %v4096_v20, 9  ;;  %v4234_v31 = vrot.slane %v9679_v2, 5 }
 0x1db   : > { %7858 = vmatprep.mubr.msk.bf16.mxu1 %vm2026_vm8, %v9562_v28  ;;  %v3626_v44 = vrot.slane %v3625_v17, 4  ;;  %v3635_v46 = vor.u32 %v3634_v53, %v3630_v1  ;;  %v4237_v43 = vrot.slane %v9697_v60, 5  ;;  %v3643_v57 = vshrl.u32 %v3384_v19, 16  ;;  %v4097_v28 = vld [vmem:[#allocation2 + $0xa8] sm:$0xe]  ;;  %v9744_v8 = vpop.f32.mrf.mxu0 }
 0x1dc   : > { %v9715_v34 = vsel %vm9095_vm3, %v7236_v54, %v4234_v31  ;;  %v4236_v63 = vrot.slane %v4234_v31, 4  ;;  %v3646_v45 = vshll.u32 %v3384_v19, 16  ;;  %v3652_v48 = vshll.u32 %v9611_v27, 16  ;;  %v9757_v17 = vld [vmem:[#allocation2 + $0xb8] sm:$0xf] }
 0x1dd   : > { %v3631_v9 = vsel %vm8523_vm11, %v3626_v44, %v3630_v1  ;;  %v3636_v59 = vrot.slane %v3635_v46, 4  ;;  %v3645_v16 = vrot.slane %v3643_v57, 4  ;;  %v3656_v32 = vshrl.u32 %v9611_v27, 16  ;;  %v4098_v1 = vld [vmem:[#allocation2 + $0xb4] sm:$0xe]  ;;  %v9766_v46 = vpop.f32.mrf.mxu0 }
 0x1de   : > { %v4238_v12 = vsel %vm9095_vm3, %v4236_v63, %v4237_v43  ;;  %v3648_v52 = vrot.slane %v3646_v45, 5  ;;  %v3654_v10 = vrot.slane %v3652_v48, 5  ;;  %v3662_v38 = vshll.u32 %v9620_v0, 16  ;;  %v9764_v31 = vld [vmem:[#allocation2 + $0xbc] sm:$0x1] }
 0x1df   : > { %7901 = vmatmul.mubr.msk.bf16.gmra.mxu0 %vm2026_vm8, %v7251_v37  ;;  %v3641_v4 = vsel %vm8523_vm11, %v3636_v59, %v3640_v50  ;;  %v7254_v27 = vcombine.low %v9715_v34, %v4238_v12  ;;  %v3658_v58 = vrot.slane %v3656_v32, 4  ;;  %v7237_v51 = vrot.slane %v4097_v28, 9  ;;  %v3390_v44 = vld [vmem:[#allocation2 + $0x9c] sm:$0xf] }
 0x1e0   : > { %7904 = vmatprep.mubr.msk.bf16.mxu0 %vm2026_vm8, %v7252_v36  ;;  %v9741_v0 = vcombine.low %v3631_v9, %v3641_v4  ;;  %v3649_v55 = vor.u32 %v3648_v52, %v3645_v16  ;;  %v3664_v26 = vrot.slane %v3662_v38, 5  ;;  %v4241_v39 = vrot.slane %v9723_v25, 5  ;;  %v3393_v38 = vld [vmem:[#allocation2 + $0xa8] sm:$0xf]  ;;  %v9783_v4 = vpop.f32.mrf.mxu0 }
 0x1e1   : > { %v3659_v37 = vor.u32 %v3658_v58, %v3654_v10  ;;  %v4244_v5 = vrot.slane %v9728_v14, 5  ;;  %v3667_v11 = vshrl.u32 %v3387_v6, 16  ;;  %v3670_v20 = vshll.u32 %v3387_v6, 16  ;;  %v9790_v58 = vld [vmem:[#allocation2 + $0xc4] sm:$0xf] }
 0x1e2   : > { %7859 = vmatmul.mubr.msk.bf16.gmra.mxu1 %vm2026_vm8, %v9595_v23  ;;  %v3650_v22 = vrot.slane %v3649_v55, 4  ;;  %v9753_v30 = vsel %vm9095_vm3, %v7237_v51, %v4241_v39  ;;  %v4243_v36 = vrot.slane %v4241_v39, 4  ;;  %v3676_v49 = vshll.u32 %v9648_v56, 16 }
 0x1e3   : > { %7862 = vmatprep.mubr.msk.bf16.mxu1 %vm2026_vm8, %v9626_v3  ;;  %v3660_v61 = vrot.slane %v3659_v37, 4  ;;  %v3669_v19 = vrot.slane %v3667_v11, 4  ;;  %v3672_v23 = vrot.slane %v3670_v20, 5  ;;  %v3680_v35 = vshrl.u32 %v9648_v56, 16 }
 0x1e4   : > { %v3655_v53 = vsel %vm8523_vm11, %v3650_v22, %v3654_v10  ;;  %v4245_v3 = vsel %vm9095_vm3, %v4243_v36, %v4244_v5  ;;  %v3678_v50 = vrot.slane %v3676_v49, 5  ;;  %v3686_v54 = vshll.u32 %v9655_v33, 16  ;;  %v4099_v10 = vld [vmem:[#allocation2 + $0xc0] sm:$0xe]  ;;  %v9804_v36 = vpop.f32.mrf.mxu0 }
 0x1e5   : > { %v3665_v43 = vsel %vm8523_vm11, %v3660_v61, %v3664_v26  ;;  %v7255_v56 = vcombine.low %v9753_v30, %v4245_v3  ;;  %v3673_v57 = vor.u32 %v3672_v23, %v3669_v19  ;;  %v3682_v34 = vrot.slane %v3680_v35, 4 }
 0x1e6   : > { %v9771_v63 = vcombine.low %v3655_v53, %v3665_v43  ;;  %v3688_v45 = vrot.slane %v3686_v54, 5  ;;  %v7238_v48 = vrot.slane %v4098_v1, 9  ;;  %v4248_v28 = vrot.slane %v9757_v17, 5  ;;  %v4921_v43 = vld [vmem:[#allocation2 + $0x18] sm:$0xf] }
 0x1e7   : > { %7905 = vmatmul.mubr.msk.bf16.gmra.mxu0 %vm2026_vm8, %v7253_v13  ;;  %v3674_v33 = vrot.slane %v3673_v57, 4  ;;  %v3683_v6 = vor.u32 %v3682_v34, %v3678_v50  ;;  %v4251_v9 = vrot.slane %v9764_v31, 5  ;;  %v3691_v59 = vshrl.u32 %v3390_v44, 16 }
 0x1e8   : > { %7908 = vmatprep.mubr.msk.bf16.mxu0 %vm2026_vm8, %v7254_v27  ;;  %v4249_v16 = vsel %vm9095_vm3, %v7238_v48, %v4248_v28  ;;  %v4250_v32 = vrot.slane %v4248_v28, 4  ;;  %v3694_v12 = vshll.u32 %v3390_v44, 16  ;;  %v3700_v52 = vshll.u32 %v9679_v2, 16  ;;  %v9818_v28 = vld [vmem:[#allocation2 + $0x1c] sm:$0xf] }
 0x1e9   : > { %v3679_v47 = vsel %vm8523_vm11, %v3674_v33, %v3678_v50  ;;  %v3684_v62 = vrot.slane %v3683_v6, 4  ;;  %v3693_v13 = vrot.slane %v3691_v59, 4  ;;  %v3704_v27 = vshrl.u32 %v9679_v2, 16  ;;  %v9826_v59 = vld [vmem:[#allocation2 + $0x20] sm:$0x1] }
 0x1ea   : > { %7863 = vmatmul.mubr.msk.bf16.gmra.mxu1 %vm2026_vm8, %v9670_v29  ;;  %v4252_v51 = vsel %vm9095_vm3, %v4250_v32, %v4251_v9  ;;  %v3696_v55 = vrot.slane %v3694_v12, 5  ;;  %v3702_v26 = vrot.slane %v3700_v52, 5  ;;  %v3710_v39 = vshll.u32 %v9697_v60, 16  ;;  %v9797_v29 = vld [vmem:[#allocation2 + $0xc8] sm:$0x1] }
 0x1eb   : > { %7866 = vmatprep.mubr.msk.bf16.mxu1 %vm2026_vm8, %v9709_v7  ;;  %v3689_v37 = vsel %vm8523_vm11, %v3684_v62, %v3688_v45  ;;  %v7256_v5 = vcombine.low %v4249_v16, %v4252_v51  ;;  %v3706_v11 = vrot.slane %v3704_v27, 4  ;;  %v7239_v2 = vrot.slane %v4099_v10, 9  ;;  %v3396_v16 = vld [vmem:[#allocation2 + $0xb4] sm:$0xf] }
 0x1ec   : > { %v9801_v20 = vcombine.low %v3679_v47, %v3689_v37  ;;  %v3697_v22 = vor.u32 %v3696_v55, %v3693_v13  ;;  %v3712_v30 = vrot.slane %v3710_v39, 5  ;;  %v4255_v7 = vrot.slane %v9790_v58, 5 }
 0x1ed   : > { %v3707_v49 = vor.u32 %v3706_v11, %v3702_v26  ;;  %v4258_v1 = vrot.slane %v9797_v29, 5  ;;  %v3715_v60 = vshrl.u32 %v3393_v38, 16  ;;  %v3718_v61 = vshll.u32 %v3393_v38, 16 }
 0x1ee   : > { %v3698_v19 = vrot.slane %v3697_v22, 4  ;;  %v4256_v23 = vsel %vm9095_vm3, %v7239_v2, %v4255_v7  ;;  %v4257_v35 = vrot.slane %v4255_v7, 4  ;;  %v3724_v53 = vshll.u32 %v9723_v25, 16  ;;  %v4924_v7 = vld [vmem:[#allocation2 + $0x24] sm:$0xf] }
 0x1ef   : > { %7909 = vmatmul.mubr.msk.bf16.gmra.mxu0 %vm2026_vm8, %v7255_v56  ;;  %v3708_v3 = vrot.slane %v3707_v49, 4  ;;  %v3717_v50 = vrot.slane %v3715_v60, 4  ;;  %v3720_v54 = vrot.slane %v3718_v61, 5  ;;  %v3728_v44 = vshrl.u32 %v9723_v25, 16  ;;  %v9820_v56 = vpop.f32.mrf.mxu0 }
 0x1f0   : > { %7912 = vmatprep.mubr.msk.bf16.mxu0 %vm2026_vm8, %v7256_v5  ;;  %v3703_v57 = vsel %vm8523_vm11, %v3698_v19, %v3702_v26  ;;  %v4259_v34 = vsel %vm9095_vm3, %v4257_v35, %v4258_v1  ;;  %v3726_v45 = vrot.slane %v3724_v53, 5  ;;  %v3734_v48 = vshll.u32 %v9728_v14, 16  ;;  %v9833_v55 = vpop.f32.mrf.mxu1 }
 0x1f1   : > { %v3713_v25 = vsel %vm8523_vm11, %v3708_v3, %v3712_v30  ;;  %v7257_v33 = vcombine.low %v4256_v23, %v4259_v34  ;;  %v3721_v6 = vor.u32 %v3720_v54, %v3717_v50  ;;  %v3730_v9 = vrot.slane %v3728_v44, 4  ;;  %v9835_v26 = vpop.f32.mrf.mxu0  ;;  %v9845_v3 = vld [vmem:[#allocation2 + $0x28] sm:$0xf] }
 0x1f2   : > { %7867 = vmatmul.mubr.msk.bf16.gmra.mxu1 %vm2026_vm8, %v9741_v0  ;;  %v7203_v14 = vcombine.low %v3703_v57, %v3713_v25  ;;  %v3736_v32 = vrot.slane %v3734_v48, 5  ;;  %v4970_v12 = vshrl.u32 %v4921_v43, 16  ;;  %v4973_v52 = vshll.u32 %v4921_v43, 16  ;;  %v9847_v50 = vpop.f32.mrf.mxu1  ;;  %v9856_v48 = vld [vmem:[#allocation2 + $0x2c] sm:$0x1] }
 0x1f3   : > { %7870 = vmatprep.mubr.msk.bf16.mxu1 %vm2026_vm8, %v9771_v63  ;;  %v3722_v10 = vrot.slane %v3721_v6, 4  ;;  %v3731_v38 = vor.u32 %v3730_v9, %v3726_v45  ;;  %v4979_v0 = vshll.u32 %v9818_v28, 16  ;;  %v4983_v47 = vshrl.u32 %v9818_v28, 16  ;;  %v9849_v54 = vpop.f32.mrf.mxu0 }
 0x1f4   : > { %v4972_v62 = vrot.slane %v4970_v12, 4  ;;  %v4975_v13 = vrot.slane %v4973_v52, 5  ;;  %v4989_v27 = vshll.u32 %v9826_v59, 16  ;;  %v3739_v51 = vshrl.u32 %v3396_v16, 16 }
 0x1f5   : > { %v3727_v63 = vsel %vm8523_vm11, %v3722_v10, %v3726_v45  ;;  %v3732_v39 = vrot.slane %v3731_v38, 4  ;;  %v4981_v37 = vrot.slane %v4979_v0, 5  ;;  %v4985_v5 = vrot.slane %v4983_v47, 4  ;;  %v9862_v10 = vpop.f32.mrf.mxu1  ;;  %v9864_v38 = vpop.f32.mrf.mxu0 }
 0x1f6   : > { %v4976_v11 = vor.u32 %v4975_v13, %v4972_v62  ;;  %v4991_v2 = vrot.slane %v4989_v27, 5  ;;  %v3741_v22 = vrot.slane %v3739_v51, 4  ;;  %v3742_v30 = vshll.u32 %v3396_v16, 16 }
 0x1f7   : > { %7913 = vmatmul.mubr.msk.bf16.gmra.mxu0 %vm2026_vm8, %v7257_v33  ;;  %v3737_v49 = vsel %vm8523_vm11, %v3732_v39, %v3736_v32  ;;  %v4986_v1 = vor.u32 %v4985_v5, %v4981_v37  ;;  %v3748_v60 = vshll.u32 %v9757_v17, 16  ;;  %v3752_v61 = vshrl.u32 %v9757_v17, 16  ;;  %v3399_v33 = vld [vmem:[#allocation2 + $0xc0] sm:$0xf] }
 0x1f8   : > { %v7204_v19 = vcombine.low %v3727_v63, %v3737_v49  ;;  %v4977_v23 = vrot.slane %v4976_v11, 4  ;;  %v3744_v35 = vrot.slane %v3742_v30, 5  ;;  %v3758_v53 = vshll.u32 %v9764_v31, 16 }
 0x1f9   : > { %v4987_v44 = vrot.slane %v4986_v1, 4  ;;  %v3750_v43 = vrot.slane %v3748_v60, 5  ;;  %v3754_v57 = vrot.slane %v3752_v61, 4  ;;  %v4994_v34 = vshrl.u32 %v4924_v7, 16  ;;  %v9873_v60 = vld [vmem:[#allocation2 + $0x34] sm:$0xf]  ;;  %v9875_v61 = vpop.f32.mrf.mxu1 }
 0x1fa   : > { %7871 = vmatmul.mubr.msk.bf16.gmra.mxu1 %vm2026_vm8, %v9801_v20  ;;  %v4982_v17 = vsel %vm8523_vm11, %v4977_v23, %v4981_v37  ;;  %v3745_v45 = vor.u32 %v3744_v35, %v3741_v22  ;;  %v3760_v31 = vrot.slane %v3758_v53, 5  ;;  %v4997_v25 = vshll.u32 %v4924_v7, 16  ;;  %v4927_v37 = vld [vmem:[#allocation2 + $0x30] sm:$0xf]  ;;  %v9877_v23 = vpop.f32.mrf.mxu0 }
 0x1fb   : > { %7874 = vmatprep.mubr.msk.bf16.mxu1 %vm2026_vm8, %v7203_v14  ;;  %v4992_v6 = vsel %vm8523_vm11, %v4987_v44, %v4991_v2  ;;  %v3755_v9 = vor.u32 %v3754_v57, %v3750_v43  ;;  %v4996_v20 = vrot.slane %v4994_v34, 4  ;;  %v5003_v16 = vshll.u32 %v9845_v3, 16 }
 0x1fc   : > { %v7312_v32 = vcombine.low %v4982_v17, %v4992_v6  ;;  %v3746_v12 = vrot.slane %v3745_v45, 4  ;;  %v4999_v52 = vrot.slane %v4997_v25, 5  ;;  %v5007_v14 = vshrl.u32 %v9845_v3, 16  ;;  %v9885_v45 = vld [vmem:[#allocation2 + $0x38] sm:$0x1] }
 0x1fd   : > { %v3756_v0 = vrot.slane %v3755_v9, 4  ;;  %v5005_v47 = vrot.slane %v5003_v16, 5  ;;  %v5013_v62 = vshll.u32 %v9856_v48, 16  ;;  %v3763_v13 = vshrl.u32 %v3399_v33, 16  ;;  %v4930_v9 = vld [vmem:[#allocation2 + $0x3c] sm:$0xf] }
 0x1fe   : > { %7952 = vmatprep.mubr.msk.bf16.mxu0 %vm2026_vm8, %v7312_v32  ;;  %v3751_v27 = vsel %vm8523_vm11, %v3746_v12, %v3750_v43  ;;  %v5000_v51 = vor.u32 %v4999_v52, %v4996_v20  ;;  %v5009_v63 = vrot.slane %v5007_v14, 4  ;;  %v3766_v39 = vshll.u32 %v3399_v33, 16  ;;  %v9891_v32 = vld [vmem:[#allocation2 + $0x40] sm:$0xf]  ;;  %v9895_v52 = vpop.f32.mrf.mxu0 }
 0x1ff   : > { %v3761_v5 = vsel %vm8523_vm11, %v3756_v0, %v3760_v31  ;;  %v5015_v11 = vrot.slane %v5013_v62, 5  ;;  %v3765_v2 = vrot.slane %v3763_v13, 4  ;;  %v3772_v22 = vshll.u32 %v9790_v58, 16 }
 0x200   : > { %v7205_v30 = vcombine.low %v3751_v27, %v3761_v5  ;;  %v5001_v7 = vrot.slane %v5000_v51, 4  ;;  %v5010_v49 = vor.u32 %v5009_v63, %v5005_v47  ;;  %v3768_v1 = vrot.slane %v3766_v39, 5  ;;  %v9900_v63 = vld [vmem:[#allocation2 + $0x44] sm:$0x1] }
 0x201   : > { %v3774_v35 = vrot.slane %v3772_v22, 5  ;;  %v3776_v53 = vshrl.u32 %v9790_v58, 16  ;;  %v3782_v44 = vshll.u32 %v9797_v29, 16  ;;  %v5018_v43 = vshrl.u32 %v4927_v37, 16  ;;  %v9893_v12 = vpop.f32.mrf.mxu1 }
 0x202   : > { %7875 = vmatmul.mubr.msk.bf16.gmra.mxu1 %vm2026_vm8, %v7204_v19  ;;  %v5006_v57 = vsel %vm8523_vm11, %v5001_v7, %v5005_v47  ;;  %v5011_v34 = vrot.slane %v5010_v49, 4  ;;  %v3769_v17 = vor.u32 %v3768_v1, %v3765_v2  ;;  %v5021_v31 = vshll.u32 %v4927_v37, 16  ;;  %v4933_v1 = vld [vmem:[#allocation2 + $0x48] sm:$0xf] }
 0x203   : > { %7878 = vmatprep.mubr.msk.bf16.mxu1 %vm2026_vm8, %v7205_v30  ;;  %v3778_v25 = vrot.slane %v3776_v53, 4  ;;  %v3784_v33 = vrot.slane %v3782_v44, 5  ;;  %v5020_v6 = vrot.slane %v5018_v43, 4  ;;  %v5027_v19 = vshll.u32 %v9873_v60, 16  ;;  %v9905_v53 = vpop.f32.mrf.mxu1 }
 0x204   : > { %v5016_v58 = vsel %vm8523_vm11, %v5011_v34, %v5015_v11  ;;  %v3770_v29 = vrot.slane %v3769_v17, 4  ;;  %v5023_v20 = vrot.slane %v5021_v31, 5  ;;  %v5031_v16 = vshrl.u32 %v9873_v60, 16  ;;  %v9912_v17 = vld [vmem:[#allocation2 + $0x4c] sm:$0xf] }
 0x205   : > { %v7313_v14 = vcombine.low %v5006_v57, %v5016_v58  ;;  %v3779_v0 = vor.u32 %v3778_v25, %v3774_v35  ;;  %v5029_v47 = vrot.slane %v5027_v19, 5  ;;  %v5037_v62 = vshll.u32 %v9885_v45, 16 }
 0x206   : > { %v3775_v13 = vsel %vm8523_vm11, %v3770_v29, %v3774_v35  ;;  %v5024_v27 = vor.u32 %v5023_v20, %v5020_v6  ;;  %v5033_v51 = vrot.slane %v5031_v16, 4  ;;  %v5042_v39 = vshrl.u32 %v4930_v9, 16 }
 0x207   : > { %7953 = vmatmul.mubr.msk.bf16.vlgmr.msra.gmra.mxu0 %vm2026_vm8, %v7313_v14  ;;  %v3780_v37 = vrot.slane %v3779_v0, 4  ;;  %v5039_v5 = vrot.slane %v5037_v62, 5  ;;  %v5045_v11 = vshll.u32 %v4930_v9, 16  ;;  %v5051_v2 = vshll.u32 %v9891_v32, 16  ;;  %v9907_v35 = vpop.f32.mrf.mxu0  ;;  %v8186_v9 = vld [vmem:[#allocation2 + $0x18] sm:$0xff]  }
 0x208   : > { %v5025_v22 = vrot.slane %v5024_v27, 4  ;;  %v5034_v30 = vor.u32 %v5033_v51, %v5029_v47  ;;  %v5044_v7 = vrot.slane %v5042_v39, 4  ;;  %v5055_v49 = vshrl.u32 %v9891_v32, 16 }
 0x209   : > { %v3785_v44 = vsel %vm8523_vm11, %v3780_v37, %v3784_v33  ;;  %v5047_v43 = vrot.slane %v5045_v11, 5  ;;  %v5053_v57 = vrot.slane %v5051_v2, 5  ;;  %v5061_v34 = vshll.u32 %v9900_v63, 16  ;;  %v9920_v33 = vld [vmem:[#allocation2 + $0x50] sm:$0x1]  ;;  %v9928_v27 = vpop.f32.mrf.mxu0 }
 0x20a   : > { %v7206_v31 = vcombine.low %v3775_v13, %v3785_v44  ;;  %v5030_v25 = vsel %vm8523_vm11, %v5025_v22, %v5029_v47  ;;  %v5035_v6 = vrot.slane %v5034_v30, 4  ;;  %v5057_v19 = vrot.slane %v5055_v49, 4  ;;  %v9926_v13 = vpop.f32.mrf.mxu1  ;;  %v4936_v22 = vld [vmem:[#allocation2 + $0x54] sm:$0xf]  ;;  %v9944_v44 = vld [vmem:[#allocation2 + $0x5c] sm:$0x1] }
 0x20b   : > { %v5048_v58 = vor.u32 %v5047_v43, %v5044_v7  ;;  %v5063_v29 = vrot.slane %v5061_v34, 5  ;;  %v9918_v20 = vadd.f32 %v9699_v41, %v9833_v55  ;;  %v5066_v16 = vshrl.u32 %v4933_v1, 16 }
 0x20c   : > { %7879 = vmatmul.mubr.msk.bf16.gmra.mxu1 %vm2026_vm8, %v7206_v31  ;;  %v5040_v14 = vsel %vm8523_vm11, %v5035_v6, %v5039_v5  ;;  %v5058_v0 = vor.u32 %v5057_v19, %v5053_v57  ;;  %v5069_v62 = vshll.u32 %v4933_v1, 16  ;;  %v5075_v47 = vshll.u32 %v9912_v17, 16  ;;  %v9942_v1 = vld [vmem:[#allocation2 + $0x58] sm:$0xf]  ;;  %v9950_v6 = vpop.f32.mrf.mxu1  ;;  %v8188_v19 = vld [vmem:[#allocation2 + $0x24] sm:$0xff]  }
 0x20d   : > { %v7314_v51 = vcombine.low %v5030_v25, %v5040_v14  ;;  %7918 = vmatprep.mubr.msk.bf16.mxu1 %vm2026_vm8, %v8186_v9  ;;  %v5049_v41 = vrot.slane %v5048_v58, 4  ;;  %v5068_v55 = vrot.slane %v5066_v16, 4  ;;  %v5079_v39 = vshrl.u32 %v9912_v17, 16 }
 0x20e   : > { %v5059_v37 = vrot.slane %v5058_v0, 4  ;;  %v5071_v11 = vrot.slane %v5069_v62, 5  ;;  %v5077_v2 = vrot.slane %v5075_v47, 5  ;;  %v5085_v5 = vshll.u32 %v9920_v33, 16  ;;  %v4939_v0 = vld [vmem:[#allocation2 + $0x60] sm:$0xf] }
 0x20f   : > { %7956 = vmatprep.mubr.msk.bf16.mxu0 %vm2026_vm8, %v7314_v51  ;;  %v5081_v30 = vrot.slane %v5079_v39, 4  ;;  %v9936_v7 = vadd.f32 %v9718_v24, %v9847_v50  ;;  %v9940_v49 = vadd.f32 %v9744_v8, %v9862_v10  ;;  %v5054_v43 = vsel %vm8523_vm11, %v5049_v41, %v5053_v57  ;;  %v9952_v24 = vpop.f32.mrf.mxu0  ;;  %v8189_v62 = vld [vmem:[#allocation2 + $0x30] sm:$0xff]  }
 0x210   : > { %v5064_v34 = vsel %vm8523_vm11, %v5059_v37, %v5063_v29  ;;  %v5072_v31 = vor.u32 %v5071_v11, %v5068_v55  ;;  %v5087_v25 = vrot.slane %v5085_v5, 5  ;;  %v5090_v10 = vshrl.u32 %v4936_v22, 16  ;;  %v9962_v55 = vld [vmem:[#allocation2 + $0x64] sm:$0xf] }
 0x211   : > { %v7315_v50 = vcombine.low %v5054_v43, %v5064_v34  ;;  %v5082_v8 = vor.u32 %v5081_v30, %v5077_v2  ;;  %v5093_v9 = vshll.u32 %v4936_v22, 16  ;;  %v5099_v16 = vshll.u32 %v9942_v1, 16  ;;  %v9967_v22 = vld [vmem:[#allocation2 + $0x68] sm:$0x1]  ;;  %v9969_v43 = vpop.f32.mrf.mxu0 }
 0x212   : > { %v5073_v58 = vrot.slane %v5072_v31, 4  ;;  %v5103_v14 = vshrl.u32 %v9942_v1, 16  ;;  %v5109_v57 = vshll.u32 %v9944_v44, 16  ;;  %v5092_v47 = vrot.slane %v5090_v10, 4 }
 0x213   : > { %7957 = vmatmul.mubr.msk.bf16.gmra.mxu0 %vm2026_vm8, %v7315_v50  ;;  %v5083_v29 = vrot.slane %v5082_v8, 4  ;;  %v5095_v51 = vrot.slane %v5093_v9, 5  ;;  %v9960_v41 = vadd.f32 %v9783_v4, %v9893_v12  ;;  %v5101_v37 = vrot.slane %v5099_v16, 5 }
 0x214   : > { %7919 = vmatmul.mubr.msk.bf16.vlgmr.msra.gmra.mxu1 %vm2026_vm8, %v8188_v19  ;;  %v5078_v39 = vsel %vm8523_vm11, %v5073_v58, %v5077_v2  ;;  %v5105_v11 = vrot.slane %v5103_v14, 4  ;;  %v5111_v5 = vrot.slane %v5109_v57, 5  ;;  %v7724_v30 = vpop.f32.mrf.mxu1  ;;  %v5114_v12 = vshrl.u32 %v4939_v0, 16  ;;  %v4942_v14 = vld [vmem:[#allocation2 + $0x6c] sm:$0xf] }
 0x215   : > { %11454 = vst [vmem:[#allocation6_spill] sm:$0xff] %v9960_v41  ;;  %v5088_v34 = vsel %vm8523_vm11, %v5083_v29, %v5087_v25  ;;  %7985 = vmatpush3.bf16.msra.mxu1 %v9637_v40  ;;  %7922 = vmatprep.mubr.msk.bf16.mxu1 %vm2026_vm8, %v8189_v62  ;;  %v5096_v4 = vor.u32 %v5095_v51, %v5092_v47  ;;  %v5117_v31 = vshll.u32 %v4939_v0, 16  ;;  %v5123_v19 = vshll.u32 %v9962_v55, 16  ;;  %v9983_v62 = vld [vmem:[#allocation2 + $0x70] sm:$0xf] }
 0x216   : > { %v7316_v50 = vcombine.low %v5078_v39, %v5088_v34  ;;  %v5106_v2 = vor.u32 %v5105_v11, %v5101_v37  ;;  %v5127_v8 = vshrl.u32 %v9962_v55, 16  ;;  %v5116_v9 = vrot.slane %v5114_v12, 4  ;;  %v2141_v25 = vpop.f32.mrf.mxu1  ;;  %v9993_v34 = vld [vmem:[#allocation2 + $0x74] sm:$0x1]  ;;  %v8190_v12 = vld [vmem:[#allocation2 + $0x3c] sm:$0xff]  }
 0x217   : > { %v5097_v10 = vrot.slane %v5096_v4, 4  ;;  %v5119_v58 = vrot.slane %v5117_v31, 5  ;;  %v5133_v16 = vshll.u32 %v9967_v22, 16  ;;  %v5125_v57 = vrot.slane %v5123_v19, 5  ;;  %11457 = vst [vmem:[#allocation9_spill] sm:$0xff] %v9993_v34 }
 0x218   : > { %7960 = vmatprep.mubr.msk.bf16.mxu0 %vm2026_vm8, %v7316_v50  ;;  %v5107_v40 = vrot.slane %v5106_v2, 4  ;;  %v5129_v29 = vrot.slane %v5127_v8, 4  ;;  %v9981_v0 = vadd.f32 %v9804_v36, %v9905_v53  ;;  %v9985_v47 = vpop.f32.mrf.mxu0  ;;  %v9991_v11 = vadd.f32 %v9820_v56, %v9926_v13  ;;  %v8191_v8 = vld [vmem:[#allocation2 + $0x48] sm:$0xff]   ;;  %v7725_v56 = vpop.f32.mrf.mxu1 }
 0x219   : > { %v5102_v51 = vsel %vm8523_vm11, %v5097_v10, %v5101_v37  ;;  %v5120_v39 = vor.u32 %v5119_v58, %v5116_v9  ;;  %v5135_v53 = vrot.slane %v5133_v16, 5  ;;  %v5138_v31 = vshrl.u32 %v4942_v14, 16  ;;  %v4945_v9 = vld [vmem:[#allocation2 + $0x78] sm:$0xf]  ;;  %v10003_v16 = vld [vmem:[#allocation2 + $0x7c] sm:$0xf] }
 0x21a   : > { %11455 = vst [vmem:[#allocation7_spill] sm:$0xff] %v9981_v0  ;;  %11456 = vst [vmem:[#allocation8_spill] sm:$0xff] %v9991_v11  ;;  %v5112_v4 = vsel %vm8523_vm11, %v5107_v40, %v5111_v5  ;;  %v5130_v36 = vor.u32 %v5129_v29, %v5125_v57  ;;  %v9997_v50 = vpop.f32.mrf.mxu0  ;;  %v5141_v37 = vshll.u32 %v4942_v14, 16  ;;  %v5147_v10 = vshll.u32 %v9983_v62, 16 }
 0x21b   : > { %v7317_v2 = vcombine.low %v5102_v51, %v5112_v4  ;;  %v5121_v19 = vrot.slane %v5120_v39, 4  ;;  %v5140_v58 = vrot.slane %v5138_v31, 4  ;;  %v5151_v5 = vshrl.u32 %v9983_v62, 16  ;;  %11458 = vst [vmem:[#allocation10_spill] sm:$0xff] %v10003_v16  ;;  %v10012_v4 = vld [vmem:[#allocation2 + $0x80] sm:$0x1] }
 0x21c   : > { %7923 = vmatmul.mubr.msk.bf16.gmra.mxu1 %vm2026_vm8, %v8190_v12  ;;  %v5131_v13 = vrot.slane %v5130_v36, 4  ;;  %v5157_v40 = vshll.u32 %v9993_v34, 16  ;;  %v5143_v14 = vrot.slane %v5141_v37, 5  ;;  %v5149_v51 = vrot.slane %v5147_v10, 5  ;;  %11460 = vst [vmem:[#allocation12_spill] sm:$0xff] %v10012_v4  ;;  %v10014_v12 = vpop.f32.mrf.mxu0 }
 0x21d   : > { %7961 = vmatmul.mubr.msk.bf16.gmra.mxu0 %vm2026_vm8, %v7317_v2  ;;  %v5126_v29 = vsel %vm8523_vm11, %v5121_v19, %v5125_v57  ;;  %7926 = vmatprep.mubr.msk.bf16.mxu1 %vm2026_vm8, %v8191_v8  ;;  %v10010_v39 = vadd.f32 %v9849_v54, %v7724_v30  ;;  %v5153_v31 = vrot.slane %v5151_v5, 4  ;;  %v5162_v2 = vshrl.u32 %v4945_v9, 16  ;;  %v2144_v8 = vpop.f32.mrf.mxu1 }
 0x21e   : > { %v5136_v36 = vsel %vm8523_vm11, %v5131_v13, %v5135_v53  ;;  %v5159_v11 = vrot.slane %v5157_v40, 5  ;;  %v5144_v41 = vor.u32 %v5143_v14, %v5140_v58  ;;  %v5165_v57 = vshll.u32 %v4945_v9, 16  ;;  %v10025_v58 = vld [vmem:[#allocation2 + $0x88] sm:$0xf]  ;;  %v10027_v9 = vpop.f32.mrf.mxu0 }
 0x21f   : > { %11459 = vst [vmem:[#allocation11_spill] sm:$0xff] %v10010_v39  ;;  %v7318_v0 = vcombine.low %v5126_v29, %v5136_v36  ;;  %v5171_v19 = vshll.u32 %v10003_v16, 16  ;;  %v5154_v37 = vor.u32 %v5153_v31, %v5149_v51  ;;  %v5164_v10 = vrot.slane %v5162_v2, 4  ;;  %v4948_v39 = vld [vmem:[#allocation2 + $0x84] sm:$0xf]  ;;  %11462 = vst [vmem:[#allocation14_spill] sm:$0xff] %v10025_v58 }
 0x220   : > { %v5175_v54 = vshrl.u32 %v10003_v16, 16  ;;  %v5181_v30 = vshll.u32 %v10012_v4, 16  ;;  %v5145_v34 = vrot.slane %v5144_v41, 4  ;;  %v5167_v53 = vrot.slane %v5165_v57, 5  ;;  %11463 = vst [vmem:[#allocation15_spill] sm:$0xff] %v10027_v9  ;;  %v8192_v29 = vld [vmem:[#allocation2 + $0x54] sm:$0xff]  }
 0x221   : > { %7964 = vmatprep.mubr.msk.bf16.mxu0 %vm2026_vm8, %v7318_v0  ;;  %v5173_v13 = vrot.slane %v5171_v19, 5  ;;  %v10023_v5 = vadd.f32 %v9864_v38, %v2141_v25  ;;  %v5155_v40 = vrot.slane %v5154_v37, 4  ;;  %v10030_v31 = vadd.f32 %v9877_v23, %v7725_v56  ;;  %v8193_v2 = vld [vmem:[#allocation2 + $0x60] sm:$0xff]   ;;  %v10037_v38 = vld [vmem:[#allocation2 + $0x8c] sm:$0x1] }
 0x222   : > { %v5177_v14 = vrot.slane %v5175_v54, 4  ;;  %v5183_v36 = vrot.slane %v5181_v30, 5  ;;  %v5150_v0 = vsel %vm8523_vm11, %v5145_v34, %v5149_v51  ;;  %v5168_v41 = vor.u32 %v5167_v53, %v5164_v10  ;;  %11466 = vst [vmem:[#allocation18_spill] sm:$0xff] %v10037_v38  ;;  %v4951_v30 = vld [vmem:[#allocation2 + $0x90] sm:$0xf] }
 0x223   : > { %11461 = vst [vmem:[#allocation13_spill] sm:$0xff] %v10023_v5  ;;  %11464 = vst [vmem:[#allocation16_spill] sm:$0xff] %v10030_v31  ;;  %v10035_v57 = vadd.f32 %v9895_v52, %v2144_v8  ;;  %v5186_v25 = vshrl.u32 %v4948_v39, 16  ;;  %v7728_v19 = vpop.f32.mrf.mxu1  ;;  %v5160_v37 = vsel %vm8523_vm11, %v5155_v40, %v5159_v11  ;;  %v5189_v23 = vshll.u32 %v4948_v39, 16  ;;  %v4954_v16 = vld [vmem:[#allocation2 + $0x9c] sm:$0xf] }
 0x224   : > { %7927 = vmatmul.mubr.msk.bf16.gmra.mxu1 %vm2026_vm8, %v8192_v29  ;;  %v5178_v54 = vor.u32 %v5177_v14, %v5173_v13  ;;  %v5195_v56 = vshll.u32 %v10025_v58, 16  ;;  %v7319_v34 = vcombine.low %v5150_v0, %v5160_v37  ;;  %v5169_v51 = vrot.slane %v5168_v41, 4  ;;  %v10048_v29 = vld [vmem:[#allocation2 + $0x94] sm:$0xf]  ;;  %v10056_v41 = vld [vmem:[#allocation2 + $0x98] sm:$0x1] }
 0x225   : > { %11465 = vst [vmem:[#allocation17_spill] sm:$0xff] %v10035_v57  ;;  %7930 = vmatprep.mubr.msk.bf16.mxu1 %vm2026_vm8, %v8193_v2  ;;  %v5188_v52 = vrot.slane %v5186_v25, 4  ;;  %v5199_v8 = vshrl.u32 %v10025_v58, 16  ;;  %v2157_v10 = vpop.f32.mrf.mxu1  ;;  %v10045_v53 = vpop.f32.mrf.mxu0  ;;  %v5191_v57 = vrot.slane %v5189_v23, 5  ;;  %v5205_v40 = vshll.u32 %v10037_v38, 16  ;;  %v8194_v38 = vld [vmem:[#allocation2 + $0x6c] sm:$0xff]  }
 0x226   : > { %v5179_v9 = vrot.slane %v5178_v54, 4  ;;  %v5197_v11 = vrot.slane %v5195_v56, 5  ;;  %7965 = vmatmul.mubr.msk.bf16.gmra.mxu0 %vm2026_vm8, %v7319_v34  ;;  %v5174_v39 = vsel %vm8523_vm11, %v5169_v51, %v5173_v13  ;;  %v10054_v0 = vadd.f32 %v9907_v35, %v7728_v19 }
 0x227   : > { %v5201_v14 = vrot.slane %v5199_v8, 4  ;;  %v5210_v2 = vshrl.u32 %v4951_v30, 16  ;;  %v7729_v25 = vpop.f32.mrf.mxu1  ;;  %v10058_v37 = vpop.f32.mrf.mxu0  ;;  %v5192_v23 = vor.u32 %v5191_v57, %v5188_v52  ;;  %v5207_v56 = vrot.slane %v5205_v40, 5  ;;  %v8195_v57 = vld [vmem:[#allocation2 + $0x78] sm:$0xff]   ;;  %v10074_v40 = vld [vmem:[#allocation2 + $0xa0] sm:$0xf] }
 0x228   : > { %11467 = vst [vmem:[#allocation19_spill] sm:$0xff] %v10054_v0  ;;  %v5184_v54 = vsel %vm8523_vm11, %v5179_v9, %v5183_v36  ;;  %v5213_v31 = vshll.u32 %v4951_v30, 16  ;;  %v5219_v51 = vshll.u32 %v10048_v29, 16  ;;  %v5223_v0 = vshrl.u32 %v10048_v29, 16 }
 0x229   : > { %v7320_v34 = vcombine.low %v5174_v39, %v5184_v54  ;;  %v5202_v5 = vor.u32 %v5201_v14, %v5197_v11  ;;  %v5212_v13 = vrot.slane %v5210_v2, 4  ;;  %v10063_v35 = vpop.f32.mrf.mxu0  ;;  %v5193_v19 = vrot.slane %v5192_v23, 4  ;;  %v2160_v58 = vpop.f32.mrf.mxu1  ;;  %v4957_v54 = vld [vmem:[#allocation2 + $0xa8] sm:$0xf] }
 0x22a   : > { %v5215_v8 = vrot.slane %v5213_v31, 5  ;;  %v5229_v4 = vshll.u32 %v10056_v41, 16  ;;  %v5221_v36 = vrot.slane %v5219_v51, 5  ;;  %v10069_v30 = vadd.f32 %v9928_v27, %v2157_v10 }
 0x22b   : > { %7968 = vmatprep.mubr.msk.bf16.mxu0 %vm2026_vm8, %v7320_v34  ;;  %v5203_v9 = vrot.slane %v5202_v5, 4  ;;  %v10072_v52 = vadd.f32 %v9952_v24, %v7729_v25  ;;  %v10076_v31 = vpop.f32.mrf.mxu0  ;;  %v5198_v39 = vsel %vm8523_vm11, %v5193_v19, %v5197_v11  ;;  %v5225_v2 = vrot.slane %v5223_v0, 4  ;;  %v10087_v24 = vld [vmem:[#allocation2 + $0xa4] sm:$0x1] }
 0x22c   : > { %11468 = vst [vmem:[#allocation20_spill] sm:$0xff] %v10069_v30  ;;  %11470 = vst [vmem:[#allocation22_spill] sm:$0xff] %v10076_v31  ;;  %7931 = vmatmul.mubr.msk.bf16.gmra.mxu1 %vm2026_vm8, %v8194_v38  ;;  %v5216_v14 = vor.u32 %v5215_v8, %v5212_v13  ;;  %v10085_v27 = vadd.f32 %v9969_v43, %v2160_v58  ;;  %v5234_v10 = vshrl.u32 %v4954_v16, 16  ;;  %v5237_v25 = vshll.u32 %v4954_v16, 16  ;;  %v10093_v8 = vld [vmem:[#allocation2 + $0xac] sm:$0xf] }
 0x22d   : > { %11469 = vst [vmem:[#allocation21_spill] sm:$0xff] %v10072_v52  ;;  %v5208_v5 = vsel %vm8523_vm11, %v5203_v9, %v5207_v56  ;;  %7934 = vmatprep.mubr.msk.bf16.mxu1 %vm2026_vm8, %v8195_v57  ;;  %v5226_v11 = vor.u32 %v5225_v2, %v5221_v36  ;;  %v5243_v38 = vshll.u32 %v10074_v40, 16  ;;  %v5231_v0 = vrot.slane %v5229_v4, 5 }
 0x22e   : > { %11471 = vst [vmem:[#allocation23_spill] sm:$0xff] %v10085_v27  ;;  %v7321_v23 = vcombine.low %v5198_v39, %v5208_v5  ;;  %v5217_v34 = vrot.slane %v5216_v14, 4  ;;  %v10090_v13 = vpop.f32.mrf.mxu0  ;;  %v5236_v51 = vrot.slane %v5234_v10, 4  ;;  %v5239_v56 = vrot.slane %v5237_v25, 5  ;;  %v8196_v25 = vld [vmem:[#allocation2 + $0x84] sm:$0xff]  }
 0x22f   : > { %v5247_v19 = vshrl.u32 %v10074_v40, 16  ;;  %v5227_v43 = vrot.slane %v5226_v11, 4  ;;  %v5245_v58 = vrot.slane %v5243_v38, 5  ;;  %v5253_v16 = vshll.u32 %v10087_v24, 16 }
 0x230   : > { %7969 = vmatmul.mubr.msk.bf16.gmra.mxu0 %vm2026_vm8, %v7321_v23  ;;  %v7732_v9 = vpop.f32.mrf.mxu1  ;;  %v5258_v57 = vshrl.u32 %v4957_v54, 16  ;;  %v10097_v39 = vpop.f32.mrf.mxu0  ;;  %v5222_v14 = vsel %vm8523_vm11, %v5217_v34, %v5221_v36  ;;  %v5240_v4 = vor.u32 %v5239_v56, %v5236_v51  ;;  %v10106_v23 = vld [vmem:[#allocation2 + $0xb0] sm:$0x1]  ;;  %v5261_v38 = vshll.u32 %v4957_v54, 16  ;;  %v4960_v56 = vld [vmem:[#allocation2 + $0xb4] sm:$0xf] }
 0x231   : > { %v5249_v2 = vrot.slane %v5247_v19, 4  ;;  %v10102_v5 = vadd.f32 %v9985_v47, %v7732_v9  ;;  %v5232_v10 = vsel %vm8523_vm11, %v5227_v43, %v5231_v0  ;;  %v5267_v31 = vshll.u32 %v10093_v8, 16  ;;  %v8197_v47 = vld [vmem:[#allocation2 + $0x90] sm:$0xff]  }
 0x232   : > { %v5260_v11 = vrot.slane %v5258_v57, 4  ;;  %v2173_v27 = vpop.f32.mrf.mxu1  ;;  %v10109_v52 = vpop.f32.mrf.mxu0  ;;  %v7322_v30 = vcombine.low %v5222_v14, %v5232_v10  ;;  %v5241_v36 = vrot.slane %v5240_v4, 4  ;;  %v5271_v51 = vshrl.u32 %v10093_v8, 16  ;;  %v10116_v57 = vld [vmem:[#allocation2 + $0xb8] sm:$0xf] }
 0x233   : > { %11472 = vst [vmem:[#allocation24_spill] sm:$0xff] %v10102_v5  ;;  %v5250_v34 = vor.u32 %v5249_v2, %v5245_v58  ;;  %v5255_v19 = vrot.slane %v5253_v16, 5  ;;  %v5263_v0 = vrot.slane %v5261_v38, 5  ;;  %v5269_v43 = vrot.slane %v5267_v31, 5  ;;  %11474 = vst [vmem:[#allocation26_spill] sm:$0xff] %v10116_v57 }
 0x234   : > { %7935 = vmatmul.mubr.msk.bf16.gmra.mxu1 %vm2026_vm8, %v8196_v25  ;;  %v10114_v9 = vadd.f32 %v9997_v50, %v2173_v27  ;;  %v7733_v54 = vpop.f32.mrf.mxu1  ;;  %v10118_v5 = vpop.f32.mrf.mxu0  ;;  %7972 = vmatprep.mubr.msk.bf16.mxu0 %vm2026_vm8, %v7322_v30  ;;  %v5273_v4 = vrot.slane %v5271_v51, 4  ;;  %v5277_v2 = vshll.u32 %v10106_v23, 16  ;;  %v5282_v50 = vshrl.u32 %v4960_v56, 16 }
 0x235   : > { %11475 = vst [vmem:[#allocation27_spill] sm:$0xff] %v10118_v5  ;;  %v5251_v14 = vrot.slane %v5250_v34, 4  ;;  %7938 = vmatprep.mubr.msk.bf16.mxu1 %vm2026_vm8, %v8197_v47  ;;  %v10124_v16 = vadd.f32 %v10014_v12, %v7733_v54  ;;  %v5264_v31 = vor.u32 %v5263_v0, %v5260_v11  ;;  %v5285_v27 = vshll.u32 %v4960_v56, 16  ;;  %v10132_v34 = vld [vmem:[#allocation2 + $0xbc] sm:$0x1] }
 0x236   : > { %11473 = vst [vmem:[#allocation25_spill] sm:$0xff] %v10114_v9  ;;  %v10126_v10 = vpop.f32.mrf.mxu1  ;;  %v5246_v25 = vsel %vm8523_vm11, %v5241_v36, %v5245_v58  ;;  %v5274_v38 = vor.u32 %v5273_v4, %v5269_v43  ;;  %11478 = vst [vmem:[#allocation30_spill] sm:$0xff] %v10132_v34  ;;  %v5291_v51 = vshll.u32 %v10116_v57, 16  ;;  %v4963_v47 = vld [vmem:[#allocation2 + $0xc0] sm:$0xf]  ;;  %v5284_v0 = vrot.slane %v5282_v50, 4 }
 0x237   : > { %11476 = vst [vmem:[#allocation28_spill] sm:$0xff] %v10124_v16  ;;  %11477 = vst [vmem:[#allocation29_spill] sm:$0xff] %v10126_v10  ;;  %v5256_v30 = vsel %vm8523_vm11, %v5251_v14, %v5255_v19  ;;  %v10135_v5 = vpop.f32.mrf.mxu0  ;;  %v5265_v11 = vrot.slane %v5264_v31, 4  ;;  %v5287_v54 = vrot.slane %v5285_v27, 5  ;;  %v5279_v56 = vrot.slane %v5277_v2, 5  ;;  %v8198_v31 = vld [vmem:[#allocation2 + $0x9c] sm:$0xff]  }
 0x238   : > { %v7323_v12 = vcombine.low %v5246_v25, %v5256_v30  ;;  %v5275_v16 = vrot.slane %v5274_v38, 4  ;;  %v5293_v10 = vrot.slane %v5291_v51, 5  ;;  %v5295_v58 = vshrl.u32 %v10116_v57, 16  ;;  %v10138_v9 = vld [vmem:[#allocation2 + $0xc4] sm:$0xf]  ;;  %v8199_v57 = vld [vmem:[#allocation2 + $0xa8] sm:$0xff]  }
 0x239   : > { %v7736_v36 = vpop.f32.mrf.mxu1  ;;  %11479 = vst [vmem:[#allocation31_spill] sm:$0xff] %v10138_v9  ;;  %v10140_v19 = vpop.f32.mrf.mxu0  ;;  %v5288_v14 = vor.u32 %v5287_v54, %v5284_v0  ;;  %v5301_v4 = vshll.u32 %v10132_v34, 16  ;;  %v5306_v50 = vshrl.u32 %v4963_v47, 16  ;;  %v5270_v2 = vsel %vm8523_vm11, %v5265_v11, %v5269_v43  ;;  %v10151_v38 = vld [vmem:[#allocation2 + $0xc8] sm:$0x1] }
 0x23a   : > { %7973 = vmatmul.mubr.msk.bf16.gmra.mxu0 %vm2026_vm8, %v7323_v12  ;;  %v10145_v25 = vadd.f32 %v10045_v53, %v7736_v36  ;;  %v5280_v27 = vsel %vm8523_vm11, %v5275_v16, %v5279_v56  ;;  %v5297_v30 = vrot.slane %v5295_v58, 4  ;;  %11481 = vst [vmem:[#allocation33_spill] sm:$0xff] %v10151_v38  ;;  %v5309_v51 = vshll.u32 %v4963_v47, 16  ;;  %v940_v47 = vld [vmem:[#allocation2 + $0xcc] sm:$0x1] }
 0x23b   : > { %v2189_v12 = vpop.f32.mrf.mxu1  ;;  %v10153_v0 = vpop.f32.mrf.mxu0  ;;  %v7324_v54 = vcombine.low %v5270_v2, %v5280_v27  ;;  %v5308_v53 = vrot.slane %v5306_v50, 4  ;;  %v5315_v36 = vshll.u32 %v10138_v9, 16  ;;  %v5319_v11 = vshrl.u32 %v10138_v9, 16 }
 0x23c   : > { %11480 = vst [vmem:[#allocation32_spill] sm:$0xff] %v10145_v25  ;;  %7939 = vmatmul.mubr.msk.bf16.gmra.mxu1 %vm2026_vm8, %v8198_v31  ;;  %v5289_v25 = vrot.slane %v5288_v14, 4  ;;  %v5298_v34 = vor.u32 %v5297_v30, %v5293_v10  ;;  %v5311_v43 = vrot.slane %v5309_v51, 5  ;;  %v5325_v2 = vshll.u32 %v10151_v38, 16  ;;  %v10176_v38 = vld [vmem:[#allocation2 + $0xd0] sm:$0xf] }
 0x23d   : > { %7942 = vmatprep.mubr.msk.bf16.mxu1 %vm2026_vm8, %v8199_v57  ;;  %v7737_v16 = vpop.f32.mrf.mxu1  ;;  %v10159_v56 = vpop.f32.mrf.mxu0  ;;  %7976 = vmatprep.mubr.msk.bf16.mxu0 %vm2026_vm8, %v7324_v54  ;;  %v5317_v58 = vrot.slane %v5315_v36, 5  ;;  %v10164_v31 = vadd.f32 %v10058_v37, %v2189_v12  ;;  %v5303_v27 = vrot.slane %v5301_v4, 5  ;;  %v5321_v51 = vrot.slane %v5319_v11, 4 }
 0x23e   : > { %11482 = vst [vmem:[#allocation34_spill] sm:$0xff] %v10159_v56  ;;  %v10167_v14 = vadd.f32 %v10063_v35, %v7737_v16  ;;  %v5299_v50 = vrot.slane %v5298_v34, 4  ;;  %v5312_v30 = vor.u32 %v5311_v43, %v5308_v53  ;;  %v941_v54 = vsel %vm8459_vm4, 0, %v940_v47  ;;  %v996_v56 = vld [vmem:[#allocation2 + $0xd4] sm:$0x1] }
 0x23f   : > { %v10169_v57 = vpop.f32.mrf.mxu1  ;;  %v10171_v9 = vpop.f32.mrf.mxu0  ;;  %v5717_v36 = vrot.slane %v9818_v28, 5  ;;  %v5294_v37 = vsel %vm8523_vm11, %v5289_v25, %v5293_v10  ;;  %v5322_v4 = vor.u32 %v5321_v51, %v5317_v58  ;;  %942 = vst [vmem:[#allocation2 + $0xcc] sm:$0x1] %v941_v54  ;;  %v5651_v43 = vld [vmem:[#allocation2 + $0x18] sm:$0xe]  ;;  %v5327_v11 = vrot.slane %v5325_v2, 5 }
 0x240   : > { %11483 = vst [vmem:[#allocation35_spill] sm:$0xff] %v10167_v14  ;;  %11484 = vst [vmem:[#allocation36_spill] sm:$0xff] %v10169_v57  ;;  %v5304_v35 = vsel %vm8523_vm11, %v5299_v50, %v5303_v27  ;;  %v5313_v34 = vrot.slane %v5312_v30, 4  ;;  %v8200_v16 = vld [vmem:[#allocation2 + $0xb4] sm:$0xff]   ;;  %v8201_v57 = vld [vmem:[#allocation2 + $0xc0] sm:$0xff]   ;;  %v5720_v25 = vrot.slane %v9826_v59, 5 }
 0x241   : > { %v7740_v12 = vpop.f32.mrf.mxu1  ;;  %v10182_v53 = vpop.f32.mrf.mxu0  ;;  %v7325_v18 = vcombine.low %v5294_v37, %v5304_v35  ;;  %v5719_v47 = vrot.slane %v5717_v36, 4  ;;  %v5323_v14 = vrot.slane %v5322_v4, 4  ;;  %v997_v50 = vsel %vm8467_vm6, 0, %v996_v56 }
 0x242   : > { %v10185_v28 = vadd.f32 %v10090_v13, %v7740_v12  ;;  %v5339_v27 = vshll.u32 %v10176_v38, 16  ;;  %v5318_v13 = vsel %vm8523_vm11, %v5313_v34, %v5317_v58  ;;  %v7345_v51 = vrot.slane %v5651_v43, 9  ;;  %998 = vst [vmem:[#allocation2 + $0xd4] sm:$0x1] %v997_v50 }
 0x243   : > { %v2205_v10 = vpop.f32.mrf.mxu1  ;;  %v10191_v30 = vpop.f32.mrf.mxu0  ;;  %7977 = vmatmul.mubr.msk.bf16.gmra.mxu0 %vm2026_vm8, %v7325_v18  ;;  %v5343_v59 = vshrl.u32 %v10176_v38, 16  ;;  %v5328_v56 = vsel %vm8523_vm11, %v5323_v14, %v5327_v11  ;;  %v5721_v37 = vsel %vm9095_vm3, %v5719_v47, %v5720_v25  ;;  %v10213_v34 = vadd.f32 %v9766_v46, %v9875_v61 }
 0x244   : > { %7943 = vmatmul.mubr.msk.bf16.gmra.mxu1 %vm2026_vm8, %v8200_v16  ;;  %v10198_v2 = vadd.f32 %v10097_v39, %v2205_v10  ;;  %v10206_v58 = vrot.slane %v5339_v27, 5  ;;  %v5724_v39 = vrot.slane %v9845_v3, 5  ;;  %v7326_v4 = vcombine.low %v5318_v13, %v5328_v56 }
 0x245   : > { %7946 = vmatprep.mubr.msk.bf16.mxu1 %vm2026_vm8, %v8201_v57  ;;  %v7741_v54 = vpop.f32.mrf.mxu1  ;;  %v10208_v35 = vpop.f32.mrf.mxu0  ;;  %v5345_v14 = vrot.slane %v5343_v59, 4  ;;  %v5653_v57 = vld [vmem:[#allocation2 + $0x30] sm:$0xe]  ;;  %v5718_v18 = vsel %vm9095_vm3, %v7345_v51, %v5717_v36  ;;  %v7346_v16 = vrot.slane %v5652_v21, 9  ;;  %v5731_v3 = vrot.slane %v9873_v60, 5 }
 0x246   : > { %11485 = vst [vmem:[#allocation37_spill] sm:$0xff] %v10208_v35  ;;  %v10216_v12 = vadd.f32 %v10109_v52, %v7741_v54  ;;  %v5726_v47 = vrot.slane %v5724_v39, 4  ;;  %v10227_v46 = vadd.f32 %v9835_v26, %v9950_v6  ;;  %7980 = vmatprep.mubr.msk.bf16.mxu0 %vm2026_vm8, %v7326_v4  ;;  %v8202_v61 = vld [vmem:[#allocation2 + $0xcc] sm:$0xff]   ;;  %v7363_v52 = vcombine.low %v5718_v18, %v5721_v37 }
 0x247   : > { %v10218_v43 = vpop.f32.mrf.mxu1  ;;  %v10222_v11 = vpop.f32.mrf.mxu0  ;;  %v4966_v10 = vld [vmem:[#allocation2 + $0xcc] sm:$0xf]  ;;  %v5346_v25 = vor.u32 %v5345_v14, %v10206_v58  ;;  %v5727_v50 = vrot.slane %v9856_v48, 5  ;;  %v10234_v51 = vsel %vm9095_vm3, %v7346_v16, %v5724_v39  ;;  %v7347_v26 = vrot.slane %v5653_v57, 9  ;;  %v5654_v48 = vld [vmem:[#allocation2 + $0x3c] sm:$0xe] }
 0x248   : > { %v5330_v27 = vshrl.u32 %v4966_v10, 16  ;;  %v5333_v13 = vshll.u32 %v4966_v10, 16  ;;  %v5733_v21 = vrot.slane %v5731_v3, 4  ;;  %v5734_v56 = vrot.slane %v9885_v45, 5  ;;  %v5655_v10 = vld [vmem:[#allocation2 + $0x48] sm:$0xe] }
 0x249   : > { %v7744_v36 = vpop.f32.mrf.mxu1  ;;  %v10236_v60 = vpop.f32.mrf.mxu0  ;;  %v5728_v59 = vsel %vm9095_vm3, %v5726_v47, %v5727_v50  ;;  %v10244_v37 = vld [vmem:[#allocation2 + $0xd4] sm:$0x1]  ;;  %v5732_v39 = vsel %vm9095_vm3, %v7347_v26, %v5731_v3  ;;  %v5347_v16 = vrot.slane %v5346_v25, 4  ;;  %v5759_v15 = vrot.slane %v9962_v55, 5 }
 0x24a   : > { %v10239_v6 = vadd.f32 %v10135_v5, %v7744_v36  ;;  %v5332_v4 = vrot.slane %v5330_v27, 4  ;;  %v5335_v14 = vrot.slane %v5333_v13, 5  ;;  %v5738_v5 = vrot.slane %v9891_v32, 5  ;;  %v5656_v13 = vld [vmem:[#allocation2 + $0x54] sm:$0xe] }
 0x24b   : > { %v2221_v54 = vpop.f32.mrf.mxu1  ;;  %v10248_v18 = vpop.f32.mrf.mxu0  ;;  %v5349_v45 = vshll.u32 %v10244_v37, 16  ;;  %v5735_v47 = vsel %vm9095_vm3, %v5733_v21, %v5734_v56  ;;  %v7348_v27 = vrot.slane %v5654_v48, 9  ;;  %v7364_v26 = vcombine.low %v10234_v51, %v5728_v59 }
 0x24c   : > { %7947 = vmatmul.mubr.msk.bf16.gmra.mxu1 %vm2026_vm8, %v8202_v61  ;;  %v10253_v57 = vadd.f32 %v10140_v19, %v2221_v54  ;;  %v5336_v50 = vor.u32 %v5335_v14, %v5332_v4  ;;  %v5740_v32 = vrot.slane %v5738_v5, 4  ;;  %v5741_v61 = vrot.slane %v9900_v63, 5  ;;  %v5657_v14 = vld [vmem:[#allocation2 + $0x60] sm:$0xe] }
 0x24d   : > { %7986 = vmatprep.mubr.msk.bf16.mxu1 %vm2026_vm8, %v7363_v52  ;;  %v7745_v3 = vpop.f32.mrf.mxu1  ;;  %v10259_v36 = vpop.f32.mrf.mxu0  ;;  %v5351_v19 = vrot.slane %v5349_v45, 5  ;;  %v5745_v21 = vrot.slane %v9912_v17, 5  ;;  %v7365_v52 = vcombine.low %v5732_v39, %v5735_v47  ;;  %v10273_v48 = vsel %vm9095_vm3, %v7348_v27, %v5738_v5 }
 0x24e   : > { %11486 = vst [vmem:[#allocation38_spill] sm:$0xff] %v10259_v36  ;;  %v10263_v25 = vadd.f32 %v10153_v0, %v7745_v3  ;;  %v5337_v56 = vrot.slane %v5336_v50, 4  ;;  %v10277_v63 = vsel %vm9095_vm3, %v5740_v32, %v5741_v61  ;;  %v7349_v51 = vrot.slane %v5655_v10, 9 }
 0x24f   : > { %v10267_v54 = vpop.f32.mrf.mxu1  ;;  %v10269_v4 = vpop.f32.mrf.mxu0  ;;  %v5352_v0 = vsel %vm8523_vm11, %v5347_v16, %v5351_v19  ;;  %v5748_v17 = vrot.slane %v9920_v33, 5  ;;  %v7350_v59 = vrot.slane %v5656_v13, 9  ;;  %v7366_v5 = vcombine.low %v10273_v48, %v10277_v63  ;;  %v5658_v19 = vld [vmem:[#allocation2 + $0x6c] sm:$0xe] }
 0x250   : > { %v5342_v39 = vsel %vm8523_vm11, %v5337_v56, %v10206_v58  ;;  %v5747_v50 = vrot.slane %v5745_v21, 4  ;;  %v5752_v3 = vrot.slane %v9942_v1, 5  ;;  %v10295_v33 = vsel %vm9095_vm3, %v7349_v51, %v5745_v21  ;;  %v5659_v51 = vld [vmem:[#allocation2 + $0x78] sm:$0xe] }
 0x251   : > { %v7784_v45 = vpop.f32.mrf.mxu1  ;;  %v10287_v47 = vpop.f32.mrf.mxu0  ;;  %v7327_v27 = vcombine.low %v5342_v39, %v5352_v0  ;;  %v5755_v13 = vrot.slane %v9944_v44, 5  ;;  %v7351_v1 = vrot.slane %v5657_v14, 9  ;;  %v5761_v21 = vrot.slane %v5759_v15, 4  ;;  %v5660_v14 = vld [vmem:[#allocation2 + $0x84] sm:$0xe] }
 0x252   : > { %v10291_v16 = vadd.f32 %v7784_v45, %v9918_v20  ;;  %v5749_v10 = vsel %vm9095_vm3, %v5747_v50, %v5748_v17  ;;  %v5754_v61 = vrot.slane %v5752_v3, 4  ;;  %v10310_v55 = vsel %vm9095_vm3, %v7350_v59, %v5752_v3  ;;  %v11488_v3 = vld [vmem:[#allocation9_spill] sm:$0xff] }
 0x253   : > { %v2833_v58 = vpop.f32.mrf.mxu1  ;;  %v10300_v32 = vpop.f32.mrf.mxu0  ;;  %7981 = vmatmul.mubr.msk.bf16.gmra.mxu0 %vm2026_vm8, %v7327_v27  ;;  %v5762_v56 = vrot.slane %v9967_v22, 5  ;;  %v7367_v44 = vcombine.low %v10295_v33, %v5749_v10  ;;  %v5766_v0 = vrot.slane %v9983_v62, 5  ;;  %v7352_v59 = vrot.slane %v5658_v19, 9 }
 0x254   : > { %7987 = vmatmul.mubr.msk.bf16.vlgmr.msra.gmra.mxu1 %vm2026_vm8, %v7364_v26  ;;  %v10306_v20 = vadd.f32 %v2833_v58, %v9936_v7  ;;  %v10319_v26 = vsel %vm9095_vm3, %v5754_v61, %v5755_v13  ;;  %v10323_v7 = vsel %vm9095_vm3, %v7351_v1, %v5759_v15  ;;  %v5769_v27 = vrot.slane %v11488_v3, 5  ;;  %v11491_v61 = vld [vmem:[#allocation14_spill] sm:$0xff] }
 0x255   : > { %7990 = vmatprep.mubr.msk.bf16.mxu1 %vm2026_vm8, %v7365_v52  ;;  %v7785_v48 = vpop.f32.mrf.mxu1  ;;  %v10315_v63 = vpop.f32.mrf.mxu0  ;;  %v10333_v17 = vsel %vm9095_vm3, %v5761_v21, %v5762_v56  ;;  %v5768_v62 = vrot.slane %v5766_v0, 4  ;;  %v10346_v58 = vsel %vm9095_vm3, %v7352_v59, %v5766_v0  ;;  %v7353_v10 = vrot.slane %v5659_v51, 9  ;;  %v11494_v59 = vld [vmem:[#allocation18_spill] sm:$0xff] }
 0x256   : > { %11487 = vst [vmem:[#allocation39_spill] sm:$0xff] %v10315_v63  ;;  %v10327_v22 = vadd.f32 %v7785_v48, %v9940_v49  ;;  %v11489_v49 = vld [vmem:[#allocation10_spill] sm:$0xff]  ;;  %v5780_v13 = vrot.slane %v11491_v61, 5  ;;  %v11492_v48 = vld [vmem:[#allocation12_spill] sm:$0xff]  ;;  %v5783_v61 = vrot.slane %v11494_v59, 5 }
 0x257   : > { %v2836_v39 = vpop.f32.mrf.mxu1  ;;  %v10335_v45 = vpop.f32.mrf.mxu0  ;;  %v5773_v33 = vrot.slane %v11489_v49, 5  ;;  %v10353_v21 = vsel %vm9095_vm3, %v5768_v62, %v5769_v27  ;;  %v5776_v3 = vrot.slane %v11492_v48, 5  ;;  %v7354_v49 = vrot.slane %v5660_v14, 9  ;;  %v5662_v48 = vld [vmem:[#allocation2 + $0x9c] sm:$0xe] }
 0x258   : > { %v10342_v15 = vadd.f32 %v2836_v39, %v10213_v34  ;;  %v5661_v34 = vld [vmem:[#allocation2 + $0x90] sm:$0xe]  ;;  %v11493_v39 = vld [vmem:[#allocation6_spill] sm:$0xff]  ;;  %v5782_v51 = vrot.slane %v5780_v13, 4 }
 0x259   : > { %v7788_v1 = vpop.f32.mrf.mxu1  ;;  %v10349_v19 = vpop.f32.mrf.mxu0  ;;  %v5775_v56 = vrot.slane %v5773_v33, 4  ;;  %v10366_v62 = vsel %vm9095_vm3, %v7353_v10, %v5773_v33  ;;  %v10374_v27 = vsel %vm9095_vm3, %v7354_v49, %v5780_v13  ;;  %v7355_v10 = vrot.slane %v5661_v34, 9 }
 0x25a   : > { %11490 = vst [vmem:[#allocation9_spill] sm:$0xff] %v10342_v15  ;;  %v10357_v50 = vadd.f32 %v7788_v1, %v11493_v39  ;;  %v5787_v1 = vrot.slane %v10048_v29, 5  ;;  %v11495_v39 = vld [vmem:[#allocation7_spill] sm:$0xff]  ;;  %v10383_v33 = vsel %vm9095_vm3, %v5782_v51, %v5783_v61  ;;  %v5794_v49 = vrot.slane %v10074_v40, 5 }
 0x25b   : > { %v2849_v52 = vpop.f32.mrf.mxu1  ;;  %v10362_v63 = vpop.f32.mrf.mxu0  ;;  %v10370_v14 = vsel %vm9095_vm3, %v5775_v56, %v5776_v3  ;;  %v5663_v56 = vld [vmem:[#allocation2 + $0xa8] sm:$0xe]  ;;  %v7356_v34 = vrot.slane %v5662_v48, 9 }
 0x25c   : > { %7991 = vmatmul.mubr.msk.bf16.gmra.mxu1 %vm2026_vm8, %v7366_v5  ;;  %v2964_v59 = vadd.f32 %v2849_v52, %v11495_v39  ;;  %v5789_v5 = vrot.slane %v5787_v1, 4  ;;  %v5790_v52 = vrot.slane %v10056_v41, 5  ;;  %v11497_v39 = vld [vmem:[#allocation8_spill] sm:$0xff]  ;;  %v10395_v51 = vsel %vm9095_vm3, %v7355_v10, %v5787_v1  ;;  %v5664_v10 = vld [vmem:[#allocation2 + $0xb4] sm:$0xe] }
 0x25d   : > { %7994 = vmatprep.mubr.msk.bf16.mxu1 %vm2026_vm8, %v7367_v44  ;;  %v7789_v13 = vpop.f32.mrf.mxu1  ;;  %v10386_v3 = vpop.f32.mrf.mxu0  ;;  %v5801_v44 = vrot.slane %v10093_v8, 5  ;;  %v5797_v41 = vrot.slane %v10087_v24, 5  ;;  %v7357_v40 = vrot.slane %v5663_v56, 9  ;;  %v5804_v8 = vrot.slane %v10106_v23, 5 }
 0x25e   : > { %11496 = vst [vmem:[#allocation10_spill] sm:$0xff] %v10386_v3  ;;  %v2967_v0 = vadd.f32 %v7789_v13, %v11497_v39  ;;  %v10402_v29 = vsel %vm9095_vm3, %v5789_v5, %v5790_v52  ;;  %v5796_v3 = vrot.slane %v5794_v49, 4  ;;  %v10415_v5 = vsel %vm9095_vm3, %v7356_v34, %v5794_v49  ;;  %v11500_v52 = vld [vmem:[#allocation11_spill] sm:$0xff] }
 0x25f   : > { %v2852_v61 = vpop.f32.mrf.mxu1  ;;  %v10398_v36 = vpop.f32.mrf.mxu0  ;;  %v5803_v48 = vrot.slane %v5801_v44, 4  ;;  %v10427_v23 = vsel %vm9095_vm3, %v7357_v40, %v5801_v44  ;;  %v11502_v1 = vcombine.low %v10310_v55, %v10319_v26  ;;  %v11503_v44 = vld [vmem:[#allocation13_spill] sm:$0xff]  ;;  %v11505_v55 = vld [vmem:[#allocation16_spill] sm:$0xff] }
 0x260   : > { %v10406_v13 = vadd.f32 %v2852_v61, %v10227_v46  ;;  %v10419_v24 = vsel %vm9095_vm3, %v5796_v3, %v5797_v41  ;;  %v11499_v46 = vld [vmem:[#allocation26_spill] sm:$0xff]  ;;  %v7358_v41 = vrot.slane %v5664_v10, 9 }
 0x261   : > { %v7792_v39 = vpop.f32.mrf.mxu1  ;;  %v10411_v35 = vpop.f32.mrf.mxu0  ;;  %v5808_v56 = vrot.slane %v11499_v46, 5 }
 0x262   : > { %11498 = vst [vmem:[#allocation14_spill] sm:$0xff] %v10406_v13  ;;  %v2970_v61 = vadd.f32 %v7792_v39, %v11500_v52  ;;  %v10431_v13 = vsel %vm9095_vm3, %v5803_v48, %v5804_v8  ;;  %v11501_v39 = vld [vmem:[#allocation30_spill] sm:$0xff]  ;;  %v11504_v48 = vcombine.low %v10323_v7, %v10333_v17  ;;  %v10464_v17 = vadd.f32 %v10171_v9, %v10291_v16  ;;  %v6546_v16 = vld [vmem:[%s11414_s10] sm:$0xf] }
 0x263   : > { %v2865_v49 = vpop.f32.mrf.mxu1  ;;  %v10433_v34 = vpop.f32.mrf.mxu0  ;;  %v7375_v3 = vcombine.low %v10427_v23, %v10431_v13  ;;  %v5810_v46 = vrot.slane %v5808_v56, 4  ;;  %v5811_v52 = vrot.slane %v11501_v39, 5  ;;  %v10451_v10 = vsel %vm9095_vm3, %v7358_v41, %v5808_v56  ;;  %8087 = vmatprep.subr.msk.bf16.mxu1 %vm602_vm0, %v6546_v16 }
 0x264   : > { %7995 = vmatmul.mubr.msk.bf16.gmra.mxu1 %vm2026_vm8, %v11502_v1  ;;  %v2968_v40 = vadd.f32 %v2865_v49, %v11503_v44  ;;  %v10468_v56 = vadd.f32 %v10182_v53, %v10306_v20  ;;  %v10472_v41 = vadd.f32 %v10191_v30, %v10327_v22  ;;  %v10484_v9 = vadd.f32 %v10236_v60, %v2964_v59  ;;  %v8203_v30 = vld [vmem:[%s11411_s7] sm:$0xff]  }
 0x265   : > { %7998 = vmatprep.mubr.msk.bf16.mxu1 %vm2026_vm8, %v11504_v48  ;;  %v7793_v8 = vpop.f32.mrf.mxu1  ;;  %v10447_v15 = vpop.f32.mrf.mxu0  ;;  %v10455_v39 = vsel %vm9095_vm3, %v5810_v46, %v5811_v52  ;;  %v11506_v46 = vld [vmem:[#allocation17_spill] sm:$0xff]  ;;  %v10487_v53 = vadd.f32 %v10248_v18, %v2967_v0  ;;  %v11507_v20 = vld [vmem:[#allocation19_spill] sm:$0xff]  ;;  %8018 = vmatprep.subr.bf16.mxu0 %v8203_v30  ;;  %v6548_v0 = vsel %vm602_vm0, %v6546_v16, 0  ;;  %v11508_v59 = vcombine.low %v10346_v58, %v10353_v21 }
 0x266   : > { %v2971_v26 = vadd.f32 %v7793_v8, %v11505_v55  ;;  %v10481_v8 = vadd.f32 %v10222_v11, %v10357_v50  ;;  %v10497_v55 = vadd.f32 %v10269_v4, %v2970_v61  ;;  %v10500_v11 = vadd.f32 %v10287_v47, %v2968_v40  ;;  %v11509_v4 = vld [vmem:[#allocation20_spill] sm:$0xff]  ;;  %8019 = vmatpush3.bf16.msra.mxu0 %v8203_v30  ;;  %v11512_v16 = vld [vmem:[#allocation23_spill] sm:$0xff] }
 0x267   : > { %v2868_v49 = vpop.f32.mrf.mxu1  ;;  %v10460_v7 = vpop.f32.mrf.mxu0  ;;  %v11510_v40 = vcombine.low %v10366_v62, %v10370_v14  ;;  %8053 = vmatpush3.bf16.msra.mxu1 %v6548_v0  ;;  %v11513_v14 = vld [vmem:[#allocation24_spill] sm:$0xff]  ;;  %vm6853_vm0 = vcmask 261120  }
 0x268   : > { %v10475_v52 = vadd.f32 %v2868_v49, %v11506_v46  ;;  %v10506_v50 = vadd.f32 %v10300_v32, %v2971_v26  ;;  %v11511_v49 = vld [vmem:[#allocation21_spill] sm:$0xff] }
 0x269   : > { %v7796_v44 = vpop.f32.mrf.mxu1  ;;  %v10477_v48 = vpop.f32.mrf.mxu0 }
 0x26a   : > { %v2974_v22 = vadd.f32 %v7796_v44, %v11507_v20 }
 0x26b   : > { %v2881_v60 = vpop.f32.mrf.mxu1  ;;  %v10503_v18 = vpop.f32.mrf.mxu0 }
 0x26c   : > { %7999 = vmatmul.mubr.msk.bf16.gmra.mxu1 %vm2026_vm8, %v11508_v59  ;;  %v2972_v61 = vadd.f32 %v2881_v60, %v11509_v4  ;;  %v10515_v47 = vadd.f32 %v10335_v45, %v2974_v22  ;;  %v11515_v59 = vld [vmem:[#allocation25_spill] sm:$0xff] }
 0x26d   : > { %8002 = vmatprep.mubr.msk.bf16.mxu1 %vm2026_vm8, %v11510_v40  ;;  %v7797_v32 = vpop.f32.mrf.mxu1  ;;  %v3278_v26 = vpop.f32.mrf.mxu0 }
 0x26e   : > { %v2975_v46 = vadd.f32 %v7797_v32, %v11511_v49  ;;  %v10523_v58 = vadd.f32 %v10349_v19, %v2972_v61  ;;  %v11514_v19 = vcombine.low %v10374_v27, %v10383_v33  ;;  %v11517_v49 = vld [vmem:[#allocation29_spill] sm:$0xff] }
 0x26f   : > { %v2884_v21 = vpop.f32.mrf.mxu1  ;;  %v7842_v44 = vpop.f32.mrf.mxu0 }
 0x270   : > { %v10526_v20 = vadd.f32 %v2884_v21, %v11512_v16  ;;  %v10529_v45 = vadd.f32 %v10362_v63, %v2975_v46  ;;  %v11516_v63 = vcombine.low %v10395_v51, %v10402_v29  ;;  %v11518_v46 = vld [vmem:[#allocation15_spill] sm:$0xff]  ;;  %v11519_v16 = vld [vmem:[#allocation28_spill] sm:$0xff] }
 0x271   : > { %v7800_v30 = vpop.f32.mrf.mxu1  ;;  %v10531_v62 = vpop.f32.mrf.mxu0  ;;  %v2472_v21 = vadd.f32 %v11518_v46, %v11517_v49 }
 0x272   : > { %v2978_v22 = vadd.f32 %v7800_v30, %v11513_v14 }
 0x273   : > { %v2897_v60 = vpop.f32.mrf.mxu1  ;;  %v10534_v0 = vpop.f32.mrf.mxu0 }
 0x274   : > { %8003 = vmatmul.mubr.msk.bf16.gmra.mxu1 %vm2026_vm8, %v11514_v19  ;;  %v2976_v4 = vadd.f32 %v2897_v60, %v11515_v59  ;;  %v10542_v61 = vadd.f32 %v10398_v36, %v2978_v22  ;;  %v11520_v22 = vld [vmem:[#allocation31_spill] sm:$0xff]  ;;  %v11521_v59 = vld [vmem:[#allocation32_spill] sm:$0xff] }
 0x275   : > { %8006 = vmatprep.mubr.msk.bf16.mxu1 %vm2026_vm8, %v11516_v63  ;;  %v7801_v40 = vpop.f32.mrf.mxu1  ;;  %v10548_v32 = vpop.f32.mrf.mxu0  ;;  %v5815_v60 = vrot.slane %v11520_v22, 5  ;;  %v11525_v22 = vld [vmem:[#allocation35_spill] sm:$0xff] }
 0x276   : > { %v2979_v27 = vadd.f32 %v7801_v40, %v11519_v16  ;;  %v10554_v33 = vadd.f32 %v10411_v35, %v2976_v4  ;;  %v11522_v4 = vcombine.low %v10415_v5, %v10419_v24  ;;  %v5665_v16 = vld [vmem:[#allocation2 + $0xc0] sm:$0xe]  ;;  %v11523_v5 = vld [vmem:[#allocation36_spill] sm:$0xff]  ;;  %v11524_v24 = vld [vmem:[#allocation22_spill] sm:$0xff] }
 0x277   : > { %v2900_v30 = vpop.f32.mrf.mxu1  ;;  %v10556_v14 = vpop.f32.mrf.mxu0 }
 0x278   : > { %v2977_v36 = vadd.f32 %v2900_v30, %v2472_v21  ;;  %v10560_v29 = vadd.f32 %v10433_v34, %v2979_v27  ;;  %v5817_v34 = vrot.slane %v5815_v60, 4  ;;  %v5822_v30 = vrot.slane %v10176_v38, 5 }
 0x279   : > { %v7804_v51 = vpop.f32.mrf.mxu1  ;;  %v10562_v19 = vpop.f32.mrf.mxu0 }
 0x27a   : > { %v2982_v63 = vadd.f32 %v7804_v51, %v11521_v59  ;;  %v10566_v49 = vadd.f32 %v10447_v15, %v2977_v36  ;;  %v2488_v36 = vadd.f32 %v11524_v24, %v11523_v5  ;;  %v11526_v51 = vld [vmem:[#allocation33_spill] sm:$0xff]  ;;  %v5824_v24 = vrot.slane %v5822_v30, 4 }
 0x27b   : > { %v2913_v40 = vpop.f32.mrf.mxu1  ;;  %v10568_v35 = vpop.f32.mrf.mxu0  ;;  %v5818_v59 = vrot.slane %v11526_v51, 5 }
 0x27c   : > { %8007 = vmatmul.mubr.msk.bf16.gmra.mxu1 %vm2026_vm8, %v11522_v4  ;;  %v2980_v46 = vadd.f32 %v2913_v40, %v10164_v31  ;;  %v10576_v21 = vadd.f32 %v10460_v7, %v2982_v63  ;;  %v5666_v7 = vld [vmem:[#allocation2 + $0xcc] sm:$0xe]  ;;  %v7359_v40 = vrot.slane %v5665_v16, 9 }
 0x27d   : > { %8010 = vmatprep.mubr.msk.bf16.mxu1 %vm2026_vm8, %v7375_v3  ;;  %v7805_v15 = vpop.f32.mrf.mxu1  ;;  %v10582_v27 = vpop.f32.mrf.mxu0  ;;  %v5819_v4 = vsel %vm9095_vm3, %v5817_v34, %v5818_v59  ;;  %v7360_v5 = vrot.slane %v5666_v7, 9 }
 0x27e   : > { %v2983_v31 = vadd.f32 %v7805_v15, %v11525_v22  ;;  %v10590_v63 = vadd.f32 %v10477_v48, %v2980_v46  ;;  %v5825_v15 = vrot.slane %v10244_v37, 5  ;;  %v5816_v48 = vsel %vm9095_vm3, %v7359_v40, %v5815_v60  ;;  %v11528_v60 = vld [vmem:[#allocation27_spill] sm:$0xff] }
 0x27f   : > { %v2916_v13 = vpop.f32.mrf.mxu1  ;;  %v7886_v23 = vpop.f32.mrf.mxu0  ;;  %v7377_v16 = vcombine.low %v5816_v48, %v5819_v4  ;;  %v5823_v37 = vsel %vm9095_vm3, %v7360_v5, %v5822_v30 }
 0x280   : > { %v2981_v3 = vadd.f32 %v2916_v13, %v2488_v36  ;;  %v10595_v38 = vadd.f32 %v10503_v18, %v2983_v31  ;;  %v11527_v18 = vcombine.low %v10451_v10, %v10455_v39  ;;  %v2504_v10 = vadd.f32 %v11528_v60, %v10218_v43 }
 0x281   : > { %v4399_v22 = vpop.f32.mrf.mxu0 }
 0x282   : > { %v7808_v1 = vpop.f32.mrf.mxu1  ;;  %v10601_v46 = vadd.f32 %v3278_v26, %v2981_v3 }
 0x283   : > { %v2986_v51 = vadd.f32 %v7808_v1, %v10185_v28  ;;  %v7887_v13 = vpop.f32.mrf.mxu0  ;;  %v5826_v1 = vsel %vm9095_vm3, %v5824_v24, %v5825_v15 }
 0x284   : > { %v2929_v36 = vpop.f32.mrf.mxu1  ;;  %8011 = vmatmul.mubr.msk.bf16.gmra.mxu1 %vm2026_vm8, %v11527_v18  ;;  %v7378_v3 = vcombine.low %v5823_v37, %v5826_v1 }
 0x285   : > { %v2984_v34 = vadd.f32 %v2929_v36, %v10198_v2  ;;  %v10608_v31 = vadd.f32 %v7842_v44, %v2986_v51  ;;  %8014 = vmatprep.mubr.msk.bf16.mxu1 %vm2026_vm8, %v7377_v16  ;;  %v10615_v26 = vpop.f32.mrf.mxu0 }
 0x286   : > { %v7809_v28 = vpop.f32.mrf.mxu1 }
 0x287   : > { %v2987_v39 = vadd.f32 %v7809_v28, %v10216_v12  ;;  %v10621_v2 = vadd.f32 %v10531_v62, %v2984_v34  ;;  %v7890_v59 = vpop.f32.mrf.mxu0 }
 0x288   : > { %v2932_v44 = vpop.f32.mrf.mxu1 }
 0x289   : > { %v2985_v7 = vadd.f32 %v2932_v44, %v2504_v10  ;;  %v10624_v30 = vadd.f32 %v10534_v0, %v2987_v39  ;;  %v4415_v40 = vpop.f32.mrf.mxu0  ;;  %v8213_v0 = vld [vmem:[%s8423_s15] sm:$0xff]   ;;  %v8214_v10 = vld [vmem:[%s8423_s15 + $0x8] sm:$0xff]  }
 0x28a   : > { %v7812_v42 = vpop.f32.mrf.mxu1 }
 0x28b   : > { %v2990_v4 = vadd.f32 %v7812_v42, %v10239_v6  ;;  %v10628_v5 = vadd.f32 %v10548_v32, %v2985_v7  ;;  %v7891_v12 = vpop.f32.mrf.mxu0  ;;  %v11529_v6 = vld [vmem:[#allocation34_spill] sm:$0xff]  ;;  %v11531_v7 = vld [vmem:[#allocation37_spill] sm:$0xff] }
 0x28c   : > { %v2945_v43 = vpop.f32.mrf.mxu1  ;;  %8015 = vmatmul.mubr.msk.bf16.gmra.mxu1 %vm2026_vm8, %v7378_v3  ;;  %v2520_v32 = vadd.f32 %v11529_v6, %v10267_v54 }
 0x28d   : > { %v2988_v62 = vadd.f32 %v2945_v43, %v10253_v57  ;;  %v10633_v24 = vadd.f32 %v10556_v14, %v2990_v4  ;;  %v10635_v51 = vpop.f32.mrf.mxu0  ;;  %8054 = vmatprep.mubr.msk.bf16.mxu1 %vm553_vm1, %v8213_v0 }
 0x28e   : > { %v7813_v15 = vpop.f32.mrf.mxu1 }
 0x28f   : > { %v2991_v48 = vadd.f32 %v7813_v15, %v10263_v25  ;;  %v10643_v16 = vadd.f32 %v10562_v19, %v2988_v62  ;;  %v7894_v57 = vpop.f32.mrf.mxu0 }
 0x290   : > { %v2948_v36 = vpop.f32.mrf.mxu1 }
 0x291   : > { %v2989_v14 = vadd.f32 %v2948_v36, %v2520_v32  ;;  %v10646_v18 = vadd.f32 %v10568_v35, %v2991_v48  ;;  %v4431_v28 = vpop.f32.mrf.mxu0  ;;  %v8215_v35 = vld [vmem:[%s8423_s15 + $0x10] sm:$0xff]   ;;  %v8216_v36 = vld [vmem:[%s8423_s15 + $0x18] sm:$0xff]  }
 0x292   : > { %v7852_v34 = vpop.f32.mrf.mxu1 }
 0x293   : > { %v4054_v37 = vadd.f32 %v7852_v34, %v10464_v17  ;;  %v10650_v1 = vadd.f32 %v10582_v27, %v2989_v14  ;;  %v7895_v60 = vpop.f32.mrf.mxu0  ;;  %v11530_v27 = vld [vmem:[#allocation9_spill] sm:$0xff]  ;;  %v8217_v34 = vld [vmem:[%s8423_s15 + $0x20] sm:$0xff]  }
 0x294   : > { %v3925_v54 = vpop.f32.mrf.mxu1  ;;  %8055 = vmatmul.mubr.msk.bf16.vlgmr.msra.gmra.mxu1 %vm553_vm1, %v8214_v10  ;;  %v3323_v3 = vadd.f32 %v11531_v7, %v11530_v27 }
 0x295   : > { %v4052_v25 = vadd.f32 %v3925_v54, %v10468_v56  ;;  %v10653_v19 = vadd.f32 %v7886_v23, %v4054_v37  ;;  %v10657_v44 = vpop.f32.mrf.mxu0  ;;  %8058 = vmatprep.mubr.msk.bf16.mxu1 %vm553_vm1, %v8215_v35  ;;  %v11532_v37 = vld [vmem:[#allocation14_spill] sm:$0xff] }
 0x296   : > { %v7853_v39 = vpop.f32.mrf.mxu1 }
 0x297   : > { %v4055_v17 = vadd.f32 %v7853_v39, %v10472_v41  ;;  %v10664_v42 = vadd.f32 %v4399_v22, %v4052_v25  ;;  %v7898_v23 = vpop.f32.mrf.mxu0 }
 0x298   : > { %v3928_v56 = vpop.f32.mrf.mxu1 }
 0x299   : > { %v10666_v4 = vadd.f32 %v3928_v56, %v3323_v3  ;;  %v10668_v43 = vadd.f32 %v7887_v13, %v4055_v17  ;;  %v4447_v15 = vpop.f32.mrf.mxu0 }
 0x29a   : > { %v7856_v62 = vpop.f32.mrf.mxu1 }
 0x29b   : > { %v4058_v0 = vadd.f32 %v7856_v62, %v10481_v8  ;;  %v7899_v32 = vpop.f32.mrf.mxu0  ;;  %v11533_v8 = vld [vmem:[#allocation38_spill] sm:$0xff]  ;;  %v8218_v62 = vld [vmem:[%s8423_s15 + $0x28] sm:$0xff]  }
 0x29c   : > { %v3941_v6 = vpop.f32.mrf.mxu1  ;;  %8059 = vmatmul.mubr.msk.bf16.gmra.mxu1 %vm553_vm1, %v8216_v36  ;;  %v3327_v54 = vadd.f32 %v11533_v8, %v11532_v37 }
 0x29d   : > { %v4056_v41 = vadd.f32 %v3941_v6, %v10484_v9  ;;  %v10672_v48 = vadd.f32 %v7890_v59, %v4058_v0  ;;  %v10676_v14 = vpop.f32.mrf.mxu0  ;;  %8062 = vmatprep.mubr.msk.bf16.mxu1 %vm553_vm1, %v8217_v34  ;;  %v8219_v6 = vld [vmem:[%s8423_s15 + $0x30] sm:$0xff]  }
 0x29e   : > { %v7857_v22 = vpop.f32.mrf.mxu1 }
 0x29f   : > { %v4059_v13 = vadd.f32 %v7857_v22, %v10487_v53  ;;  %v10683_v25 = vadd.f32 %v4415_v40, %v4056_v41  ;;  %v7902_v59 = vpop.f32.mrf.mxu0 }
 0x2a0   : > { %v3944_v9 = vpop.f32.mrf.mxu1 }
 0x2a1   : > { %v10685_v10 = vadd.f32 %v3944_v9, %v3327_v54  ;;  %v10687_v39 = vadd.f32 %v7891_v12, %v4059_v13  ;;  %v4463_v17 = vpop.f32.mrf.mxu0 }
 0x2a2   : > { %v7860_v35 = vpop.f32.mrf.mxu1 }
 0x2a3   : > { %v4062_v27 = vadd.f32 %v7860_v35, %v10497_v55  ;;  %v7903_v3 = vpop.f32.mrf.mxu0  ;;  %v11534_v55 = vld [vmem:[#allocation39_spill] sm:$0xff] }
 0x2a4   : > { %v3957_v7 = vpop.f32.mrf.mxu1  ;;  %8063 = vmatmul.mubr.msk.bf16.gmra.mxu1 %vm553_vm1, %v8218_v62  ;;  %v3331_v41 = vadd.f32 %v11534_v55, %v10475_v52  ;;  %v8220_v52 = vld [vmem:[%s8423_s15 + $0x38] sm:$0xff]  }
 0x2a5   : > { %v4060_v53 = vadd.f32 %v3957_v7, %v10500_v11  ;;  %v10691_v56 = vadd.f32 %v7894_v57, %v4062_v27  ;;  %v10695_v0 = vpop.f32.mrf.mxu0  ;;  %8066 = vmatprep.mubr.msk.bf16.mxu1 %vm553_vm1, %v8219_v6  ;;  %v8221_v27 = vld [vmem:[%s8423_s15 + $0x40] sm:$0xff]   ;;  %v11535_v7 = vld [vmem:[#allocation10_spill] sm:$0xff] }
 0x2a6   : > { %v7861_v40 = vpop.f32.mrf.mxu1 }
 0x2a7   : > { %v4063_v12 = vadd.f32 %v7861_v40, %v10506_v50  ;;  %v10702_v36 = vadd.f32 %v4431_v28, %v4060_v53  ;;  %v7906_v57 = vpop.f32.mrf.mxu0 }
 0x2a8   : > { %v3960_v11 = vpop.f32.mrf.mxu1 }
 0x2a9   : > { %v10704_v22 = vadd.f32 %v3960_v11, %v3331_v41  ;;  %v10706_v34 = vadd.f32 %v7895_v60, %v4063_v12  ;;  %v4479_v37 = vpop.f32.mrf.mxu0 }
 0x2aa   : > { %v7864_v13 = vpop.f32.mrf.mxu1 }
 0x2ab   : > { %v4066_v8 = vadd.f32 %v7864_v13, %v10515_v47  ;;  %v7907_v50 = vpop.f32.mrf.mxu0  ;;  %v3335_v47 = vadd.f32 %v11535_v7, %v10526_v20  ;;  %v8222_v13 = vld [vmem:[%s8423_s15 + $0x48] sm:$0xff]  }
 0x2ac   : > { %v3973_v54 = vpop.f32.mrf.mxu1  ;;  %8067 = vmatmul.mubr.msk.bf16.gmra.mxu1 %vm553_vm1, %v8220_v52 }
 0x2ad   : > { %v4064_v9 = vadd.f32 %v3973_v54, %v10523_v58  ;;  %v10710_v35 = vadd.f32 %v7898_v23, %v4066_v8  ;;  %8070 = vmatprep.mubr.msk.bf16.mxu1 %vm553_vm1, %v8221_v27  ;;  %v10723_v23 = vpop.f32.mrf.mxu0 }
 0x2ae   : > { %v7865_v28 = vpop.f32.mrf.mxu1 }
 0x2af   : > { %v4067_v60 = vadd.f32 %v7865_v28, %v10529_v45  ;;  %v10719_v53 = vadd.f32 %v4447_v15, %v4064_v9  ;;  %v7910_v45 = vpop.f32.mrf.mxu0  ;;  %v8223_v15 = vld [vmem:[%s8423_s15 + $0x50] sm:$0xff]  }
 0x2b0   : > { %v3976_v58 = vpop.f32.mrf.mxu1 }
 0x2b1   : > { %v10721_v62 = vadd.f32 %v3976_v58, %v3335_v47  ;;  %v10725_v40 = vadd.f32 %v7899_v32, %v4067_v60  ;;  %v8224_v47 = vld [vmem:[%s8423_s15 + $0x58] sm:$0xff]  }
 0x2b2   : > { %v7868_v6 = vpop.f32.mrf.mxu1 }
 0x2b3   : > { %v4070_v12 = vadd.f32 %v7868_v6, %v10542_v61 }
 0x2b4   : > { %v3989_v55 = vpop.f32.mrf.mxu1  ;;  %8071 = vmatmul.mubr.msk.bf16.gmra.mxu1 %vm553_vm1, %v8222_v13 }
 0x2b5   : > { %v4068_v41 = vadd.f32 %v3989_v55, %v10554_v33  ;;  %v10729_v11 = vadd.f32 %v7902_v59, %v4070_v12  ;;  %8074 = vmatprep.mubr.msk.bf16.mxu1 %vm553_vm1, %v8223_v15  ;;  %v4495_v33 = vpop.f32.mrf.mxu0  ;;  %v8227_v15 = vld [vmem:[%s8423_s15 + $0x70] sm:$0xff]  }
 0x2b6   : > { %v7869_v20 = vpop.f32.mrf.mxu1 }
 0x2b7   : > { %v4071_v32 = vadd.f32 %v7869_v20, %v10560_v29  ;;  %v10736_v8 = vadd.f32 %v4463_v17, %v4068_v41  ;;  %v7911_v60 = vpop.f32.mrf.mxu0  ;;  %v8225_v17 = vld [vmem:[%s8423_s15 + $0x60] sm:$0xff]  }
 0x2b8   : > { %v3992_v61 = vpop.f32.mrf.mxu1 }
 0x2b9   : > { %v10739_v54 = vadd.f32 %v3992_v61, %v10566_v49  ;;  %v10741_v59 = vadd.f32 %v7903_v3, %v4071_v32  ;;  %v10754_v58 = vpop.f32.mrf.mxu0 }
 0x2ba   : > { %v7872_v9 = vpop.f32.mrf.mxu1  ;;  %11536 = vst [vmem:[#allocation12_spill] sm:$0xff] %v10754_v58 }
 0x2bb   : > { %v4074_v52 = vadd.f32 %v7872_v9, %v10576_v21  ;;  %v7914_v41 = vpop.f32.mrf.mxu0 }
 0x2bc   : > { %v4005_v28 = vpop.f32.mrf.mxu1  ;;  %8075 = vmatmul.mubr.msk.bf16.gmra.mxu1 %vm553_vm1, %v8224_v47 }
 0x2bd   : > { %v4072_v27 = vadd.f32 %v4005_v28, %v10590_v63  ;;  %v10745_v7 = vadd.f32 %v7906_v57, %v4074_v52  ;;  %8078 = vmatprep.mubr.msk.bf16.mxu1 %vm553_vm1, %v8225_v17  ;;  %v8228_v52 = vld [vmem:[%s8423_s15 + $0x78] sm:$0xff]  }
 0x2be   : > { %v7873_v29 = vpop.f32.mrf.mxu1 }
 0x2bf   : > { %v4075_v49 = vadd.f32 %v7873_v29, %v10595_v38  ;;  %v10752_v3 = vadd.f32 %v4479_v37, %v4072_v27  ;;  %v8226_v38 = vld [vmem:[%s8423_s15 + $0x68] sm:$0xff]   ;;  %s6900_s15 = sshll.u32 %s11152_s21, 4  ;;  %s11356_s15 = int_to_ptr.vmem [resolvable:$true] %s6900_s15 }
 0x2c0   : > { %v4008_v21 = vpop.f32.mrf.mxu1  ;;  %s8229_s20 = scalar_lea.vmem %s11356_s15, 4096  ;;  %p8236_p0 = scmp.lt.s32.totalorder %s11356_s15, %s8234_s23 }
 0x2c1   : > { %v10757_v63 = vadd.f32 %v4008_v21, %v10601_v46  ;;  %v10759_v57 = vadd.f32 %v7907_v50, %v4075_v49  ;;  %p8230_p11 = scmp.ne.s32.totalorder %s11356_s15, %s8229_s20  ;;  %p8237_p1 = scmp.lt.s32.totalorder %s8235_s30, %s8229_s20 }
 0x2c2   : > { %v7876_v6 = vpop.f32.mrf.mxu1 }
 0x2c3   : > { %v4078_v12 = vadd.f32 %v7876_v6, %v10608_v31  ;;  %v4511_v31 = vpop.f32.mrf.mxu0  ;;  %p8231_p12 = pnand %p8230_p11, %p8403_p5  ;;  %p8238_p2 = por %p8237_p1, %p8236_p0 }
 0x2c4   : > { %v4021_v55 = vpop.f32.mrf.mxu1  ;;  %8079 = vmatmul.mubr.msk.bf16.gmra.mxu1 %vm553_vm1, %v8226_v38 }
 0x2c5   : > { %v4076_v13 = vadd.f32 %v4021_v55, %v10621_v2  ;;  %v10763_v20 = vadd.f32 %v7910_v45, %v4078_v12  ;;  %8082 = vmatprep.mubr.msk.bf16.mxu1 %vm553_vm1, %v8227_v15  ;;  %v7915_v2 = vpop.f32.mrf.mxu0  ;;  %p8232_p13 = pneg %p8231_p12 }
 0x2c6   : > { %v7877_v37 = vpop.f32.mrf.mxu1 }
 0x2c7   : > { %v4079_v46 = vadd.f32 %v7877_v37, %v10624_v30  ;;  %v10770_v50 = vadd.f32 %v4495_v33, %v4076_v13  ;;  %v10783_v33 = vpop.f32.mrf.mxu0  ;;  %p8239_p3 = pnand %p8238_p2, %p8232_p13 }
 0x2c8   : > { %v4024_v32 = vpop.f32.mrf.mxu1  ;;  %11538 = vst [vmem:[#allocation18_spill] sm:$0xff] %v10783_v33 }
 0x2c9   : > { %v10773_v61 = vadd.f32 %v4024_v32, %v10628_v5  ;;  %v10775_v9 = vadd.f32 %v7911_v60, %v4079_v46  ;;  %v10793_v6 = vpop.f32.mrf.mxu0 }
 0x2cb   : > { %11537 = vst [vmem:[#allocation6_spill] sm:$0xff] %v10773_v61 }
 0x2cc   : > { %v7880_v45 = vpop.f32.mrf.mxu1  ;;  %8083 = vmatmul.mubr.msk.bf16.gmra.mxu1 %vm553_vm1, %v8228_v52 }
 0x2cd   : > { %v4082_v28 = vadd.f32 %v7880_v45, %v10633_v24 }
 0x2ce   : > { %v4037_v27 = vpop.f32.mrf.mxu1 }
 0x2cf   : > { %v4080_v47 = vadd.f32 %v4037_v27, %v10643_v16  ;;  %v10781_v30 = vadd.f32 %v7914_v41, %v4082_v28  ;;  %v10801_v41 = vpop.f32.mrf.mxu0 }
 0x2d0   : > { %v7881_v29 = vpop.f32.mrf.mxu1 }
 0x2d1   : > { %v4083_v5 = vadd.f32 %v7881_v29, %v10646_v18  ;;  %v10786_v17 = vadd.f32 %v4511_v31, %v4080_v47  ;;  %v10808_v38 = vpop.f32.mrf.mxu0 }
 0x2d2   : > { %v4040_v60 = vpop.f32.mrf.mxu1 }
 0x2d3   : > { %v10789_v49 = vadd.f32 %v4040_v60, %v10650_v1  ;;  %v10791_v21 = vadd.f32 %v7915_v2, %v4083_v5 }
 0x2d4   : > { %v7920_v24 = vpop.f32.mrf.mxu1 }
 0x2d5   : > { %11539 = vst [vmem:[#allocation7_spill] sm:$0xff] %v10789_v49  ;;  %v10796_v16 = vadd.f32 %v7920_v24, %v10653_v19 }
 0x2d6   : > { %v4762_v12 = vpop.f32.mrf.mxu1 }
 0x2d7   : > { %v10799_v55 = vadd.f32 %v4762_v12, %v10664_v42  ;;  %v10816_v42 = vpop.f32.mrf.mxu0 }
 0x2d8   : > { %v7921_v18 = vpop.f32.mrf.mxu1 }
 0x2d9   : > { %v10804_v13 = vadd.f32 %v7921_v18, %v10668_v43  ;;  %v10823_v2 = vpop.f32.mrf.mxu0 }
 0x2da   : > { %v10806_v1 = vpop.f32.mrf.mxu1 }
 0x2dc   : > { %v7924_v37 = vpop.f32.mrf.mxu1 }
 0x2dd   : > { %v10811_v15 = vadd.f32 %v7924_v37, %v10672_v48 }
 0x2de   : > { %v4778_v19 = vpop.f32.mrf.mxu1 }
 0x2df   : > { %v10814_v46 = vadd.f32 %v4778_v19, %v10683_v25  ;;  %v10831_v25 = vpop.f32.mrf.mxu0 }
 0x2e0   : > { %v7925_v32 = vpop.f32.mrf.mxu1 }
 0x2e1   : > { %v10819_v31 = vadd.f32 %v7925_v32, %v10687_v39  ;;  %v10838_v29 = vpop.f32.mrf.mxu0 }
 0x2e2   : > { %v10821_v43 = vpop.f32.mrf.mxu1 }
 0x2e4   : > { %v7928_v45 = vpop.f32.mrf.mxu1 }
 0x2e5   : > { %v10826_v52 = vadd.f32 %v7928_v45, %v10691_v56 }
 0x2e6   : > { %v4794_v48 = vpop.f32.mrf.mxu1 }
 0x2e7   : > { %v10829_v28 = vadd.f32 %v4794_v48, %v10702_v36  ;;  %v10846_v36 = vpop.f32.mrf.mxu0 }
 0x2e8   : > { %v7929_v27 = vpop.f32.mrf.mxu1 }
 0x2e9   : > { %v10834_v47 = vadd.f32 %v7929_v27, %v10706_v34  ;;  %v10853_v37 = vpop.f32.mrf.mxu0 }
 0x2ea   : > { %v10836_v39 = vpop.f32.mrf.mxu1 }
 0x2ec   : > { %v7932_v5 = vpop.f32.mrf.mxu1 }
 0x2ed   : > { %v10841_v60 = vadd.f32 %v7932_v5, %v10710_v35 }
 0x2ee   : > { %v4810_v56 = vpop.f32.mrf.mxu1 }
 0x2ef   : > { %v10844_v24 = vadd.f32 %v4810_v56, %v10719_v53  ;;  %v10861_v53 = vpop.f32.mrf.mxu0 }
 0x2f0   : > { %v7933_v12 = vpop.f32.mrf.mxu1 }
 0x2f1   : > { %v10849_v18 = vadd.f32 %v7933_v12, %v10725_v40  ;;  %v10868_v5 = vpop.f32.mrf.mxu0 }
 0x2f2   : > { %v10851_v34 = vpop.f32.mrf.mxu1 }
 0x2f4   : > { %v7936_v19 = vpop.f32.mrf.mxu1 }
 0x2f5   : > { %v10856_v32 = vadd.f32 %v7936_v19, %v10729_v11 }
 0x2f6   : > { %v4826_v35 = vpop.f32.mrf.mxu1 }
 0x2f7   : > { %v10859_v45 = vadd.f32 %v4826_v35, %v10736_v8  ;;  %v10876_v8 = vpop.f32.mrf.mxu0 }
 0x2f8   : > { %v7937_v48 = vpop.f32.mrf.mxu1 }
 0x2f9   : > { %v10864_v27 = vadd.f32 %v7937_v48, %v10741_v59  ;;  %v10883_v48 = vpop.f32.mrf.mxu0 }
 0x2fa   : > { %v10866_v40 = vpop.f32.mrf.mxu1 }
 0x2fc   : > { %v7940_v56 = vpop.f32.mrf.mxu1 }
 0x2fd   : > { %v10871_v12 = vadd.f32 %v7940_v56, %v10745_v7 }
 0x2fe   : > { %v4842_v11 = vpop.f32.mrf.mxu1 }
 0x2ff   : > { %v10874_v19 = vadd.f32 %v4842_v11, %v10752_v3  ;;  %v10891_v3 = vpop.f32.mrf.mxu0 }
 0x300   : > { %v7941_v35 = vpop.f32.mrf.mxu1 }
 0x301   : > { %11540 = vst [vmem:[#allocation8_spill] sm:$0xff] %v10874_v19  ;;  %v10879_v33 = vadd.f32 %v7941_v35, %v10759_v57  ;;  %v10898_v35 = vpop.f32.mrf.mxu0 }
 0x302   : > { %v10881_v59 = vpop.f32.mrf.mxu1 }
 0x303   : > { %11541 = vst [vmem:[#allocation26_spill] sm:$0xff] %v10879_v33 }
 0x304   : > { %v7944_v49 = vpop.f32.mrf.mxu1 }
 0x305   : > { %v10886_v58 = vadd.f32 %v7944_v49, %v10763_v20 }
 0x306   : > { %v4858_v7 = vpop.f32.mrf.mxu1 }
 0x307   : > { %v10889_v56 = vadd.f32 %v4858_v7, %v10770_v50  ;;  %v10906_v50 = vpop.f32.mrf.mxu0 }
 0x308   : > { %v7945_v11 = vpop.f32.mrf.mxu1 }
 0x309   : > { %11542 = vst [vmem:[#allocation11_spill] sm:$0xff] %v10889_v56  ;;  %v10894_v61 = vadd.f32 %v7945_v11, %v10775_v9  ;;  %v5621_v11 = vadd.f32 %v10793_v6, %v10796_v16 }
 0x30a   : > { %v10896_v57 = vpop.f32.mrf.mxu1 }
 0x30b   : > { %11543 = vst [vmem:[#allocation30_spill] sm:$0xff] %v10894_v61  ;;  %v4527_v61 = vadd.f32 %v10615_v26, %v10666_v4  ;;  %v5622_v26 = vadd.f32 %v10808_v38, %v10804_v13  ;;  %v5625_v38 = vadd.f32 %v10823_v2, %v10811_v15  ;;  %v5626_v15 = vadd.f32 %v10838_v29, %v10819_v31 }
 0x30c   : > { %v7948_v33 = vpop.f32.mrf.mxu1 }
 0x30d   : > { %v10901_v19 = vadd.f32 %v7948_v33, %v10781_v30  ;;  %v10917_v30 = vpop.f32.mrf.mxu0 }
 0x30e   : > { %v4874_v20 = vpop.f32.mrf.mxu1 }
 0x30f   : > { %v10904_v49 = vadd.f32 %v4874_v20, %v10786_v17  ;;  %v10922_v17 = vld [vmem:[%s11409_s5] ss:$0 sm:$0xff]  ;;  %v10930_v4 = vpop.f32.mrf.mxu0 }
 0x310   : > { %v7949_v7 = vpop.f32.mrf.mxu1 }
 0x311   : > { %11544 = vst [vmem:[#allocation13_spill] sm:$0xff] %v10904_v49  ;;  %v10909_v56 = vadd.f32 %v7949_v7, %v10791_v21  ;;  %v5619_v21 = vadd.f32 %v10801_v41, %v10799_v55  ;;  %v4890_v7 = vadd.f32 %v10806_v1, %v4527_v61  ;;  %v4531_v1 = vadd.f32 %v10635_v51, %v10685_v10 }
 0x312   : > { %v10911_v9 = vpop.f32.mrf.mxu1 }
 0x313   : > { %11545 = vst [vmem:[#allocation16_spill] sm:$0xff] %v10909_v56  ;;  %11546 = vst [vmem:[#allocation17_spill] sm:$0xff] %v10911_v9  ;;  %v10935_v9 = vld [vmem:[%s11410_s6] ss:$0 sm:$0xff]  ;;  %v5620_v61 = vadd.f32 %v10816_v42, %v4890_v7  ;;  %v5623_v7 = vadd.f32 %v10831_v25, %v10814_v46 }
 0x314   : > { %v7988_v33 = vpop.f32.mrf.mxu1 }
 0x315   : > { %v6095_v20 = vadd.f32 %v7988_v33, %v5621_v11 }
 0x316   : > { %v5966_v56 = vpop.f32.mrf.mxu1 }
 0x317   : > { %v6134_v6 = vmul.f32 %v10922_v17, %v6095_v20  ;;  %v6093_v16 = vadd.f32 %v5966_v56, %v5619_v21  ;;  %v10945_v20 = vpop.f32.mrf.mxu0 }
 0x318   : > { %v7989_v11 = vpop.f32.mrf.mxu1 }
 0x319   : > { %v6096_v33 = vadd.f32 %v7989_v11, %v5622_v26  ;;  %v6132_v55 = vmul.f32 %v10922_v17, %v6093_v16  ;;  %v6173_v56 = vadd.f32 %v10935_v9, %v6134_v6  ;;  %v4894_v26 = vadd.f32 %v10821_v43, %v4531_v1  ;;  %v10956_v43 = vpop.f32.mrf.mxu0 }
 0x31a   : > { %v5969_v41 = vpop.f32.mrf.mxu1 }
 0x31b   : > { %v6135_v13 = vmul.f32 %v10922_v17, %v6096_v33  ;;  %v6094_v21 = vadd.f32 %v5969_v41, %v5620_v61  ;;  %v6171_v51 = vadd.f32 %v10935_v9, %v6132_v55  ;;  %v6205_v2 = vmax.f32 %v6173_v56, 0.0 }
 0x31c   : > { %v7992_v49 = vpop.f32.mrf.mxu1  ;;  %v5624_v55 = vadd.f32 %v10846_v36, %v4894_v26 }
 0x31d   : > { %v6174_v16 = vadd.f32 %v10935_v9, %v6135_v13  ;;  %v6099_v42 = vadd.f32 %v7992_v49, %v5625_v38  ;;  %v6133_v10 = vmul.f32 %v10922_v17, %v6094_v21  ;;  %v4535_v13 = vadd.f32 %v10657_v44, %v10704_v22 }
 0x31e   : > { %v5982_v6 = vpop.f32.mrf.mxu1  ;;  %v6203_v31 = vmax.f32 %v6171_v51, 0.0  ;;  %v5627_v44 = vadd.f32 %v10861_v53, %v10829_v28  ;;  %v5630_v53 = vadd.f32 %v10868_v5, %v10834_v47 }
 0x31f   : > { %v6206_v11 = vmax.f32 %v6174_v16, 0.0  ;;  %v6138_v33 = vmul.f32 %v10922_v17, %v6099_v42  ;;  %v6097_v61 = vadd.f32 %v5982_v6, %v5623_v7  ;;  %v6172_v49 = vadd.f32 %v10935_v9, %v6133_v10  ;;  %v10968_v10 = vpop.f32.mrf.mxu0 }
 0x320   : > { %v7993_v41 = vpop.f32.mrf.mxu1  ;;  %v5629_v42 = vadd.f32 %v10853_v37, %v10826_v52  ;;  %v4898_v7 = vadd.f32 %v10836_v39, %v4535_v13 }
 0x321   : > { %v6236_v1 = vpack.c.bf16 %v6206_v11, %v6205_v2  ;;  %v6136_v46 = vmul.f32 %v10922_v17, %v6097_v61  ;;  %v6100_v25 = vadd.f32 %v7993_v41, %v5626_v15  ;;  %v6204_v29 = vmax.f32 %v6172_v49, 0.0 }
 0x322   : > { %v5985_v56 = vpop.f32.mrf.mxu1  ;;  %v6177_v38 = vadd.f32 %v10935_v9, %v6138_v33  ;;  %v10978_v33 = vpop.f32.mrf.mxu0  ;;  %v5628_v49 = vadd.f32 %v10876_v8, %v4898_v7 }
 0x323   : > { %v6139_v21 = vmul.f32 %v10922_v17, %v6100_v25  ;;  %v6098_v16 = vadd.f32 %v5985_v56, %v5624_v55  ;;  %v6235_v6 = vpack.c.bf16 %v6204_v29, %v6203_v31  ;;  %v6175_v22 = vadd.f32 %v10935_v9, %v6136_v46 }
 0x324   : > { %v7996_v36 = vpop.f32.mrf.mxu1  ;;  %v6209_v52 = vmax.f32 %v6177_v38, 0.0  ;;  %v4539_v38 = vadd.f32 %v10676_v14, %v10721_v62 }
 0x325   : > { %v6178_v26 = vadd.f32 %v10935_v9, %v6139_v21  ;;  %v6137_v51 = vmul.f32 %v10922_v17, %v6098_v16  ;;  %v6103_v15 = vadd.f32 %v7996_v36, %v5629_v42  ;;  %8020 = vmatprep.mubr.msk.bf16.mxu0 %vm2026_vm8, %v6235_v6  ;;  %v6207_v41 = vmax.f32 %v6175_v22, 0.0  ;;  %v10989_v21 = vpop.f32.mrf.mxu0 }
 0x326   : > { %v5998_v2 = vpop.f32.mrf.mxu1  ;;  %8021 = vmatmul.mubr.msk.bf16.vlgmr.msra.gmra.mxu0 %vm2026_vm8, %v6236_v1  ;;  %v5633_v1 = vadd.f32 %v10883_v48, %v10841_v60  ;;  %v5631_v60 = vadd.f32 %v10891_v3, %v10844_v24  ;;  %v4902_v48 = vadd.f32 %v10851_v34, %v4539_v38  ;;  %v5634_v22 = vadd.f32 %v10898_v35, %v10849_v18 }
 0x327   : > { %v6210_v37 = vmax.f32 %v6178_v26, 0.0  ;;  %v6176_v39 = vadd.f32 %v10935_v9, %v6137_v51  ;;  %v6101_v11 = vadd.f32 %v5998_v2, %v5627_v44  ;;  %v6142_v28 = vmul.f32 %v10922_v17, %v6103_v15  ;;  %v11005_v26 = vpop.f32.mrf.mxu0 }
 0x328   : > { %v7997_v61 = vpop.f32.mrf.mxu1 }
 0x329   : > { %v6238_v46 = vpack.c.bf16 %v6210_v37, %v6209_v52  ;;  %v6208_v25 = vmax.f32 %v6176_v39, 0.0  ;;  %v6140_v55 = vmul.f32 %v10922_v17, %v6101_v11  ;;  %v6104_v13 = vadd.f32 %v7997_v61, %v5630_v53 }
 0x32a   : > { %v6001_v31 = vpop.f32.mrf.mxu1  ;;  %v6181_v47 = vadd.f32 %v10935_v9, %v6142_v28  ;;  %v4543_v52 = vadd.f32 %v10695_v0, %v10739_v54  ;;  %v5632_v11 = vadd.f32 %v10906_v50, %v4902_v48  ;;  %v5637_v61 = vadd.f32 %v10917_v30, %v10856_v32 }
 0x32b   : > { %v6237_v29 = vpack.c.bf16 %v6208_v25, %v6207_v41  ;;  %v6102_v56 = vadd.f32 %v6001_v31, %v5628_v49  ;;  %v6143_v5 = vmul.f32 %v10922_v17, %v6104_v13  ;;  %v6179_v16 = vadd.f32 %v10935_v9, %v6140_v55  ;;  %v7978_v49 = vpop.f32.mrf.mxu0 }
 0x32c   : > { %v8000_v8 = vpop.f32.mrf.mxu1  ;;  %v6213_v51 = vmax.f32 %v6181_v47, 0.0  ;;  %v4906_v25 = vadd.f32 %v10866_v40, %v4543_v52  ;;  %v5635_v50 = vadd.f32 %v10930_v4, %v10859_v45  ;;  %v5638_v32 = vadd.f32 %v10945_v20, %v10864_v27 }
 0x32d   : > { %v6141_v42 = vmul.f32 %v10922_v17, %v6102_v56  ;;  %v6107_v7 = vadd.f32 %v8000_v8, %v5633_v1  ;;  %8024 = vmatprep.mubr.msk.bf16.mxu0 %vm2026_vm8, %v6237_v29  ;;  %v6182_v14 = vadd.f32 %v10935_v9, %v6143_v5  ;;  %v6211_v3 = vmax.f32 %v6179_v16, 0.0  ;;  %v5588_v1 = vpop.f32.mrf.mxu0 }
 0x32e   : > { %v6014_v62 = vpop.f32.mrf.mxu1  ;;  %8025 = vmatmul.mubr.msk.bf16.gmra.mxu0 %vm2026_vm8, %v6238_v46  ;;  %v5636_v8 = vadd.f32 %v10956_v43, %v4906_v25  ;;  %v4547_v27 = vadd.f32 %v10723_v23, %v10757_v63  ;;  %v11547_v43 = vld [vmem:[#allocation8_spill] sm:$0xff] }
 0x32f   : > { %v6180_v6 = vadd.f32 %v10935_v9, %v6141_v42  ;;  %v6146_v36 = vmul.f32 %v10922_v17, %v6107_v7  ;;  %v6105_v44 = vadd.f32 %v6014_v62, %v5631_v60  ;;  %v6214_v15 = vmax.f32 %v6182_v14, 0.0  ;;  %v7979_v62 = vpop.f32.mrf.mxu0 }
 0x330   : > { %v8001_v24 = vpop.f32.mrf.mxu1  ;;  %v5641_v14 = vadd.f32 %v10968_v10, %v10871_v12 }
 0x331   : > { %v6212_v34 = vmax.f32 %v6180_v6, 0.0  ;;  %v6108_v2 = vadd.f32 %v8001_v24, %v5634_v22  ;;  %v6240_v37 = vpack.c.bf16 %v6214_v15, %v6213_v51  ;;  %v6144_v39 = vmul.f32 %v10922_v17, %v6105_v44 }
 0x332   : > { %v6017_v28 = vpop.f32.mrf.mxu1  ;;  %v6185_v18 = vadd.f32 %v10935_v9, %v6146_v36  ;;  %v4910_v6 = vadd.f32 %v10881_v59, %v4547_v27  ;;  %v5639_v22 = vadd.f32 %v10978_v33, %v11547_v43 }
 0x333   : > { %v6239_v53 = vpack.c.bf16 %v6212_v34, %v6211_v3  ;;  %v6147_v35 = vmul.f32 %v10922_v17, %v6108_v2  ;;  %v6106_v41 = vadd.f32 %v6017_v28, %v5632_v11  ;;  %v6183_v55 = vadd.f32 %v10935_v9, %v6144_v39  ;;  %v5591_v34 = vpop.f32.mrf.mxu0  ;;  %v11548_v2 = vld [vmem:[#allocation26_spill] sm:$0xff] }
 0x334   : > { %v8004_v46 = vpop.f32.mrf.mxu1  ;;  %v6217_v30 = vmax.f32 %v6185_v18, 0.0  ;;  %v5642_v52 = vadd.f32 %v10989_v21, %v11548_v2  ;;  %v5640_v39 = vadd.f32 %v11005_v26, %v4910_v6 }
 0x335   : > { %v6186_v0 = vadd.f32 %v10935_v9, %v6147_v35  ;;  %v6111_v54 = vadd.f32 %v8004_v46, %v5637_v61  ;;  %8028 = vmatprep.mubr.msk.bf16.mxu0 %vm2026_vm8, %v6239_v53  ;;  %v6145_v13 = vmul.f32 %v10922_v17, %v6106_v41  ;;  %v6215_v20 = vmax.f32 %v6183_v55, 0.0  ;;  %v7982_v35 = vpop.f32.mrf.mxu0 }
 0x336   : > { %v6030_v31 = vpop.f32.mrf.mxu1  ;;  %8029 = vmatmul.mubr.msk.bf16.gmra.mxu0 %vm2026_vm8, %v6240_v37 }
 0x337   : > { %v6218_v29 = vmax.f32 %v6186_v0, 0.0  ;;  %v6150_v40 = vmul.f32 %v10922_v17, %v6111_v54  ;;  %v6109_v56 = vadd.f32 %v6030_v31, %v5635_v50  ;;  %v6184_v38 = vadd.f32 %v10935_v9, %v6145_v13  ;;  %v11549_v54 = vld [vmem:[#allocation6_spill] sm:$0xff]  ;;  %v11550_v50 = vld [vmem:[#allocation12_spill] sm:$0xff] }
 0x338   : > { %v8005_v47 = vpop.f32.mrf.mxu1  ;;  %v5645_v0 = vadd.f32 %v7978_v49, %v10886_v58  ;;  %v4551_v55 = vadd.f32 %v11550_v50, %v11549_v54  ;;  %v5604_v58 = vpop.f32.mrf.mxu0 }
 0x339   : > { %v6242_v45 = vpack.c.bf16 %v6218_v29, %v6217_v30  ;;  %v6148_v4 = vmul.f32 %v10922_v17, %v6109_v56  ;;  %v6112_v5 = vadd.f32 %v8005_v47, %v5638_v32  ;;  %v6216_v16 = vmax.f32 %v6184_v38, 0.0  ;;  %v11551_v29 = vld [vmem:[#allocation11_spill] sm:$0xff] }
 0x33a   : > { %v6033_v42 = vpop.f32.mrf.mxu1  ;;  %v6189_v7 = vadd.f32 %v10935_v9, %v6150_v40  ;;  %v5643_v40 = vadd.f32 %v5588_v1, %v11551_v29  ;;  %v4914_v56 = vadd.f32 %v10896_v57, %v4551_v55  ;;  %v11553_v57 = vld [vmem:[#allocation7_spill] sm:$0xff] }
 0x33b   : > { %v6151_v60 = vmul.f32 %v10922_v17, %v6112_v5  ;;  %v6110_v48 = vadd.f32 %v6033_v42, %v5636_v8  ;;  %v6241_v36 = vpack.c.bf16 %v6216_v16, %v6215_v20  ;;  %v6187_v23 = vadd.f32 %v10935_v9, %v6148_v4  ;;  %v11552_v5 = vld [vmem:[#allocation30_spill] sm:$0xff] }
 0x33c   : > { %v8008_v44 = vpop.f32.mrf.mxu1  ;;  %v6221_v3 = vmax.f32 %v6189_v7, 0.0  ;;  %v5646_v8 = vadd.f32 %v7979_v62, %v11552_v5 }
 0x33d   : > { %v6190_v63 = vadd.f32 %v10935_v9, %v6151_v60  ;;  %v6149_v51 = vmul.f32 %v10922_v17, %v6110_v48  ;;  %v6115_v15 = vadd.f32 %v8008_v44, %v5641_v14  ;;  %8032 = vmatprep.mubr.msk.bf16.mxu0 %vm2026_vm8, %v6241_v36  ;;  %v6219_v11 = vmax.f32 %v6187_v23, 0.0  ;;  %v11554_v60 = vld [vmem:[#allocation18_spill] sm:$0xff]  ;;  %v7983_v14 = vpop.f32.mrf.mxu0 }
 0x33e   : > { %v6046_v24 = vpop.f32.mrf.mxu1  ;;  %8033 = vmatmul.mubr.msk.bf16.gmra.mxu0 %vm2026_vm8, %v6242_v45  ;;  %v4555_v48 = vadd.f32 %v11554_v60, %v11553_v57  ;;  %v5644_v44 = vadd.f32 %v5591_v34, %v4914_v56  ;;  %v11557_v34 = vld [vmem:[#allocation16_spill] sm:$0xff] }
 0x33f   : > { %v6222_v12 = vmax.f32 %v6190_v63, 0.0  ;;  %v6188_v10 = vadd.f32 %v10935_v9, %v6149_v51  ;;  %v6113_v59 = vadd.f32 %v6046_v24, %v5639_v22  ;;  %v6154_v33 = vmul.f32 %v10922_v17, %v6115_v15  ;;  %v11555_v24 = vld [vmem:[#allocation13_spill] sm:$0xff] }
 0x340   : > { %v8009_v37 = vpop.f32.mrf.mxu1  ;;  %v5649_v22 = vadd.f32 %v7982_v35, %v10901_v19  ;;  %v5650_v2 = vadd.f32 %v7983_v14, %v11557_v34 }
 0x341   : > { %v6244_v28 = vpack.c.bf16 %v6222_v12, %v6221_v3  ;;  %v6220_v53 = vmax.f32 %v6188_v10, 0.0  ;;  %v6152_v18 = vmul.f32 %v10922_v17, %v6113_v59  ;;  %v6116_v61 = vadd.f32 %v8009_v37, %v5642_v52  ;;  %v11556_v12 = vld [vmem:[#allocation17_spill] sm:$0xff]  ;;  %v5607_v52 = vpop.f32.mrf.mxu0 }
 0x342   : > { %v6049_v41 = vpop.f32.mrf.mxu1  ;;  %v6193_v21 = vadd.f32 %v10935_v9, %v6154_v33  ;;  %v5647_v3 = vadd.f32 %v5604_v58, %v11555_v24  ;;  %v4918_v10 = vadd.f32 %v11556_v12, %v4555_v48 }
 0x343   : > { %v6243_v46 = vpack.c.bf16 %v6220_v53, %v6219_v11  ;;  %v6114_v25 = vadd.f32 %v6049_v41, %v5640_v39  ;;  %v6155_v13 = vmul.f32 %v10922_v17, %v6116_v61  ;;  %v6191_v31 = vadd.f32 %v10935_v9, %v6152_v18 }
 0x344   : > { %v8012_v26 = vpop.f32.mrf.mxu1  ;;  %v6225_v27 = vmax.f32 %v6193_v21, 0.0  ;;  %v5648_v41 = vadd.f32 %v5607_v52, %v4918_v10 }
 0x345   : > { %v6153_v32 = vmul.f32 %v10922_v17, %v6114_v25  ;;  %v6119_v30 = vadd.f32 %v8012_v26, %v5645_v0  ;;  %8036 = vmatprep.mubr.msk.bf16.mxu0 %vm2026_vm8, %v6243_v46  ;;  %v6194_v49 = vadd.f32 %v10935_v9, %v6155_v13  ;;  %v6223_v42 = vmax.f32 %v6191_v31, 0.0 }
 0x346   : > { %v6062_v38 = vpop.f32.mrf.mxu1  ;;  %8037 = vmatmul.mubr.msk.bf16.gmra.mxu0 %vm2026_vm8, %v6244_v28 }
 0x347   : > { %v6192_v47 = vadd.f32 %v10935_v9, %v6153_v32  ;;  %v6158_v45 = vmul.f32 %v10922_v17, %v6119_v30  ;;  %v6117_v4 = vadd.f32 %v6062_v38, %v5643_v40  ;;  %v6226_v20 = vmax.f32 %v6194_v49, 0.0 }
 0x348   : > { %v8013_v16 = vpop.f32.mrf.mxu1 }
 0x349   : > { %v6224_v1 = vmax.f32 %v6192_v47, 0.0  ;;  %v6120_v7 = vadd.f32 %v8013_v16, %v5646_v8  ;;  %v6246_v6 = vpack.c.bf16 %v6226_v20, %v6225_v27  ;;  %v6156_v36 = vmul.f32 %v10922_v17, %v6117_v4 }
 0x34a   : > { %v6065_v43 = vpop.f32.mrf.mxu1  ;;  %v6197_v62 = vadd.f32 %v10935_v9, %v6158_v45 }
 0x34b   : > { %v6245_v23 = vpack.c.bf16 %v6224_v1, %v6223_v42  ;;  %v6159_v63 = vmul.f32 %v10922_v17, %v6120_v7  ;;  %v6118_v51 = vadd.f32 %v6065_v43, %v5644_v44  ;;  %v6195_v19 = vadd.f32 %v10935_v9, %v6156_v36  ;;  %v11108_v36 = vld [vmem:[%s11415_s11] ss:$0 sm:$0xff] }
 0x34c   : > { %v8016_v15 = vpop.f32.mrf.mxu1  ;;  %v6229_v11 = vmax.f32 %v6197_v62, 0.0 }
 0x34d   : > { %v6198_v59 = vadd.f32 %v10935_v9, %v6159_v63  ;;  %v6123_v33 = vadd.f32 %v8016_v15, %v5649_v22  ;;  %8040 = vmatprep.mubr.msk.bf16.mxu0 %vm2026_vm8, %v6245_v23  ;;  %v6157_v37 = vmul.f32 %v10922_v17, %v6118_v51  ;;  %v6227_v54 = vmax.f32 %v6195_v19, 0.0  ;;  %v11116_v22 = vld [vmem:[%s11416_s12] ss:$0 sm:$0xff] }
 0x34e   : > { %v6078_v39 = vpop.f32.mrf.mxu1  ;;  %8041 = vmatmul.mubr.msk.bf16.gmra.mxu0 %vm2026_vm8, %v6246_v6  ;;  %v11121_v23 = vld [vmem:[%s11412_s8] ss:$0 sm:$0xff] }
 0x34f   : > { %v6230_v28 = vmax.f32 %v6198_v59, 0.0  ;;  %v6162_v53 = vmul.f32 %v10922_v17, %v6123_v33  ;;  %v6121_v18 = vadd.f32 %v6078_v39, %v5647_v3  ;;  %v6196_v35 = vadd.f32 %v10935_v9, %v6157_v37  ;;  %v11127_v63 = vld [vmem:[%s11413_s9] ss:$0 sm:$0xff] }
 0x350   : > { %v8017_v61 = vpop.f32.mrf.mxu1 }
 0x351   : > { %v6248_v46 = vpack.c.bf16 %v6230_v28, %v6229_v11  ;;  %v6160_v25 = vmul.f32 %v10922_v17, %v6121_v18  ;;  %v6124_v0 = vadd.f32 %v8017_v61, %v5650_v2  ;;  %v6228_v50 = vmax.f32 %v6196_v35, 0.0 }
 0x352   : > { %v6081_v55 = vpop.f32.mrf.mxu1  ;;  %v6201_v21 = vadd.f32 %v10935_v9, %v6162_v53 }
 0x353   : > { %v6163_v13 = vmul.f32 %v10922_v17, %v6124_v0  ;;  %v6122_v26 = vadd.f32 %v6081_v55, %v5648_v41  ;;  %v6247_v31 = vpack.c.bf16 %v6228_v50, %v6227_v54  ;;  %v6199_v32 = vadd.f32 %v10935_v9, %v6160_v25 }
 0x354   : > { %v6233_v40 = vmax.f32 %v6201_v21, 0.0  ;;  %v8056_v4 = vpop.f32.mrf.mxu1 }
 0x355   : > { %v6202_v30 = vadd.f32 %v10935_v9, %v6163_v13  ;;  %v6161_v29 = vmul.f32 %v10922_v17, %v6122_v26  ;;  %8044 = vmatprep.mubr.msk.bf16.mxu0 %vm2026_vm8, %v6247_v31  ;;  %v6231_v49 = vmax.f32 %v6199_v32, 0.0  ;;  %v6720_v44 = vmul.f32 %v8056_v4, %v11108_v36 }
 0x356   : > { %8045 = vmatmul.mubr.msk.bf16.gmra.mxu0 %vm2026_vm8, %v6248_v46  ;;  %v6584_v5 = vpop.f32.mrf.mxu1 }
 0x357   : > { %v6234_v56 = vmax.f32 %v6202_v30, 0.0  ;;  %v6200_v58 = vadd.f32 %v10935_v9, %v6161_v29  ;;  %v6759_v51 = vadd.f32 %v11116_v22, %v6720_v44  ;;  %v6718_v15 = vmul.f32 %v11108_v36, %v6584_v5 }
 0x358   : > { %v8057_v8 = vpop.f32.mrf.mxu1 }
 0x359   : > { %v6250_v38 = vpack.c.bf16 %v6234_v56, %v6233_v40  ;;  %v6232_v47 = vmax.f32 %v6200_v58, 0.0  ;;  %v6721_v12 = vmul.f32 %v8057_v8, %v11108_v36  ;;  %v6757_v19 = vadd.f32 %v11116_v22, %v6718_v15 }
 0x35a   : > { %v6587_v17 = vpop.f32.mrf.mxu1 }
 0x35b   : > { %v6249_v45 = vpack.c.bf16 %v6232_v47, %v6231_v49  ;;  %v6719_v34 = vmul.f32 %v11108_v36, %v6587_v17  ;;  %v6760_v53 = vadd.f32 %v11116_v22, %v6721_v12 }
 0x35c   : > { %v8060_v27 = vpop.f32.mrf.mxu1 }
 0x35d   : > { %8048 = vmatprep.mubr.msk.bf16.mxu0 %vm2026_vm8, %v6249_v45  ;;  %v6724_v2 = vmul.f32 %v8060_v27, %v11108_v36  ;;  %v6758_v25 = vadd.f32 %v11116_v22, %v6719_v34 }
 0x35e   : > { %8049 = vmatmul.mubr.msk.bf16.gmra.mxu0 %vm2026_vm8, %v6250_v38  ;;  %v6600_v20 = vpop.f32.mrf.mxu1 }
 0x35f   : > { %v6763_v0 = vadd.f32 %v11116_v22, %v6724_v2  ;;  %v6722_v54 = vmul.f32 %v11108_v36, %v6600_v20 }
 0x360   : > { %v8061_v16 = vpop.f32.mrf.mxu1 }
 0x361   : > { %v6725_v32 = vmul.f32 %v8061_v16, %v11108_v36  ;;  %v6761_v49 = vadd.f32 %v11116_v22, %v6722_v54 }
 0x362   : > { %v6603_v42 = vpop.f32.mrf.mxu1 }
 0x363   : > { %v6723_v38 = vmul.f32 %v11108_v36, %v6603_v42  ;;  %v6764_v20 = vadd.f32 %v11116_v22, %v6725_v32 }
 0x364   : > { %v8064_v9 = vpop.f32.mrf.mxu1 }
 0x365   : > { %v6728_v47 = vmul.f32 %v8064_v9, %v11108_v36 }
 0x366   : > { %v11091_v1 = vpop.f32.mrf.mxu1 }
 0x367   : > { %v6767_v15 = vadd.f32 %v11116_v22, %v6728_v47 }
 0x368   : > { %v11093_v7 = vpop.f32.mrf.mxu1 }
 0x36a   : > { %v11095_v57 = vpop.f32.mrf.mxu1 }
 0x36c   : > { %v11097_v60 = vpop.f32.mrf.mxu1 }
 0x36e   : > { %v11099_v48 = vpop.f32.mrf.mxu1 }
 0x36f   : > { %v6730_v32 = vmul.f32 %v11108_v36, %v11099_v48 }
 0x370   : > { %v11101_v14 = vpop.f32.mrf.mxu1 }
 0x372   : > { %v11103_v6 = vpop.f32.mrf.mxu1 }
 0x374   : > { %v11111_v43 = vpop.f32.mrf.mxu1 }
 0x376   : > { %v11132_v3 = vpop.f32.mrf.mxu1 }
 0x378   : > { %v11144_v28 = vpop.f32.mrf.mxu1 }
 0x37a   : > { %v11158_v31 = vpop.f32.mrf.mxu1 }
 0x37c   : > { %v11172_v27 = vpop.f32.mrf.mxu1 }
 0x37e   : > { %v11187_v2 = vpop.f32.mrf.mxu1 }
 0x3e6   : > { %v8022_v62 = vpop.f32.mrf.mxu0 }
 0x3e7   : > { %v6477_v24 = vmul.f32 %v8022_v62, %v11121_v23 }
 0x3e8   : > { %v6341_v10 = vpop.f32.mrf.mxu0 }
 0x3e9   : > { %v6516_v59 = vadd.f32 %v11127_v63, %v6477_v24  ;;  %v6475_v33 = vmul.f32 %v11121_v23, %v6341_v10  ;;  %v6726_v24 = vmul.f32 %v11108_v36, %v11091_v1 }
 0x3ea   : > { %v8023_v52 = vpop.f32.mrf.mxu0 }
 0x3eb   : > { %v6791_v37 = vadd.f32 %v6759_v51, %v6516_v59  ;;  %v6514_v39 = vadd.f32 %v11127_v63, %v6475_v33  ;;  %v6478_v11 = vmul.f32 %v8023_v52, %v11121_v23  ;;  %v6762_v51 = vadd.f32 %v11116_v22, %v6723_v38 }
 0x3ec   : > { %v6344_v18 = vpop.f32.mrf.mxu0  ;;  %v6729_v52 = vmul.f32 %v11093_v7, %v11108_v36  ;;  %v6733_v38 = vmul.f32 %v11101_v14, %v11108_v36 }
 0x3ed   : > { %v6823_v35 = vmax.f32 %v6791_v37, 0.0  ;;  %v6789_v61 = vadd.f32 %v6757_v19, %v6514_v39  ;;  %v6517_v41 = vadd.f32 %v11127_v63, %v6478_v11  ;;  %v6476_v46 = vmul.f32 %v11121_v23, %v6344_v18 }
 0x3ee   : > { %v8026_v50 = vpop.f32.mrf.mxu0  ;;  %v6727_v18 = vmul.f32 %v11108_v36, %v11095_v57  ;;  %v6768_v54 = vadd.f32 %v11116_v22, %v6729_v52 }
 0x3ef   : > { %6856 = vst.msk [vmem:[%s11152_s21 + $0x10] sm:$0xff] %vm6853_vm0, %v6823_v35  ;;  %v6821_v55 = vmax.f32 %v6789_v61, 0.0  ;;  %v6792_v21 = vadd.f32 %v6760_v53, %v6517_v41  ;;  %v6515_v13 = vadd.f32 %v11127_v63, %v6476_v46  ;;  %v6481_v26 = vmul.f32 %v8026_v50, %v11121_v23 }
 0x3f0   : > { %v6357_v30 = vpop.f32.mrf.mxu0  ;;  %v6765_v53 = vadd.f32 %v11116_v22, %v6726_v24  ;;  %v6732_v35 = vmul.f32 %v11097_v60, %v11108_v36 }
 0x3f1   : > { %6854 = vst.msk [vmem:[%s11152_s21] sm:$0xff] %vm6853_vm0, %v6821_v55  ;;  %v6824_v29 = vmax.f32 %v6792_v21, 0.0  ;;  %v6790_v40 = vadd.f32 %v6758_v25, %v6515_v13  ;;  %v6520_v56 = vadd.f32 %v11127_v63, %v6481_v26  ;;  %v6479_v58 = vmul.f32 %v11121_v23, %v6357_v30 }
 0x3f2   : > { %v8027_v45 = vpop.f32.mrf.mxu0  ;;  %v6766_v13 = vadd.f32 %v11116_v22, %v6727_v18  ;;  %v6771_v26 = vadd.f32 %v11116_v22, %v6732_v35 }
 0x3f3   : > { %6857 = vst.msk [vmem:[%s11152_s21 + $0x18] sm:$0xff] %vm6853_vm0, %v6824_v29  ;;  %v6822_v4 = vmax.f32 %v6790_v40, 0.0  ;;  %v6795_v5 = vadd.f32 %v6763_v0, %v6520_v56  ;;  %v6518_v8 = vadd.f32 %v11127_v63, %v6479_v58  ;;  %v6482_v17 = vmul.f32 %v8027_v45, %v11121_v23  ;;  %v11204_v0 = vpop.f32.mrf.mxu1 }
 0x3f4   : > { %v6360_v16 = vpop.f32.mrf.mxu0 }
 0x3f5   : > { %6855 = vst.msk [vmem:[%s11152_s21 + $0x8] sm:$0xff] %vm6853_vm0, %v6822_v4  ;;  %v6827_v42 = vmax.f32 %v6795_v5, 0.0  ;;  %v6793_v9 = vadd.f32 %v6761_v49, %v6518_v8  ;;  %v6521_v44 = vadd.f32 %v11127_v63, %v6482_v17  ;;  %v6480_v62 = vmul.f32 %v11121_v23, %v6360_v16  ;;  %v11219_v49 = vpop.f32.mrf.mxu1 }
 0x3f6   : > { %v8030_v12 = vpop.f32.mrf.mxu0  ;;  %v6769_v8 = vadd.f32 %v11116_v22, %v6730_v32  ;;  %v6731_v17 = vmul.f32 %v11108_v36, %v11103_v6 }
 0x3f7   : > { %6860 = vst.msk [vmem:[%s11152_s21 + $0x30] sm:$0xff] %vm6853_vm0, %v6827_v42  ;;  %v6825_v10 = vmax.f32 %v6793_v9, 0.0  ;;  %v6796_v59 = vadd.f32 %v6764_v20, %v6521_v44  ;;  %v6519_v33 = vadd.f32 %v11127_v63, %v6480_v62  ;;  %v6485_v34 = vmul.f32 %v8030_v12, %v11121_v23  ;;  %v8080_v62 = vpop.f32.mrf.mxu1 }
 0x3f8   : > { %v6373_v19 = vpop.f32.mrf.mxu0  ;;  %v6736_v20 = vmul.f32 %v11111_v43, %v11108_v36 }
 0x3f9   : > { %6858 = vst.msk [vmem:[%s11152_s21 + $0x20] sm:$0xff] %vm6853_vm0, %v6825_v10  ;;  %v6828_v37 = vmax.f32 %v6796_v59, 0.0  ;;  %v6794_v1 = vadd.f32 %v6762_v51, %v6519_v33  ;;  %v6524_v39 = vadd.f32 %v11127_v63, %v6485_v34  ;;  %v6483_v11 = vmul.f32 %v11121_v23, %v6373_v19 }
 0x3fa   : > { %v8031_v61 = vpop.f32.mrf.mxu0  ;;  %v6772_v51 = vadd.f32 %v11116_v22, %v6733_v38  ;;  %v6770_v10 = vadd.f32 %v11116_v22, %v6731_v17  ;;  %v6775_v59 = vadd.f32 %v11116_v22, %v6736_v20  ;;  %v6734_v33 = vmul.f32 %v11108_v36, %v11132_v3 }
 0x3fb   : > { %6861 = vst.msk [vmem:[%s11152_s21 + $0x38] sm:$0xff] %vm6853_vm0, %v6828_v37  ;;  %v6826_v7 = vmax.f32 %v6794_v1, 0.0  ;;  %v6799_v41 = vadd.f32 %v6767_v15, %v6524_v39  ;;  %v6522_v46 = vadd.f32 %v11127_v63, %v6483_v11  ;;  %v6486_v25 = vmul.f32 %v8031_v61, %v11121_v23  ;;  %v6680_v39 = vpop.f32.mrf.mxu1 }
 0x3fc   : > { %v6376_v50 = vpop.f32.mrf.mxu0  ;;  %v6737_v11 = vmul.f32 %v11144_v28, %v11108_v36 }
 0x3fd   : > { %6859 = vst.msk [vmem:[%s11152_s21 + $0x28] sm:$0xff] %vm6853_vm0, %v6826_v7  ;;  %v6831_v57 = vmax.f32 %v6799_v41, 0.0  ;;  %v6797_v60 = vadd.f32 %v6765_v53, %v6522_v46  ;;  %v6525_v55 = vadd.f32 %v11127_v63, %v6486_v25  ;;  %v6484_v21 = vmul.f32 %v11121_v23, %v6376_v50 }
 0x3fe   : > { %v8034_v30 = vpop.f32.mrf.mxu0  ;;  %v6773_v7 = vadd.f32 %v11116_v22, %v6734_v33  ;;  %v6735_v41 = vmul.f32 %v11108_v36, %v11158_v31  ;;  %v6740_v46 = vmul.f32 %v11172_v27, %v11108_v36  ;;  %v6742_v33 = vmul.f32 %v11108_v36, %v6680_v39 }
 0x3ff   : > { %6864 = vst.msk [vmem:[%s11152_s21 + $0x50] sm:$0xff] %vm6853_vm0, %v6831_v57  ;;  %v6829_v29 = vmax.f32 %v6797_v60, 0.0  ;;  %v6800_v40 = vadd.f32 %v6768_v54, %v6525_v55  ;;  %v6523_v56 = vadd.f32 %v11127_v63, %v6484_v21  ;;  %v6489_v58 = vmul.f32 %v8034_v30, %v11121_v23  ;;  %v8081_v60 = vpop.f32.mrf.mxu1 }
 0x400   : > { %v6389_v47 = vpop.f32.mrf.mxu0  ;;  %v6776_v55 = vadd.f32 %v11116_v22, %v6737_v11  ;;  %v6774_v32 = vadd.f32 %v11116_v22, %v6735_v41  ;;  %v6779_v30 = vadd.f32 %v11116_v22, %v6740_v46 }
 0x401   : > { %6862 = vst.msk [vmem:[%s11152_s21 + $0x40] sm:$0xff] %vm6853_vm0, %v6829_v29  ;;  %v6832_v45 = vmax.f32 %v6800_v40, 0.0  ;;  %v6798_v48 = vadd.f32 %v6766_v13, %v6523_v56  ;;  %v6528_v4 = vadd.f32 %v11127_v63, %v6489_v58  ;;  %v6487_v5 = vmul.f32 %v11121_v23, %v6389_v47 }
 0x402   : > { %v8035_v16 = vpop.f32.mrf.mxu0  ;;  %v6738_v29 = vmul.f32 %v11108_v36, %v11187_v2 }
 0x403   : > { %6865 = vst.msk [vmem:[%s11152_s21 + $0x58] sm:$0xff] %vm6853_vm0, %v6832_v45  ;;  %v6830_v14 = vmax.f32 %v6798_v48, 0.0  ;;  %v6803_v42 = vadd.f32 %v6771_v26, %v6528_v4  ;;  %v6526_v9 = vadd.f32 %v11127_v63, %v6487_v5  ;;  %v6490_v44 = vmul.f32 %v8035_v16, %v11121_v23  ;;  %v6683_v45 = vpop.f32.mrf.mxu1 }
 0x404   : > { %v6392_v15 = vpop.f32.mrf.mxu0  ;;  %v6741_v48 = vmul.f32 %v11204_v0, %v11108_v36  ;;  %v6777_v20 = vadd.f32 %v11116_v22, %v6738_v29  ;;  %v6739_v16 = vmul.f32 %v11108_v36, %v11219_v49  ;;  %v6743_v41 = vmul.f32 %v11108_v36, %v6683_v45 }
 0x405   : > { %6863 = vst.msk [vmem:[%s11152_s21 + $0x48] sm:$0xff] %vm6853_vm0, %v6830_v14  ;;  %v6835_v6 = vmax.f32 %v6803_v42, 0.0  ;;  %v6801_v24 = vadd.f32 %v6769_v8, %v6526_v9  ;;  %v6529_v43 = vadd.f32 %v11127_v63, %v6490_v44  ;;  %v6488_v12 = vmul.f32 %v11121_v23, %v6392_v15  ;;  %v8084_v15 = vpop.f32.mrf.mxu1 }
 0x406   : > { %v8038_v34 = vpop.f32.mrf.mxu0  ;;  %v6744_v14 = vmul.f32 %v8080_v62, %v11108_v36  ;;  %v6748_v46 = vmul.f32 %v8084_v15, %v11108_v36 }
 0x407   : > { %6868 = vst.msk [vmem:[%s11152_s21 + $0x70] sm:$0xff] %vm6853_vm0, %v6835_v6  ;;  %v6833_v52 = vmax.f32 %v6801_v24, 0.0  ;;  %v6804_v19 = vadd.f32 %v6772_v51, %v6529_v43  ;;  %v6527_v37 = vadd.f32 %v11127_v63, %v6488_v12  ;;  %v6493_v1 = vmul.f32 %v8038_v34, %v11121_v23  ;;  %v6696_v11 = vpop.f32.mrf.mxu1 }
 0x408   : > { %v6405_v53 = vpop.f32.mrf.mxu0  ;;  %v6780_v6 = vadd.f32 %v11116_v22, %v6741_v48  ;;  %v6746_v29 = vmul.f32 %v11108_v36, %v6696_v11 }
 0x409   : > { %6866 = vst.msk [vmem:[%s11152_s21 + $0x60] sm:$0xff] %vm6853_vm0, %v6833_v52  ;;  %v6836_v18 = vmax.f32 %v6804_v19, 0.0  ;;  %v6802_v3 = vadd.f32 %v6770_v10, %v6527_v37  ;;  %v6532_v35 = vadd.f32 %v11127_v63, %v6493_v1  ;;  %v6491_v61 = vmul.f32 %v11121_v23, %v6405_v53 }
 0x40a   : > { %v8039_v25 = vpop.f32.mrf.mxu0  ;;  %v6778_v10 = vadd.f32 %v11116_v22, %v6739_v16  ;;  %v6745_v53 = vmul.f32 %v8081_v60, %v11108_v36  ;;  %v8085_v60 = vpop.f32.mrf.mxu1 }
 0x40b   : > { %6869 = vst.msk [vmem:[%s11152_s21 + $0x78] sm:$0xff] %vm6853_vm0, %v6836_v18  ;;  %v6834_v28 = vmax.f32 %v6802_v3, 0.0  ;;  %v6807_v54 = vadd.f32 %v6775_v59, %v6532_v35  ;;  %v6530_v50 = vadd.f32 %v11127_v63, %v6491_v61  ;;  %v6494_v57 = vmul.f32 %v8039_v25, %v11121_v23 }
 0x40c   : > { %v6408_v21 = vpop.f32.mrf.mxu0  ;;  %v6783_v59 = vadd.f32 %v11116_v22, %v6744_v14  ;;  %v6699_v45 = vpop.f32.mrf.mxu1  ;;  %v6749_v48 = vmul.f32 %v8085_v60, %v11108_v36 }
 0x40d   : > { %6867 = vst.msk [vmem:[%s11152_s21 + $0x68] sm:$0xff] %vm6853_vm0, %v6834_v28  ;;  %v6839_v31 = vmax.f32 %v6807_v54, 0.0  ;;  %v6805_v13 = vadd.f32 %v6773_v7, %v6530_v50  ;;  %v6533_v27 = vadd.f32 %v11127_v63, %v6494_v57  ;;  %v6492_v26 = vmul.f32 %v11121_v23, %v6408_v21 }
 0x40e   : > { %v8042_v40 = vpop.f32.mrf.mxu0  ;;  %v6781_v7 = vadd.f32 %v11116_v22, %v6742_v33  ;;  %v6747_v16 = vmul.f32 %v11108_v36, %v6699_v45 }
 0x40f   : > { %6872 = vst.msk [vmem:[%s11152_s21 + $0x90] sm:$0xff] %vm6853_vm0, %v6839_v31  ;;  %v6837_v56 = vmax.f32 %v6805_v13, 0.0  ;;  %v6808_v58 = vadd.f32 %v6776_v55, %v6533_v27  ;;  %v6531_v38 = vadd.f32 %v11127_v63, %v6492_v26  ;;  %v6497_v47 = vmul.f32 %v8042_v40, %v11121_v23 }
 0x410   : > { %v6421_v4 = vpop.f32.mrf.mxu0  ;;  %v6784_v55 = vadd.f32 %v11116_v22, %v6745_v53 }
 0x411   : > { %6870 = vst.msk [vmem:[%s11152_s21 + $0x80] sm:$0xff] %vm6853_vm0, %v6837_v56  ;;  %v6840_v5 = vmax.f32 %v6808_v58, 0.0  ;;  %v6806_v2 = vadd.f32 %v6774_v32, %v6531_v38  ;;  %v6536_v8 = vadd.f32 %v11127_v63, %v6497_v47  ;;  %v6495_v17 = vmul.f32 %v11121_v23, %v6421_v4 }
 0x412   : > { %v8043_v42 = vpop.f32.mrf.mxu0  ;;  %v6782_v32 = vadd.f32 %v11116_v22, %v6743_v41 }
 0x413   : > { %6873 = vst.msk [vmem:[%s11152_s21 + $0x98] sm:$0xff] %vm6853_vm0, %v6840_v5  ;;  %v6838_v0 = vmax.f32 %v6806_v2, 0.0  ;;  %v6811_v9 = vadd.f32 %v6779_v30, %v6536_v8  ;;  %v6534_v44 = vadd.f32 %v11127_v63, %v6495_v17  ;;  %v6498_v51 = vmul.f32 %v8043_v42, %v11121_v23 }
 0x414   : > { %v6424_v24 = vpop.f32.mrf.mxu0  ;;  %v6787_v30 = vadd.f32 %v11116_v22, %v6748_v46 }
 0x415   : > { %6871 = vst.msk [vmem:[%s11152_s21 + $0x88] sm:$0xff] %vm6853_vm0, %v6838_v0  ;;  %v6843_v43 = vmax.f32 %v6811_v9, 0.0  ;;  %v6809_v49 = vadd.f32 %v6777_v20, %v6534_v44  ;;  %v6537_v62 = vadd.f32 %v11127_v63, %v6498_v51  ;;  %v6496_v12 = vmul.f32 %v11121_v23, %v6424_v24 }
 0x416   : > { %v8046_v34 = vpop.f32.mrf.mxu0  ;;  %v6785_v20 = vadd.f32 %v11116_v22, %v6746_v29  ;;  %v6788_v51 = vadd.f32 %v11116_v22, %v6749_v48 }
 0x417   : > { %6876 = vst.msk [vmem:[%s11152_s21 + $0xb0] sm:$0xff] %vm6853_vm0, %v6843_v43  ;;  %v6841_v52 = vmax.f32 %v6809_v49, 0.0  ;;  %v6812_v19 = vadd.f32 %v6780_v6, %v6537_v62  ;;  %v6535_v37 = vadd.f32 %v11127_v63, %v6496_v12  ;;  %v6501_v1 = vmul.f32 %v8046_v34, %v11121_v23 }
 0x418   : > { %v6437_v18 = vpop.f32.mrf.mxu0  ;;  %v6786_v49 = vadd.f32 %v11116_v22, %v6747_v16 }
 0x419   : > { %6874 = vst.msk [vmem:[%s11152_s21 + $0xa0] sm:$0xff] %vm6853_vm0, %v6841_v52  ;;  %v6844_v3 = vmax.f32 %v6812_v19, 0.0  ;;  %v6810_v35 = vadd.f32 %v6778_v10, %v6535_v37  ;;  %v6540_v39 = vadd.f32 %v11127_v63, %v6501_v1  ;;  %v6499_v61 = vmul.f32 %v11121_v23, %v6437_v18 }
 0x41a   : > { %v8047_v25 = vpop.f32.mrf.mxu0 }
 0x41b   : > { %6877 = vst.msk [vmem:[%s11152_s21 + $0xb8] sm:$0xff] %vm6853_vm0, %v6844_v3  ;;  %v6842_v28 = vmax.f32 %v6810_v35, 0.0  ;;  %v6815_v54 = vadd.f32 %v6783_v59, %v6540_v39  ;;  %v6538_v50 = vadd.f32 %v11127_v63, %v6499_v61  ;;  %v6502_v57 = vmul.f32 %v8047_v25, %v11121_v23 }
 0x41c   : > { %v6440_v21 = vpop.f32.mrf.mxu0 }
 0x41d   : > { %6875 = vst.msk [vmem:[%s11152_s21 + $0xa8] sm:$0xff] %vm6853_vm0, %v6842_v28  ;;  %v6847_v31 = vmax.f32 %v6815_v54, 0.0  ;;  %v6813_v13 = vadd.f32 %v6781_v7, %v6538_v50  ;;  %v6541_v27 = vadd.f32 %v11127_v63, %v6502_v57  ;;  %v6500_v26 = vmul.f32 %v11121_v23, %v6440_v21 }
 0x41e   : > { %v8050_v40 = vpop.f32.mrf.mxu0 }
 0x41f   : > { %6880 = vst.msk [vmem:[%s11152_s21 + $0xd0] sm:$0xff] %vm6853_vm0, %v6847_v31  ;;  %v6845_v56 = vmax.f32 %v6813_v13, 0.0  ;;  %v6816_v58 = vadd.f32 %v6784_v55, %v6541_v27  ;;  %v6539_v38 = vadd.f32 %v11127_v63, %v6500_v26  ;;  %v6505_v47 = vmul.f32 %v8050_v40, %v11121_v23 }
 0x420   : > { %v6453_v4 = vpop.f32.mrf.mxu0 }
 0x421   : > { %6878 = vst.msk [vmem:[%s11152_s21 + $0xc0] sm:$0xff] %vm6853_vm0, %v6845_v56  ;;  %v6848_v5 = vmax.f32 %v6816_v58, 0.0  ;;  %v6814_v2 = vadd.f32 %v6782_v32, %v6539_v38  ;;  %v6544_v8 = vadd.f32 %v11127_v63, %v6505_v47  ;;  %v6503_v17 = vmul.f32 %v11121_v23, %v6453_v4 }
 0x422   : > { %v8051_v14 = vpop.f32.mrf.mxu0 }
 0x423   : > { %6881 = vst.msk [vmem:[%s11152_s21 + $0xd8] sm:$0xff] %vm6853_vm0, %v6848_v5  ;;  %v6846_v42 = vmax.f32 %v6814_v2, 0.0  ;;  %v6819_v0 = vadd.f32 %v6787_v30, %v6544_v8  ;;  %v6542_v9 = vadd.f32 %v11127_v63, %v6503_v17  ;;  %v6506_v44 = vmul.f32 %v8051_v14, %v11121_v23 }
 0x424   : > { %v6456_v15 = vpop.f32.mrf.mxu0 }
 0x425   : > { %6879 = vst.msk [vmem:[%s11152_s21 + $0xc8] sm:$0xff] %vm6853_vm0, %v6846_v42  ;;  %v6851_v6 = vmax.f32 %v6819_v0, 0.0  ;;  %v6817_v36 = vadd.f32 %v6785_v20, %v6542_v9  ;;  %v6545_v24 = vadd.f32 %v11127_v63, %v6506_v44  ;;  %v6504_v43 = vmul.f32 %v11121_v23, %v6456_v15 }
 0x427   : > { %6884 = vst.msk [vmem:[%s11152_s21 + $0xf0] sm:$0xff] %vm6853_vm0, %v6851_v6  ;;  %v6849_v62 = vmax.f32 %v6817_v36, 0.0  ;;  %v6820_v12 = vadd.f32 %v6788_v51, %v6545_v24  ;;  %v6543_v10 = vadd.f32 %v11127_v63, %v6504_v43 }
 0x429   : > { %6882 = vst.msk [vmem:[%s11152_s21 + $0xe0] sm:$0xff] %vm6853_vm0, %v6849_v62  ;;  %v6852_v59 = vmax.f32 %v6820_v12, 0.0  ;;  %v6818_v33 = vadd.f32 %v6786_v49, %v6543_v10 }
 0x42b   : > { %6885 = vst.msk [vmem:[%s11152_s21 + $0xf8] sm:$0xff] %vm6853_vm0, %v6852_v59  ;;  %v6850_v22 = vmax.f32 %v6818_v33, 0.0 }
 0x42d   : > { %6883 = vst.msk [vmem:[%s11152_s21 + $0xe8] sm:$0xff] %vm6853_vm0, %v6850_v22 }
 0x42e   : > { %8242 = shalt.err (!%p8239_p3)
}
 0x42f   : > { %s8243_s24 = scalar_lea.hbm %s11354_s16, 4096  ;;  %s8247_s22 = scalar_lea.hbm %s11417_s13, 8192 }
 0x430   : > { %p8244_p4 = scmp.ne.s32.totalorder %s11354_s16, %s8243_s24  ;;  %p8248_p9 = scmp.lt.s32.totalorder %s11354_s16, %s11417_s13 }
 0x431   : > { %p8249_p10 = scmp.lt.s32.totalorder %s8247_s22, %s8243_s24 }
 0x432   : > { %p8245_p7 = pnand %p8244_p4, %p8403_p5 }
 0x433   : > { %p8250_p11 = por %p8249_p10, %p8248_p9 }
 0x434   : > { %p8246_p8 = pneg %p8245_p7 }
 0x436   : > { %p8251_p12 = pnand %p8250_p11, %p8246_p8 }
 0x438   : > { %8254 = shalt.err (!%p8251_p12)
}
 0x439   : > { %s8293_s20 = smov 128   ;;  %s8294_s23 = smov 8  }
 0x43a   : > { %8088 = dma.vmem_to_hbm [thread:$0]  (%p8403_p5), %s11356_s15, 4096, %s11354_s16, %s11364_s29, %s8293_s20, %s8293_s20, %s8294_s23  }
 0x43b PF: > { %p8094_p13 = scmp.ge.s32.totalorder %s8289_s28, 2  ;;  %s6915_s0 = sand.u32 1, %s8277_s25  }
 0x43c   : > { %s6916_s1 = scalar_lea.sflag [#allocation4], %s6915_s0 }
 0x43d   : > { %p8091_p0 = pnand %p8094_p13, %p8407_p6 }
 0x43f   : > { %p8092_p1 = pneg %p8091_p0 }
 0x441   : > { %8272 = dma.done.wait (%p8092_p1), %s6916_s1, 4096  }
 0x442   : > { %8274 = vsyncadd (%p8092_p1), %s6916_s1, 4294963200  ;;  %p23_p2 = scmp.ge.s32.totalorder %s8390_s14, 4   ;;  %s11558_s25 = smov %s8281_s26 }
 0x443   : > { %s11559_s26 = smov %s8285_s27  ;;  %s11560_s27 = smov %s8401_s17 }
 0x444   : > { %s11561_s28 = smov %s8390_s14  ;;  %25 = sbr.rel (!%p23_p2) target bundleno = 7 (0x7), region = 118 }
 0x449   :  { %6921 = vsyncpa [#allocation4], 1 }
 0x44a   :  { %6923 = vsyncpa [#allocation4 + $0x1], 1 }

</bundles_post_ra>
